<compile_context>
chip_gen: v7x
topology: tpu7x:2x2x1
jax: 0.10.0
libtpu: 0.0.40
codegen_flags: <defaults>
</compile_context>

<pallas_src>
import jax
import jax.numpy as jnp
from jax import lax
from jax.experimental import pallas as pl
from jax.experimental.pallas import tpu as pltpu

EPS = 1e-5
_OFF = 8           # sublane-aligned column offset of the padded interior
_PAD_W_EXTRA = 10  # scratch width = W + 10; live window is columns 7 .. W+8


def _residual_block_kernel(
    x_ref,    # (N, H, W, C)       f32   unpadded input (conv1 src + residual)
    w1_ref,   # (3, 3C, C)         bf16  conv1 taps, per-dy, (dx, Cin) flattened
    g1_ref,   # (1, C)             f32   bn1 gamma
    be1_ref,  # (1, C)             f32   bn1 beta
    w2_ref,   # (3, 3C, C)         bf16  conv2 taps
    g2_ref,   # (1, C)             f32   bn2 gamma
    be2_ref,  # (1, C)             f32   bn2 beta
    out_ref,  # (N, H, W, C)       f32   output
    pad_ref,  # (N, H+2, W+10, C)  f32   VMEM scratch shared by conv1 / conv2
):
    N, H, W, C = x_ref.shape
    Hp = H + 2
    inv_cnt = 1.0 / float(N * H * W)

    def conv3x3(w_ref):
        # dx-concatenated lhs: (N, Hp, W, 3C) bf16.  One K=3C contraction per
        # dy row -> MXU accumulates internally; only 2 f32 adds of the output.
        cat = jnp.concatenate(
            [pad_ref[:, :, _OFF - 1 + dx:_OFF - 1 + dx + W, :].astype(jnp.bfloat16)
             for dx in range(3)],
            axis=-1)
        dn = (((3,), (0,)), ((), ()))
        acc = lax.dot_general(cat[:, 0:H], w_ref[0], dn,
                              preferred_element_type=jnp.float32)
        for dy in (1, 2):
            acc += lax.dot_general(cat[:, dy:dy + H], w_ref[dy], dn,
                                   preferred_element_type=jnp.float32)
        return acc                                    # (N, H, W, C) f32

    def bn_scale_shift(y, g_ref, be_ref):
        # Training-mode BatchNorm folded to a per-channel affine in ONE pass:
        #   var = E[y^2] - mean^2, scale = gamma*rsqrt(var+eps),
        #   shift = beta - mean*scale  =>  bn(y) == y*scale + shift.
        s = jnp.sum(y, axis=(0, 1, 2), keepdims=True)
        ss = jnp.sum(y * y, axis=(0, 1, 2), keepdims=True)
        mean = s * inv_cnt
        var = ss * inv_cnt - mean * mean
        scale = g_ref[...].reshape(1, 1, 1, C) * lax.rsqrt(var + EPS)
        shift = be_ref[...].reshape(1, 1, 1, C) - mean * scale
        return scale, shift

    # ---- zero only the 1-wide border of the live read window ---------------
    # (rows 0 and H+1 over columns 7..W+8, plus columns 7 and W+8; the dead
    #  columns 0..6 and W+9 are never read, the interior is overwritten below)
    zrow = jnp.zeros((N, 1, W + 2, C), jnp.float32)
    zcol = jnp.zeros((N, Hp, 1, C), jnp.float32)
    pad_ref[:, 0:1, _OFF - 1:_OFF + W + 1, :] = zrow
    pad_ref[:, H + 1:Hp, _OFF - 1:_OFF + W + 1, :] = zrow
    pad_ref[:, :, _OFF - 1:_OFF, :] = zcol
    pad_ref[:, :, _OFF + W:_OFF + W + 1, :] = zcol

    # ---- conv1 -> bn1 -> relu  (conv bias exactly cancelled by BN) ---------
    pad_ref[:, 1:H + 1, _OFF:_OFF + W, :] = x_ref[...]   # sublane-aligned store
    y1 = conv3x3(w1_ref)
    sc1, sh1 = bn_scale_shift(y1, g1_ref, be1_ref)
    h = jnp.maximum(y1 * sc1 + sh1, 0.0)                 # (N, H, W, C) f32

    # ---- conv2 -> bn2 -> residual add (scratch reused; borders still zero) --
    pad_ref[:, 1:H + 1, _OFF:_OFF + W, :] = h            # sublane-aligned store
    y2 = conv3x3(w2_ref)
    sc2, sh2 = bn_scale_shift(y2, g2_ref, be2_ref)
    out_ref[...] = y2 * sc2 + sh2 + x_ref[...]           # residual in f32


def _pack_conv_weight(w):
    # PyTorch (Cout, Cin, 3, 3) -> (3, 3*Cin, Cout) bf16:
    # per-dy rows with the (dx, Cin) contraction flattened dx-major so it
    # matches the dx-concatenated lhs layout.
    c_out, c_in = w.shape[0], w.shape[1]
    w_t = jnp.transpose(w, (2, 3, 1, 0))          # (3, 3, Cin, Cout)
    return w_t.reshape(3, 3 * c_in, c_out).astype(jnp.bfloat16)


@jax.jit
def residual_block(x_nchw, w1, b1, g1, be1, w2, b2, g2, be2):
    """CycleGAN ResidualBlock forward.

    x_nchw: (N, C, H, W) f32; conv weights in PyTorch (Cout, Cin, 3, 3).
    b1 / b2 are accepted for interface parity but not sent to the kernel: a
    per-channel conv bias immediately followed by training-mode BatchNorm is
    mathematically a no-op (mean subtraction removes it, variance unchanged).
    """
    N, C, H, W = x_nchw.shape

    # TODO(synk): when 6-9 residual blocks are stacked, keep activations NHWC
    # across blocks and transpose once at the ends instead of per block.
    x = jnp.transpose(x_nchw, (0, 2, 3, 1)).astype(jnp.float32)   # NHWC, unpadded

    as_row = lambda v: v.reshape(1, C).astype(jnp.float32)
    vmem = pl.BlockSpec(memory_space=pltpu.MemorySpace.VMEM)

    # Scoped-VMEM request sized from the actual live set (x, out, padded
    # scratch, bf16 cat lhs, f32 conv acc / h), with headroom; clamped so it
    # is valid on v5e/v6e (128 MiB physical) and v7x (64 MiB physical).
    act = N * H * W * C * 4
    padb = N * (H + 2) * (W + _PAD_W_EXTRA) * C * 4
    wts = 2 * 3 * 3 * C * C * 2
    vmem_limit = int(min(64 * 2 ** 20, max(32 * 2 ** 20, 12 * act + 2 * padb + wts)))

    # TODO(synk): at production CycleGAN sizes (C=256, H=W>=64) tile over N/H
    # with a 1-row halo and two-phase BatchNorm (per-tile sum/sumsq on a
    # trailing 'arbitrary' grid axis, then normalize), marking spatial axes
    # 'parallel' so v7x's 64 MiB VMEM and both TensorCores are used and DMA
    # overlaps compute on v5e/v6e; at this toy size a single invocation with
    # global stats is correct and fastest.
    # TODO(synk): for small C (this C=4 toy) a lane-dense im2col layout
    # ((N*H*W, 9C) with M on sublanes) would avoid masked output stores and
    # ~3% MXU utilization; at real CycleGAN C>=128 the NHWC layout is right.
    out = pl.pallas_call(
        _residual_block_kernel,
        out_shape=jax.ShapeDtypeStruct((N, H, W, C), jnp.float32),
        in_specs=[vmem] * 7,
        out_specs=vmem,
        scratch_shapes=[pltpu.VMEM((N, H + 2, W + _PAD_W_EXTRA, C), jnp.float32)],
        compiler_params=pltpu.CompilerParams(vmem_limit_bytes=vmem_limit),
    )(x, _pack_conv_weight(w1), as_row(g1), as_row(be1),
      _pack_conv_weight(w2), as_row(g2), as_row(be2))

    return jnp.transpose(out, (0, 3, 1, 2))  # back to NCHW


def _reference(x, w1, b1, g1, be1, w2, b2, g2, be2):
    """Pure-JAX reference with the same MXU precision policy as the kernel
    (bf16 conv operands, f32 accumulation; BN / ReLU / residual in f32).
    Conv biases ARE applied here, which also verifies that dropping them
    inside the kernel (they cancel under training-mode BN) is exact."""
    def conv(x_, w, b):
        y = lax.conv_general_dilated(
            x_.astype(jnp.bfloat16), w.astype(jnp.bfloat16),
            window_strides=(1, 1), padding=((1, 1), (1, 1)),
            dimension_numbers=("NCHW", "OIHW", "NCHW"),
            preferred_element_type=jnp.float32)
        return y + b.reshape(1, -1, 1, 1)

    def bn(x_, g, be):
        mean = jnp.mean(x_, axis=(0, 2, 3), keepdims=True)
        var = jnp.mean((x_ - mean) ** 2, axis=(0, 2, 3), keepdims=True)
        return (x_ - mean) * lax.rsqrt(var + EPS) * g.reshape(1, -1, 1, 1) \
               + be.reshape(1, -1, 1, 1)

    h = jnp.maximum(bn(conv(x, w1, b1), g1, be1), 0.0)
    return bn(conv(h, w2, b2), g2, be2) + x


if __name__ == "__main__":
    key = jax.random.PRNGKey(0)
    N, C, H, W = 2, 4, 16, 16

    keys = jax.random.split(key, 9)
    x = jax.random.normal(keys[0], (N, C, H, W), jnp.float32)
    w1 = 0.1 * jax.random.normal(keys[1], (C, C, 3, 3), jnp.float32)
    b1 = 0.1 * jax.random.normal(keys[2], (C,), jnp.float32)
    w2 = 0.1 * jax.random.normal(keys[3], (C, C, 3, 3), jnp.float32)
    b2 = 0.1 * jax.random.normal(keys[4], (C,), jnp.float32)
    # BatchNorm affine params (PyTorch init: gamma=1, beta=0), slightly
    # perturbed so the affine path is exercised.
    g1 = 1.0 + 0.01 * jax.random.normal(keys[5], (C,), jnp.float32)
    be1 = 0.01 * jax.random.normal(keys[6], (C,), jnp.float32)
    g2 = 1.0 + 0.01 * jax.random.normal(keys[7], (C,), jnp.float32)
    be2 = 0.01 * jax.random.normal(keys[8], (C,), jnp.float32)

    out = residual_block(x, w1, b1, g1, be1, w2, b2, g2, be2)
    out = jax.block_until_ready(out)

    ref = _reference(x, w1, b1, g1, be1, w2, b2, g2, be2)
    assert out.shape == (N, C, H, W)
    # Tolerance sized for bf16 MXU operands: up to ~1 bf16 ulp of the O(1)
    # normalized activations propagated through conv2 and bn2's scale.
    err = float(jnp.max(jnp.abs(out - ref)))
    assert err < 3e-2, f"mismatch vs reference: max abs err = {err}"

    print("KERNEL_OK")
</pallas_src>

<mosaic_0001>
module attributes {stable_mosaic.version = 11 : i64} {
  func.func @_residual_block_kernel(%arg0: memref<2x16x16x4xf32, #tpu.memory_space<vmem>>, %arg1: memref<3x12x4xbf16, #tpu.memory_space<vmem>>, %arg2: memref<1x4xf32, #tpu.memory_space<vmem>>, %arg3: memref<1x4xf32, #tpu.memory_space<vmem>>, %arg4: memref<3x12x4xbf16, #tpu.memory_space<vmem>>, %arg5: memref<1x4xf32, #tpu.memory_space<vmem>>, %arg6: memref<1x4xf32, #tpu.memory_space<vmem>>, %arg7: memref<2x16x16x4xf32, #tpu.memory_space<vmem>>, %arg8: memref<2x18x26x4xf32, #tpu.memory_space<vmem>>) attributes {dimension_semantics = [], scalar_prefetch = 0 : i64, scratch_operands = 1 : i64, tpu.core_type = #tpu.core_type<tc>} {
    %cst = arith.constant 0.000000e+00 : f32
    %0 = vector.broadcast %cst : f32 to vector<2x1x18x4xf32>
    %cst_0 = arith.constant 0.000000e+00 : f32
    %1 = vector.broadcast %cst_0 : f32 to vector<2x18x1x4xf32>
    %c0 = arith.constant 0 : index
    %c0_1 = arith.constant 0 : index
    %c7 = arith.constant 7 : index
    %c0_2 = arith.constant 0 : index
    %2 = vector.load %arg8[%c0, %c0_1, %c7, %c0_2] : memref<2x18x26x4xf32, #tpu.memory_space<vmem>>, vector<2x1x18x4xf32>
    tpu.vector_store %arg8[%c0, %c0_1, %c7, %c0_2], %0 {strides = array<i32>} : memref<2x18x26x4xf32, #tpu.memory_space<vmem>>, vector<2x1x18x4xf32>,
    %c0_3 = arith.constant 0 : index
    %c17 = arith.constant 17 : index
    %c7_4 = arith.constant 7 : index
    %c0_5 = arith.constant 0 : index
    %3 = vector.load %arg8[%c0_3, %c17, %c7_4, %c0_5] : memref<2x18x26x4xf32, #tpu.memory_space<vmem>>, vector<2x1x18x4xf32>
    tpu.vector_store %arg8[%c0_3, %c17, %c7_4, %c0_5], %0 {strides = array<i32>} : memref<2x18x26x4xf32, #tpu.memory_space<vmem>>, vector<2x1x18x4xf32>,
    %c0_6 = arith.constant 0 : index
    %c0_7 = arith.constant 0 : index
    %c7_8 = arith.constant 7 : index
    %c0_9 = arith.constant 0 : index
    %4 = vector.load %arg8[%c0_6, %c0_7, %c7_8, %c0_9] : memref<2x18x26x4xf32, #tpu.memory_space<vmem>>, vector<2x18x1x4xf32>
    tpu.vector_store %arg8[%c0_6, %c0_7, %c7_8, %c0_9], %1 {strides = array<i32>} : memref<2x18x26x4xf32, #tpu.memory_space<vmem>>, vector<2x18x1x4xf32>,
    %c0_10 = arith.constant 0 : index
    %c0_11 = arith.constant 0 : index
    %c24 = arith.constant 24 : index
    %c0_12 = arith.constant 0 : index
    %5 = vector.load %arg8[%c0_10, %c0_11, %c24, %c0_12] : memref<2x18x26x4xf32, #tpu.memory_space<vmem>>, vector<2x18x1x4xf32>
    tpu.vector_store %arg8[%c0_10, %c0_11, %c24, %c0_12], %1 {strides = array<i32>} : memref<2x18x26x4xf32, #tpu.memory_space<vmem>>, vector<2x18x1x4xf32>,
    %c0_13 = arith.constant 0 : index
    %c0_14 = arith.constant 0 : index
    %c0_15 = arith.constant 0 : index
    %c0_16 = arith.constant 0 : index
    %6 = vector.load %arg0[%c0_13, %c0_14, %c0_15, %c0_16] : memref<2x16x16x4xf32, #tpu.memory_space<vmem>>, vector<2x16x16x4xf32>
    %c0_17 = arith.constant 0 : index
    %c1 = arith.constant 1 : index
    %c8 = arith.constant 8 : index
    %c0_18 = arith.constant 0 : index
    %7 = vector.load %arg8[%c0_17, %c1, %c8, %c0_18] : memref<2x18x26x4xf32, #tpu.memory_space<vmem>>, vector<2x16x16x4xf32>
    tpu.vector_store %arg8[%c0_17, %c1, %c8, %c0_18], %6 {strides = array<i32>} : memref<2x18x26x4xf32, #tpu.memory_space<vmem>>, vector<2x16x16x4xf32>,
    %c0_19 = arith.constant 0 : index
    %c0_20 = arith.constant 0 : index
    %c7_21 = arith.constant 7 : index
    %c0_22 = arith.constant 0 : index
    %8 = vector.load %arg8[%c0_19, %c0_20, %c7_21, %c0_22] : memref<2x18x26x4xf32, #tpu.memory_space<vmem>>, vector<2x18x16x4xf32>
    %9 = arith.truncf %8 : vector<2x18x16x4xf32> to vector<2x18x16x4xbf16>
    %c0_23 = arith.constant 0 : index
    %c0_24 = arith.constant 0 : index
    %c8_25 = arith.constant 8 : index
    %c0_26 = arith.constant 0 : index
    %10 = vector.load %arg8[%c0_23, %c0_24, %c8_25, %c0_26] : memref<2x18x26x4xf32, #tpu.memory_space<vmem>>, vector<2x18x16x4xf32>
    %11 = arith.truncf %10 : vector<2x18x16x4xf32> to vector<2x18x16x4xbf16>
    %c0_27 = arith.constant 0 : index
    %c0_28 = arith.constant 0 : index
    %c9 = arith.constant 9 : index
    %c0_29 = arith.constant 0 : index
    %12 = vector.load %arg8[%c0_27, %c0_28, %c9, %c0_29] : memref<2x18x26x4xf32, #tpu.memory_space<vmem>>, vector<2x18x16x4xf32>
    %13 = arith.truncf %12 : vector<2x18x16x4xf32> to vector<2x18x16x4xbf16>
    %14 = tpu.concatenate %9, %11, %13 in 3 : vector<2x18x16x4xbf16>, vector<2x18x16x4xbf16>, vector<2x18x16x4xbf16> -> vector<2x18x16x12xbf16>
    %15 = vector.extract_strided_slice %14 {offsets = [0, 0, 0, 0], sizes = [2, 16, 16, 12], strides = [1, 1, 1, 1]} : vector<2x18x16x12xbf16> to vector<2x16x16x12xbf16>
    %c0_30 = arith.constant 0 : index
    %c0_31 = arith.constant 0 : index
    %c0_32 = arith.constant 0 : index
    %16 = vector.load %arg1[%c0_30, %c0_31, %c0_32] : memref<3x12x4xbf16, #tpu.memory_space<vmem>>, vector<1x12x4xbf16>
    %17 = vector.shape_cast %16 : vector<1x12x4xbf16> to vector<12x4xbf16>
    %cst_33 = arith.constant dense<0.000000e+00> : vector<2x16x16x4xf32>
    %18 = tpu.matmul %15, %17, %cst_33 {dimension_numbers = #tpu.dot_dimension_numbers<[3], [0], [0, 1, 2], [1], [0, 0, 0, 1, 0, 2, 1, 1], [], []>} : vector<2x16x16x12xbf16>, vector<12x4xbf16>, vector<2x16x16x4xf32> -> vector<2x16x16x4xf32>
    %19 = vector.extract_strided_slice %14 {offsets = [0, 1, 0, 0], sizes = [2, 16, 16, 12], strides = [1, 1, 1, 1]} : vector<2x18x16x12xbf16> to vector<2x16x16x12xbf16>
    %c1_34 = arith.constant 1 : index
    %c0_35 = arith.constant 0 : index
    %c0_36 = arith.constant 0 : index
    %20 = vector.load %arg1[%c1_34, %c0_35, %c0_36] : memref<3x12x4xbf16, #tpu.memory_space<vmem>>, vector<1x12x4xbf16>
    %21 = vector.shape_cast %20 : vector<1x12x4xbf16> to vector<12x4xbf16>
    %cst_37 = arith.constant dense<0.000000e+00> : vector<2x16x16x4xf32>
    %22 = tpu.matmul %19, %21, %cst_37 {dimension_numbers = #tpu.dot_dimension_numbers<[3], [0], [0, 1, 2], [1], [0, 0, 0, 1, 0, 2, 1, 1], [], []>} : vector<2x16x16x12xbf16>, vector<12x4xbf16>, vector<2x16x16x4xf32> -> vector<2x16x16x4xf32>
    %23 = arith.addf %18, %22 : vector<2x16x16x4xf32>
    %24 = vector.extract_strided_slice %14 {offsets = [0, 2, 0, 0], sizes = [2, 16, 16, 12], strides = [1, 1, 1, 1]} : vector<2x18x16x12xbf16> to vector<2x16x16x12xbf16>
    %c2 = arith.constant 2 : index
    %c0_38 = arith.constant 0 : index
    %c0_39 = arith.constant 0 : index
    %25 = vector.load %arg1[%c2, %c0_38, %c0_39] : memref<3x12x4xbf16, #tpu.memory_space<vmem>>, vector<1x12x4xbf16>
    %26 = vector.shape_cast %25 : vector<1x12x4xbf16> to vector<12x4xbf16>
    %cst_40 = arith.constant dense<0.000000e+00> : vector<2x16x16x4xf32>
    %27 = tpu.matmul %24, %26, %cst_40 {dimension_numbers = #tpu.dot_dimension_numbers<[3], [0], [0, 1, 2], [1], [0, 0, 0, 1, 0, 2, 1, 1], [], []>} : vector<2x16x16x12xbf16>, vector<12x4xbf16>, vector<2x16x16x4xf32> -> vector<2x16x16x4xf32>
    %28 = arith.addf %23, %27 : vector<2x16x16x4xf32>
    %cst_41 = arith.constant dense<0.000000e+00> : vector<4xf32>
    %29 = vector.multi_reduction <add>, %28, %cst_41 [0, 1, 2] : vector<2x16x16x4xf32> to vector<4xf32>
    %30 = vector.shape_cast %29 : vector<4xf32> to vector<1x1x1x4xf32>
    %31 = arith.mulf %28, %28 : vector<2x16x16x4xf32>
    %cst_42 = arith.constant dense<0.000000e+00> : vector<4xf32>
    %32 = vector.multi_reduction <add>, %31, %cst_42 [0, 1, 2] : vector<2x16x16x4xf32> to vector<4xf32>
    %33 = vector.shape_cast %32 : vector<4xf32> to vector<1x1x1x4xf32>
    %cst_43 = arith.constant 0.001953125 : f32
    %34 = vector.broadcast %cst_43 : f32 to vector<1x1x1x4xf32>
    %35 = arith.mulf %30, %34 : vector<1x1x1x4xf32>
    %cst_44 = arith.constant 0.001953125 : f32
    %36 = vector.broadcast %cst_44 : f32 to vector<1x1x1x4xf32>
    %37 = arith.mulf %33, %36 : vector<1x1x1x4xf32>
    %38 = arith.mulf %35, %35 : vector<1x1x1x4xf32>
    %39 = arith.subf %37, %38 : vector<1x1x1x4xf32>
    %c0_45 = arith.constant 0 : index
    %c0_46 = arith.constant 0 : index
    %40 = vector.load %arg2[%c0_45, %c0_46] : memref<1x4xf32, #tpu.memory_space<vmem>>, vector<1x4xf32>
    %41 = vector.shape_cast %40 : vector<1x4xf32> to vector<1x1x1x4xf32>
    %cst_47 = arith.constant 9.99999974E-6 : f32
    %42 = vector.broadcast %cst_47 : f32 to vector<1x1x1x4xf32>
    %43 = arith.addf %39, %42 : vector<1x1x1x4xf32>
    %44 = math.rsqrt %43 : vector<1x1x1x4xf32>
    %45 = arith.mulf %41, %44 : vector<1x1x1x4xf32>
    %c0_48 = arith.constant 0 : index
    %c0_49 = arith.constant 0 : index
    %46 = vector.load %arg3[%c0_48, %c0_49] : memref<1x4xf32, #tpu.memory_space<vmem>>, vector<1x4xf32>
    %47 = vector.shape_cast %46 : vector<1x4xf32> to vector<1x1x1x4xf32>
    %48 = arith.mulf %35, %45 : vector<1x1x1x4xf32>
    %49 = arith.subf %47, %48 : vector<1x1x1x4xf32>
    %50 = vector.broadcast %45 : vector<1x1x1x4xf32> to vector<2x16x16x4xf32>
    %51 = arith.mulf %28, %50 : vector<2x16x16x4xf32>
    %52 = vector.broadcast %49 : vector<1x1x1x4xf32> to vector<2x16x16x4xf32>
    %53 = arith.addf %51, %52 : vector<2x16x16x4xf32>
    %cst_50 = arith.constant 0.000000e+00 : f32
    %54 = vector.broadcast %cst_50 : f32 to vector<2x16x16x4xf32>
    %55 = arith.maximumf %53, %54 : vector<2x16x16x4xf32>
    %c0_51 = arith.constant 0 : index
    %c1_52 = arith.constant 1 : index
    %c8_53 = arith.constant 8 : index
    %c0_54 = arith.constant 0 : index
    %56 = vector.load %arg8[%c0_51, %c1_52, %c8_53, %c0_54] : memref<2x18x26x4xf32, #tpu.memory_space<vmem>>, vector<2x16x16x4xf32>
    tpu.vector_store %arg8[%c0_51, %c1_52, %c8_53, %c0_54], %55 {strides = array<i32>} : memref<2x18x26x4xf32, #tpu.memory_space<vmem>>, vector<2x16x16x4xf32>,
    %c0_55 = arith.constant 0 : index
    %c0_56 = arith.constant 0 : index
    %c7_57 = arith.constant 7 : index
    %c0_58 = arith.constant 0 : index
    %57 = vector.load %arg8[%c0_55, %c0_56, %c7_57, %c0_58] : memref<2x18x26x4xf32, #tpu.memory_space<vmem>>, vector<2x18x16x4xf32>
    %58 = arith.truncf %57 : vector<2x18x16x4xf32> to vector<2x18x16x4xbf16>
    %c0_59 = arith.constant 0 : index
    %c0_60 = arith.constant 0 : index
    %c8_61 = arith.constant 8 : index
    %c0_62 = arith.constant 0 : index
    %59 = vector.load %arg8[%c0_59, %c0_60, %c8_61, %c0_62] : memref<2x18x26x4xf32, #tpu.memory_space<vmem>>, vector<2x18x16x4xf32>
    %60 = arith.truncf %59 : vector<2x18x16x4xf32> to vector<2x18x16x4xbf16>
    %c0_63 = arith.constant 0 : index
    %c0_64 = arith.constant 0 : index
    %c9_65 = arith.constant 9 : index
    %c0_66 = arith.constant 0 : index
    %61 = vector.load %arg8[%c0_63, %c0_64, %c9_65, %c0_66] : memref<2x18x26x4xf32, #tpu.memory_space<vmem>>, vector<2x18x16x4xf32>
    %62 = arith.truncf %61 : vector<2x18x16x4xf32> to vector<2x18x16x4xbf16>
    %63 = tpu.concatenate %58, %60, %62 in 3 : vector<2x18x16x4xbf16>, vector<2x18x16x4xbf16>, vector<2x18x16x4xbf16> -> vector<2x18x16x12xbf16>
    %64 = vector.extract_strided_slice %63 {offsets = [0, 0, 0, 0], sizes = [2, 16, 16, 12], strides = [1, 1, 1, 1]} : vector<2x18x16x12xbf16> to vector<2x16x16x12xbf16>
    %c0_67 = arith.constant 0 : index
    %c0_68 = arith.constant 0 : index
    %c0_69 = arith.constant 0 : index
    %65 = vector.load %arg4[%c0_67, %c0_68, %c0_69] : memref<3x12x4xbf16, #tpu.memory_space<vmem>>, vector<1x12x4xbf16>
    %66 = vector.shape_cast %65 : vector<1x12x4xbf16> to vector<12x4xbf16>
    %cst_70 = arith.constant dense<0.000000e+00> : vector<2x16x16x4xf32>
    %67 = tpu.matmul %64, %66, %cst_70 {dimension_numbers = #tpu.dot_dimension_numbers<[3], [0], [0, 1, 2], [1], [0, 0, 0, 1, 0, 2, 1, 1], [], []>} : vector<2x16x16x12xbf16>, vector<12x4xbf16>, vector<2x16x16x4xf32> -> vector<2x16x16x4xf32>
    %68 = vector.extract_strided_slice %63 {offsets = [0, 1, 0, 0], sizes = [2, 16, 16, 12], strides = [1, 1, 1, 1]} : vector<2x18x16x12xbf16> to vector<2x16x16x12xbf16>
    %c1_71 = arith.constant 1 : index
    %c0_72 = arith.constant 0 : index
    %c0_73 = arith.constant 0 : index
    %69 = vector.load %arg4[%c1_71, %c0_72, %c0_73] : memref<3x12x4xbf16, #tpu.memory_space<vmem>>, vector<1x12x4xbf16>
    %70 = vector.shape_cast %69 : vector<1x12x4xbf16> to vector<12x4xbf16>
    %cst_74 = arith.constant dense<0.000000e+00> : vector<2x16x16x4xf32>
    %71 = tpu.matmul %68, %70, %cst_74 {dimension_numbers = #tpu.dot_dimension_numbers<[3], [0], [0, 1, 2], [1], [0, 0, 0, 1, 0, 2, 1, 1], [], []>} : vector<2x16x16x12xbf16>, vector<12x4xbf16>, vector<2x16x16x4xf32> -> vector<2x16x16x4xf32>
    %72 = arith.addf %67, %71 : vector<2x16x16x4xf32>
    %73 = vector.extract_strided_slice %63 {offsets = [0, 2, 0, 0], sizes = [2, 16, 16, 12], strides = [1, 1, 1, 1]} : vector<2x18x16x12xbf16> to vector<2x16x16x12xbf16>
    %c2_75 = arith.constant 2 : index
    %c0_76 = arith.constant 0 : index
    %c0_77 = arith.constant 0 : index
    %74 = vector.load %arg4[%c2_75, %c0_76, %c0_77] : memref<3x12x4xbf16, #tpu.memory_space<vmem>>, vector<1x12x4xbf16>
    %75 = vector.shape_cast %74 : vector<1x12x4xbf16> to vector<12x4xbf16>
    %cst_78 = arith.constant dense<0.000000e+00> : vector<2x16x16x4xf32>
    %76 = tpu.matmul %73, %75, %cst_78 {dimension_numbers = #tpu.dot_dimension_numbers<[3], [0], [0, 1, 2], [1], [0, 0, 0, 1, 0, 2, 1, 1], [], []>} : vector<2x16x16x12xbf16>, vector<12x4xbf16>, vector<2x16x16x4xf32> -> vector<2x16x16x4xf32>
    %77 = arith.addf %72, %76 : vector<2x16x16x4xf32>
    %cst_79 = arith.constant dense<0.000000e+00> : vector<4xf32>
    %78 = vector.multi_reduction <add>, %77, %cst_79 [0, 1, 2] : vector<2x16x16x4xf32> to vector<4xf32>
    %79 = vector.shape_cast %78 : vector<4xf32> to vector<1x1x1x4xf32>
    %80 = arith.mulf %77, %77 : vector<2x16x16x4xf32>
    %cst_80 = arith.constant dense<0.000000e+00> : vector<4xf32>
    %81 = vector.multi_reduction <add>, %80, %cst_80 [0, 1, 2] : vector<2x16x16x4xf32> to vector<4xf32>
    %82 = vector.shape_cast %81 : vector<4xf32> to vector<1x1x1x4xf32>
    %cst_81 = arith.constant 0.001953125 : f32
    %83 = vector.broadcast %cst_81 : f32 to vector<1x1x1x4xf32>
    %84 = arith.mulf %79, %83 : vector<1x1x1x4xf32>
    %cst_82 = arith.constant 0.001953125 : f32
    %85 = vector.broadcast %cst_82 : f32 to vector<1x1x1x4xf32>
    %86 = arith.mulf %82, %85 : vector<1x1x1x4xf32>
    %87 = arith.mulf %84, %84 : vector<1x1x1x4xf32>
    %88 = arith.subf %86, %87 : vector<1x1x1x4xf32>
    %c0_83 = arith.constant 0 : index
    %c0_84 = arith.constant 0 : index
    %89 = vector.load %arg5[%c0_83, %c0_84] : memref<1x4xf32, #tpu.memory_space<vmem>>, vector<1x4xf32>
    %90 = vector.shape_cast %89 : vector<1x4xf32> to vector<1x1x1x4xf32>
    %cst_85 = arith.constant 9.99999974E-6 : f32
    %91 = vector.broadcast %cst_85 : f32 to vector<1x1x1x4xf32>
    %92 = arith.addf %88, %91 : vector<1x1x1x4xf32>
    %93 = math.rsqrt %92 : vector<1x1x1x4xf32>
    %94 = arith.mulf %90, %93 : vector<1x1x1x4xf32>
    %c0_86 = arith.constant 0 : index
    %c0_87 = arith.constant 0 : index
    %95 = vector.load %arg6[%c0_86, %c0_87] : memref<1x4xf32, #tpu.memory_space<vmem>>, vector<1x4xf32>
    %96 = vector.shape_cast %95 : vector<1x4xf32> to vector<1x1x1x4xf32>
    %97 = arith.mulf %84, %94 : vector<1x1x1x4xf32>
    %98 = arith.subf %96, %97 : vector<1x1x1x4xf32>
    %99 = vector.broadcast %94 : vector<1x1x1x4xf32> to vector<2x16x16x4xf32>
    %100 = arith.mulf %77, %99 : vector<2x16x16x4xf32>
    %101 = vector.broadcast %98 : vector<1x1x1x4xf32> to vector<2x16x16x4xf32>
    %102 = arith.addf %100, %101 : vector<2x16x16x4xf32>
    %c0_88 = arith.constant 0 : index
    %c0_89 = arith.constant 0 : index
    %c0_90 = arith.constant 0 : index
    %c0_91 = arith.constant 0 : index
    %103 = vector.load %arg0[%c0_88, %c0_89, %c0_90, %c0_91] : memref<2x16x16x4xf32, #tpu.memory_space<vmem>>, vector<2x16x16x4xf32>
    %104 = arith.addf %102, %103 : vector<2x16x16x4xf32>
    %c0_92 = arith.constant 0 : index
    %c0_93 = arith.constant 0 : index
    %c0_94 = arith.constant 0 : index
    %c0_95 = arith.constant 0 : index
    %105 = vector.load %arg7[%c0_92, %c0_93, %c0_94, %c0_95] : memref<2x16x16x4xf32, #tpu.memory_space<vmem>>, vector<2x16x16x4xf32>
    tpu.vector_store %arg7[%c0_92, %c0_93, %c0_94, %c0_95], %104 {strides = array<i32>} : memref<2x16x16x4xf32, #tpu.memory_space<vmem>>, vector<2x16x16x4xf32>,
    return
  }
}

</mosaic_0001>

<bundles_post_ra>
// kernel: residual_block.1
= control target key start
LH: loop header
LB: loop body
LE: loop exit
PB: predicated region body
PF: predicated region fallthrough
CT: control target
= control target key end

     0   :  { %vm27_vm0 = vcmask 31744   ;;  %vm42_vm1 = vcmask 24576   ;;  %v6118_v0 = vmov 0.0   ;;  %vm30_vm2 = vcmask 25600   ;;  %s6119_s26 = smov 8   ;;  %s6120_s27 = smov 4   ;;  %s10006_s0 = inlined_call_operand.vmem [shape: f32[2,16,16,4], index: 0, kind: input, shape index: {}]   ;;  %s10007_s1 = inlined_call_operand.vmem [shape: bf16[3,12,4], index: 1, kind: input, shape index: {}]   ;;  %s10008_s2 = inlined_call_operand.vmem [shape: f32[1,4], index: 2, kind: input, shape index: {}]   ;;  %s10009_s3 = inlined_call_operand.vmem [shape: f32[1,4], index: 3, kind: input, shape index: {}]   ;;  %s10010_s4 = inlined_call_operand.vmem [shape: bf16[3,12,4], index: 4, kind: input, shape index: {}]   ;;  %s10011_s5 = inlined_call_operand.vmem [shape: f32[1,4], index: 5, kind: input, shape index: {}]   ;;  %s10012_s6 = inlined_call_operand.vmem [shape: f32[1,4], index: 6, kind: input, shape index: {}]   ;;  %s10013_s7 = inlined_call_operand.vmem [shape: f32[2,16,16,4], index: 7, kind: output, shape index: {}]  }
   0x1   :  { %80 = vst.msk [vmem:[#allocation2 + $0x38] sm:$0x1] %vm42_vm1, %v6118_v0  ;;  %v6166_v1 = vld [vmem:[%s10006_s0] sm:$0xff]  ;;  %v6171_v2 = vld [vmem:[%s10006_s0 + $0x8] sm:$0xff]  ;;  %44 = vst.msk [vmem:[#allocation2 + $0x27] sm:$0x1] %vm42_vm1, %v6118_v0 }
   0x2   :  { %28 = vst.msk [vmem:[#allocation2 + $0x7] sm:$0xff] %vm27_vm0, %v6118_v0  ;;  %29 = vst.msk [vmem:[#allocation2 + $0xf] sm:$0xff] %vm27_vm0, %v6118_v0  ;;  %v117_v3 = vld [vmem:[%s10006_s0 + $0x10] sm:$0xff]  ;;  %v118_v4 = vld [vmem:[%s10006_s0 + $0x18] sm:$0xff]  ;;  %vm1040_vm3 = vcmask 1045504   ;;  %vm892_vm4 = vcmask 64512  }
   0x3   :  { %32 = vst.msk [vmem:[#allocation2 + $0x247] sm:$0xff] %vm27_vm0, %v6118_v0  ;;  %33 = vst.msk [vmem:[#allocation2 + $0x24f] sm:$0xff] %vm27_vm0, %v6118_v0  ;;  %v121_v5 = vld [vmem:[%s10006_s0 + $0x30] sm:$0xff]  ;;  %v122_v6 = vld [vmem:[%s10006_s0 + $0x38] sm:$0xff]  ;;  %vm975_vm5 = vcmask 97280  }
   0x4   :  { %36 = vst.msk [vmem:[#allocation2 + $0x227] sm:$0xff] %vm27_vm0, %v6118_v0  ;;  %37 = vst.msk [vmem:[#allocation2 + $0x22f] sm:$0xff] %vm27_vm0, %v6118_v0  ;;  %v119_v7 = vld [vmem:[%s10006_s0 + $0x20] sm:$0xff]  ;;  %v120_v8 = vld [vmem:[%s10006_s0 + $0x28] sm:$0xff] }
   0x5   :  { %39 = vst.msk [vmem:[#allocation2 + $0x467] sm:$0xff] %vm27_vm0, %v6118_v0  ;;  %40 = vst.msk [vmem:[#allocation2 + $0x46f] sm:$0xff] %vm27_vm0, %v6118_v0  ;;  %v125_v9 = vld [vmem:[%s10006_s0 + $0x50] sm:$0xff]  ;;  %v126_v10 = vld [vmem:[%s10006_s0 + $0x58] sm:$0xff] }
   0x6   :  { %45 = vst.msk [vmem:[#allocation2 + $0x47] sm:$0x1] %vm42_vm1, %v6118_v0  ;;  %46 = vst.msk [vmem:[#allocation2 + $0x67] sm:$0x1] %vm42_vm1, %v6118_v0  ;;  %v123_v11 = vld [vmem:[%s10006_s0 + $0x40] sm:$0xff]  ;;  %v124_v12 = vld [vmem:[%s10006_s0 + $0x48] sm:$0xff] }
   0x7   :  { %47 = vst.msk [vmem:[#allocation2 + $0x87] sm:$0x1] %vm42_vm1, %v6118_v0  ;;  %48 = vst.msk [vmem:[#allocation2 + $0xa7] sm:$0x1] %vm42_vm1, %v6118_v0  ;;  %v129_v13 = vld [vmem:[%s10006_s0 + $0x70] sm:$0xff]  ;;  %v130_v14 = vld [vmem:[%s10006_s0 + $0x78] sm:$0xff] }
   0x8   :  { %49 = vst.msk [vmem:[#allocation2 + $0xc7] sm:$0x1] %vm42_vm1, %v6118_v0  ;;  %50 = vst.msk [vmem:[#allocation2 + $0xe7] sm:$0x1] %vm42_vm1, %v6118_v0  ;;  %v127_v15 = vld [vmem:[%s10006_s0 + $0x60] sm:$0xff]  ;;  %v128_v16 = vld [vmem:[%s10006_s0 + $0x68] sm:$0xff] }
   0x9   :  { %51 = vst.msk [vmem:[#allocation2 + $0x107] sm:$0x1] %vm42_vm1, %v6118_v0  ;;  %52 = vst.msk [vmem:[#allocation2 + $0x127] sm:$0x1] %vm42_vm1, %v6118_v0  ;;  %v133_v17 = vld [vmem:[%s10006_s0 + $0x90] sm:$0xff]  ;;  %v134_v18 = vld [vmem:[%s10006_s0 + $0x98] sm:$0xff] }
   0xa   :  { %53 = vst.msk [vmem:[#allocation2 + $0x147] sm:$0x1] %vm42_vm1, %v6118_v0  ;;  %54 = vst.msk [vmem:[#allocation2 + $0x167] sm:$0x1] %vm42_vm1, %v6118_v0  ;;  %v131_v19 = vld [vmem:[%s10006_s0 + $0x80] sm:$0xff]  ;;  %v132_v20 = vld [vmem:[%s10006_s0 + $0x88] sm:$0xff] }
   0xb   :  { %55 = vst.msk [vmem:[#allocation2 + $0x187] sm:$0x1] %vm42_vm1, %v6118_v0  ;;  %56 = vst.msk [vmem:[#allocation2 + $0x1a7] sm:$0x1] %vm42_vm1, %v6118_v0  ;;  %v137_v21 = vld [vmem:[%s10006_s0 + $0xb0] sm:$0xff]  ;;  %v138_v22 = vld [vmem:[%s10006_s0 + $0xb8] sm:$0xff] }
   0xc   :  { %57 = vst.msk [vmem:[#allocation2 + $0x1c7] sm:$0x1] %vm42_vm1, %v6118_v0  ;;  %58 = vst.msk [vmem:[#allocation2 + $0x1e7] sm:$0x1] %vm42_vm1, %v6118_v0  ;;  %v135_v23 = vld [vmem:[%s10006_s0 + $0xa0] sm:$0xff]  ;;  %v136_v24 = vld [vmem:[%s10006_s0 + $0xa8] sm:$0xff] }
   0xd   :  { %59 = vst.msk [vmem:[#allocation2 + $0x207] sm:$0x1] %vm42_vm1, %v6118_v0  ;;  %62 = vst.msk [vmem:[#allocation2 + $0x267] sm:$0x1] %vm42_vm1, %v6118_v0  ;;  %v141_v59 = vld [vmem:[%s10006_s0 + $0xd0] sm:$0xff]  ;;  %v142_v60 = vld [vmem:[%s10006_s0 + $0xd8] sm:$0xff] }
   0xe   :  { %63 = vst.msk [vmem:[#allocation2 + $0x287] sm:$0x1] %vm42_vm1, %v6118_v0  ;;  %64 = vst.msk [vmem:[#allocation2 + $0x2a7] sm:$0x1] %vm42_vm1, %v6118_v0  ;;  %v139_v61 = vld [vmem:[%s10006_s0 + $0xc0] sm:$0xff]  ;;  %v140_v62 = vld [vmem:[%s10006_s0 + $0xc8] sm:$0xff] }
   0xf   :  { %65 = vst.msk [vmem:[#allocation2 + $0x2c7] sm:$0x1] %vm42_vm1, %v6118_v0  ;;  %66 = vst.msk [vmem:[#allocation2 + $0x2e7] sm:$0x1] %vm42_vm1, %v6118_v0  ;;  %v145_v63 = vld [vmem:[%s10006_s0 + $0xf0] sm:$0xff] }
  0x10   :  { %67 = vst.msk [vmem:[#allocation2 + $0x307] sm:$0x1] %vm42_vm1, %v6118_v0  ;;  %68 = vst.msk [vmem:[#allocation2 + $0x327] sm:$0x1] %vm42_vm1, %v6118_v0 }
  0x11   :  { %69 = vst.msk [vmem:[#allocation2 + $0x347] sm:$0x1] %vm42_vm1, %v6118_v0  ;;  %70 = vst.msk [vmem:[#allocation2 + $0x367] sm:$0x1] %vm42_vm1, %v6118_v0 }
  0x12   :  { %71 = vst.msk [vmem:[#allocation2 + $0x387] sm:$0x1] %vm42_vm1, %v6118_v0  ;;  %72 = vst.msk [vmem:[#allocation2 + $0x3a7] sm:$0x1] %vm42_vm1, %v6118_v0 }
  0x13   :  { %73 = vst.msk [vmem:[#allocation2 + $0x3c7] sm:$0x1] %vm42_vm1, %v6118_v0  ;;  %74 = vst.msk [vmem:[#allocation2 + $0x3e7] sm:$0x1] %vm42_vm1, %v6118_v0 }
  0x14   :  { %75 = vst.msk [vmem:[#allocation2 + $0x407] sm:$0x1] %vm42_vm1, %v6118_v0  ;;  %76 = vst.msk [vmem:[#allocation2 + $0x427] sm:$0x1] %vm42_vm1, %v6118_v0 }
  0x15   :  { %77 = vst.msk [vmem:[#allocation2 + $0x447] sm:$0x1] %vm42_vm1, %v6118_v0  ;;  %81 = vst.msk [vmem:[#allocation2 + $0x58] sm:$0x1] %vm42_vm1, %v6118_v0 }
  0x16   :  { %82 = vst.msk [vmem:[#allocation2 + $0x78] sm:$0x1] %vm42_vm1, %v6118_v0  ;;  %83 = vst.msk [vmem:[#allocation2 + $0x98] sm:$0x1] %vm42_vm1, %v6118_v0 }
  0x17   :  { %84 = vst.msk [vmem:[#allocation2 + $0xb8] sm:$0x1] %vm42_vm1, %v6118_v0  ;;  %85 = vst.msk [vmem:[#allocation2 + $0xd8] sm:$0x1] %vm42_vm1, %v6118_v0 }
  0x18   :  { %86 = vst.msk [vmem:[#allocation2 + $0xf8] sm:$0x1] %vm42_vm1, %v6118_v0  ;;  %87 = vst.msk [vmem:[#allocation2 + $0x118] sm:$0x1] %vm42_vm1, %v6118_v0 }
  0x19   :  { %88 = vst.msk [vmem:[#allocation2 + $0x138] sm:$0x1] %vm42_vm1, %v6118_v0  ;;  %89 = vst.msk [vmem:[#allocation2 + $0x158] sm:$0x1] %vm42_vm1, %v6118_v0 }
  0x1a   :  { %90 = vst.msk [vmem:[#allocation2 + $0x178] sm:$0x1] %vm42_vm1, %v6118_v0  ;;  %91 = vst.msk [vmem:[#allocation2 + $0x198] sm:$0x1] %vm42_vm1, %v6118_v0 }
  0x1b   :  { %92 = vst.msk [vmem:[#allocation2 + $0x1b8] sm:$0x1] %vm42_vm1, %v6118_v0  ;;  %93 = vst.msk [vmem:[#allocation2 + $0x1d8] sm:$0x1] %vm42_vm1, %v6118_v0 }
  0x1c   :  { %94 = vst.msk [vmem:[#allocation2 + $0x1f8] sm:$0x1] %vm42_vm1, %v6118_v0  ;;  %95 = vst.msk [vmem:[#allocation2 + $0x218] sm:$0x1] %vm42_vm1, %v6118_v0 }
  0x1d   :  { %98 = vst.msk [vmem:[#allocation2 + $0x278] sm:$0x1] %vm42_vm1, %v6118_v0  ;;  %99 = vst.msk [vmem:[#allocation2 + $0x298] sm:$0x1] %vm42_vm1, %v6118_v0 }
  0x1e   :  { %100 = vst.msk [vmem:[#allocation2 + $0x2b8] sm:$0x1] %vm42_vm1, %v6118_v0  ;;  %101 = vst.msk [vmem:[#allocation2 + $0x2d8] sm:$0x1] %vm42_vm1, %v6118_v0 }
  0x1f   :  { %102 = vst.msk [vmem:[#allocation2 + $0x2f8] sm:$0x1] %vm42_vm1, %v6118_v0  ;;  %103 = vst.msk [vmem:[#allocation2 + $0x318] sm:$0x1] %vm42_vm1, %v6118_v0 }
  0x20   :  { %104 = vst.msk [vmem:[#allocation2 + $0x338] sm:$0x1] %vm42_vm1, %v6118_v0  ;;  %105 = vst.msk [vmem:[#allocation2 + $0x358] sm:$0x1] %vm42_vm1, %v6118_v0 }
  0x21   :  { %106 = vst.msk [vmem:[#allocation2 + $0x378] sm:$0x1] %vm42_vm1, %v6118_v0  ;;  %107 = vst.msk [vmem:[#allocation2 + $0x398] sm:$0x1] %vm42_vm1, %v6118_v0 }
  0x22   :  { %108 = vst.msk [vmem:[#allocation2 + $0x3b8] sm:$0x1] %vm42_vm1, %v6118_v0  ;;  %109 = vst.msk [vmem:[#allocation2 + $0x3d8] sm:$0x1] %vm42_vm1, %v6118_v0 }
  0x23   :  { %110 = vst.msk [vmem:[#allocation2 + $0x3f8] sm:$0x1] %vm42_vm1, %v6118_v0  ;;  %111 = vst.msk [vmem:[#allocation2 + $0x418] sm:$0x1] %vm42_vm1, %v6118_v0 }
  0x24   :  { %112 = vst.msk [vmem:[#allocation2 + $0x438] sm:$0x1] %vm42_vm1, %v6118_v0  ;;  %113 = vst.msk [vmem:[#allocation2 + $0x458] sm:$0x1] %vm42_vm1, %v6118_v0 }
  0x25   :  { %180 = vst.msk [vmem:[#allocation2 + $0x28] sm:$0xff] %vm27_vm0, %v6166_v1  ;;  %181 = vst.msk [vmem:[#allocation2 + $0x30] sm:$0xff] %vm27_vm0, %v6171_v2 }
  0x26   :  { %43 = vst.msk [vmem:[#allocation2 + $0x7] sm:$0x1] %vm42_vm1, %v6118_v0  ;;  %60 = vst.msk [vmem:[#allocation2 + $0x227] sm:$0x1] %vm42_vm1, %v6118_v0 }
  0x27   :  { %61 = vst.msk [vmem:[#allocation2 + $0x247] sm:$0x1] %vm42_vm1, %v6118_v0  ;;  %78 = vst.msk [vmem:[#allocation2 + $0x467] sm:$0x1] %vm42_vm1, %v6118_v0 }
  0x28   :  { %182 = vst.msk [vmem:[#allocation2 + $0x48] sm:$0xff] %vm27_vm0, %v117_v3  ;;  %183 = vst.msk [vmem:[#allocation2 + $0x50] sm:$0xff] %vm27_vm0, %v118_v4  ;;  %v143_v3 = vld [vmem:[%s10006_s0 + $0xe0] sm:$0xff]  ;;  %v144_v4 = vld [vmem:[%s10006_s0 + $0xe8] sm:$0xff] }
  0x29   :  { %186 = vst.msk [vmem:[#allocation2 + $0x88] sm:$0xff] %vm27_vm0, %v121_v5  ;;  %187 = vst.msk [vmem:[#allocation2 + $0x90] sm:$0xff] %vm27_vm0, %v122_v6  ;;  %v149_v5 = vld [vmem:[%s10006_s0 + $0x110] sm:$0xff] }
  0x2a   :  { %184 = vst.msk [vmem:[#allocation2 + $0x68] sm:$0xff] %vm27_vm0, %v119_v7  ;;  %185 = vst.msk [vmem:[#allocation2 + $0x70] sm:$0xff] %vm27_vm0, %v120_v8 }
  0x2b   :  { %190 = vst.msk [vmem:[#allocation2 + $0xc8] sm:$0xff] %vm27_vm0, %v125_v9  ;;  %191 = vst.msk [vmem:[#allocation2 + $0xd0] sm:$0xff] %vm27_vm0, %v126_v10  ;;  %v150_v9 = vld [vmem:[%s10006_s0 + $0x118] sm:$0xff]  ;;  %v147_v10 = vld [vmem:[%s10006_s0 + $0x100] sm:$0xff] }
  0x2c   :  { %188 = vst.msk [vmem:[#allocation2 + $0xa8] sm:$0xff] %vm27_vm0, %v123_v11  ;;  %189 = vst.msk [vmem:[#allocation2 + $0xb0] sm:$0xff] %vm27_vm0, %v124_v12  ;;  %v462_v25 = vld [vmem:[#allocation2 + $0x29] sm:$0xff]  ;;  %v463_v26 = vld [vmem:[#allocation2 + $0x31] sm:$0xff] }
  0x2d   :  { %194 = vst.msk [vmem:[#allocation2 + $0x108] sm:$0xff] %vm27_vm0, %v129_v13  ;;  %195 = vst.msk [vmem:[#allocation2 + $0x110] sm:$0xff] %vm27_vm0, %v130_v14  ;;  %v354_v27 = vld [vmem:[#allocation2 + $0x28] sm:$0xff]  ;;  %v533_v28 = vpack.c.bf16 %v463_v26, %v462_v25  ;;  %v355_v29 = vld [vmem:[#allocation2 + $0x30] sm:$0xff] }
  0x2e   :  { %192 = vst.msk [vmem:[#allocation2 + $0xe8] sm:$0xff] %vm27_vm0, %v127_v15  ;;  %193 = vst.msk [vmem:[#allocation2 + $0xf0] sm:$0xff] %vm27_vm0, %v128_v16  ;;  %v425_v32 = vpack.c.bf16 %v355_v29, %v354_v27  ;;  %v148_v11 = vld [vmem:[%s10006_s0 + $0x108] sm:$0xff]  ;;  %v153_v13 = vld [vmem:[%s10006_s0 + $0x130] sm:$0xff] }
  0x2f   :  { %31 = vst.msk [vmem:[#allocation2 + $0x17] sm:$0x3] %vm30_vm2, %v6118_v0  ;;  %34 = vst.msk [vmem:[#allocation2 + $0x257] sm:$0x3] %vm30_vm2, %v6118_v0  ;;  %v464_v30 = vld [vmem:[#allocation2 + $0x49] sm:$0xff]  ;;  %v465_v31 = vld [vmem:[#allocation2 + $0x51] sm:$0xff]  ;;  %714 = vrot.lane.b32.xlu1 %v533_v28, %s6119_s26 }
  0x30   :  { %38 = vst.msk [vmem:[#allocation2 + $0x237] sm:$0x3] %vm30_vm2, %v6118_v0  ;;  %41 = vst.msk [vmem:[#allocation2 + $0x477] sm:$0x3] %vm30_vm2, %v6118_v0  ;;  %v356_v33 = vld [vmem:[#allocation2 + $0x48] sm:$0xff]  ;;  %v357_v34 = vld [vmem:[#allocation2 + $0x50] sm:$0xff]  ;;  %v534_v35 = vpack.c.bf16 %v465_v31, %v464_v30  ;;  %606 = vrot.lane.b32.xlu0 %v425_v32, %s6120_s27 }
  0x31   :  { %198 = vst.msk [vmem:[#allocation2 + $0x148] sm:$0xff] %vm27_vm0, %v133_v17  ;;  %199 = vst.msk [vmem:[#allocation2 + $0x150] sm:$0xff] %vm27_vm0, %v134_v18  ;;  %v426_v36 = vpack.c.bf16 %v357_v34, %v356_v33  ;;  %v360_v37 = vld [vmem:[#allocation2 + $0x88] sm:$0xff]  ;;  %v361_v38 = vld [vmem:[#allocation2 + $0x90] sm:$0xff] }
  0x32   :  { %79 = vst.msk [vmem:[#allocation2 + $0x18] sm:$0x1] %vm42_vm1, %v6118_v0  ;;  %96 = vst.msk [vmem:[#allocation2 + $0x238] sm:$0x1] %vm42_vm1, %v6118_v0  ;;  %v358_v39 = vld [vmem:[#allocation2 + $0x68] sm:$0xff]  ;;  %v359_v40 = vld [vmem:[#allocation2 + $0x70] sm:$0xff]  ;;  %v428_v41 = vpack.c.bf16 %v361_v38, %v360_v37 }
  0x33   :  { %97 = vst.msk [vmem:[#allocation2 + $0x258] sm:$0x1] %vm42_vm1, %v6118_v0  ;;  %114 = vst.msk [vmem:[#allocation2 + $0x478] sm:$0x1] %vm42_vm1, %v6118_v0  ;;  %716 = vrot.lane.b32.xlu1 %v534_v35, %s6119_s26  ;;  %v427_v42 = vpack.c.bf16 %v359_v40, %v358_v39  ;;  %v468_v43 = vld [vmem:[#allocation2 + $0x89] sm:$0xff]  ;;  %v469_v44 = vld [vmem:[#allocation2 + $0x91] sm:$0xff] }
  0x34   :  { %196 = vst.msk [vmem:[#allocation2 + $0x128] sm:$0xff] %vm27_vm0, %v131_v19  ;;  %197 = vst.msk [vmem:[#allocation2 + $0x130] sm:$0xff] %vm27_vm0, %v132_v20  ;;  %608 = vrot.lane.b32.xlu0 %v426_v36, %s6120_s27  ;;  %v466_v45 = vld [vmem:[#allocation2 + $0x69] sm:$0xff]  ;;  %v467_v46 = vld [vmem:[#allocation2 + $0x71] sm:$0xff]  ;;  %v536_v47 = vpack.c.bf16 %v469_v44, %v468_v43 }
  0x35   :  { %202 = vst.msk [vmem:[#allocation2 + $0x188] sm:$0xff] %vm27_vm0, %v137_v21  ;;  %203 = vst.msk [vmem:[#allocation2 + $0x190] sm:$0xff] %vm27_vm0, %v138_v22  ;;  %v535_v48 = vpack.c.bf16 %v467_v46, %v466_v45  ;;  %v364_v49 = vld [vmem:[#allocation2 + $0xc8] sm:$0xff]  ;;  %v365_v50 = vld [vmem:[#allocation2 + $0xd0] sm:$0xff] }
  0x36   :  { %200 = vst.msk [vmem:[#allocation2 + $0x168] sm:$0xff] %vm27_vm0, %v135_v23  ;;  %201 = vst.msk [vmem:[#allocation2 + $0x170] sm:$0xff] %vm27_vm0, %v136_v24  ;;  %v362_v51 = vld [vmem:[#allocation2 + $0xa8] sm:$0xff]  ;;  %v363_v52 = vld [vmem:[#allocation2 + $0xb0] sm:$0xff]  ;;  %v430_v54 = vpack.c.bf16 %v365_v50, %v364_v49 }
  0x37   :  { %612 = vrot.lane.b32.xlu1 %v428_v41, %s6120_s27  ;;  %v472_v53 = vld [vmem:[#allocation2 + $0xc9] sm:$0xff]  ;;  %v473_v55 = vld [vmem:[#allocation2 + $0xd1] sm:$0xff]  ;;  %v429_v58 = vpack.c.bf16 %v363_v52, %v362_v51  ;;  %206 = vst.msk [vmem:[#allocation2 + $0x1c8] sm:$0xff] %vm27_vm0, %v141_v59  ;;  %207 = vst.msk [vmem:[#allocation2 + $0x1d0] sm:$0xff] %vm27_vm0, %v142_v60 }
  0x38   :  { %610 = vrot.lane.b32.xlu0 %v427_v42, %s6120_s27  ;;  %v470_v56 = vld [vmem:[#allocation2 + $0xa9] sm:$0xff]  ;;  %v471_v57 = vld [vmem:[#allocation2 + $0xb1] sm:$0xff]  ;;  %204 = vst.msk [vmem:[#allocation2 + $0x1a8] sm:$0xff] %vm27_vm0, %v139_v61  ;;  %205 = vst.msk [vmem:[#allocation2 + $0x1b0] sm:$0xff] %vm27_vm0, %v140_v62  ;;  %v538_v6 = vpack.c.bf16 %v473_v55, %v472_v53 }
  0x39   :  { %v146_v0 = vld [vmem:[%s10006_s0 + $0xf8] sm:$0xff]  ;;  %v368_v1 = vld [vmem:[#allocation2 + $0x108] sm:$0xff]  ;;  %v369_v2 = vld [vmem:[#allocation2 + $0x110] sm:$0xff]  ;;  %210 = vst.msk [vmem:[#allocation2 + $0x208] sm:$0xff] %vm27_vm0, %v145_v63  ;;  %v537_v12 = vpack.c.bf16 %v471_v57, %v470_v56 }
  0x3a   :  { %211 = vst.msk [vmem:[#allocation2 + $0x210] sm:$0xff] %vm27_vm0, %v146_v0  ;;  %v366_v7 = vld [vmem:[#allocation2 + $0xe8] sm:$0xff]  ;;  %v367_v8 = vld [vmem:[#allocation2 + $0xf0] sm:$0xff]  ;;  %208 = vst.msk [vmem:[#allocation2 + $0x1e8] sm:$0xff] %vm27_vm0, %v143_v3  ;;  %v432_v22 = vpack.c.bf16 %v369_v2, %v368_v1 }
  0x3b   :  { %720 = vrot.lane.b32.xlu1 %v536_v47, %s6119_s26  ;;  %209 = vst.msk [vmem:[#allocation2 + $0x1f0] sm:$0xff] %vm27_vm0, %v144_v4  ;;  %214 = vst.msk [vmem:[#allocation2 + $0x288] sm:$0xff] %vm27_vm0, %v149_v5  ;;  %v154_v14 = vld [vmem:[%s10006_s0 + $0x138] sm:$0xff]  ;;  %v151_v15 = vld [vmem:[%s10006_s0 + $0x120] sm:$0xff]  ;;  %v431_v26 = vpack.c.bf16 %v367_v8, %v366_v7 }
  0x3c   :  { %718 = vrot.lane.b32.xlu0 %v535_v48, %s6119_s26  ;;  %215 = vst.msk [vmem:[#allocation2 + $0x290] sm:$0xff] %vm27_vm0, %v150_v9  ;;  %212 = vst.msk [vmem:[#allocation2 + $0x268] sm:$0xff] %vm27_vm0, %v147_v10  ;;  %v152_v16 = vld [vmem:[%s10006_s0 + $0x128] sm:$0xff]  ;;  %v157_v17 = vld [vmem:[%s10006_s0 + $0x150] sm:$0xff] }
  0x3d   :  { %213 = vst.msk [vmem:[#allocation2 + $0x270] sm:$0xff] %vm27_vm0, %v148_v11  ;;  %218 = vst.msk [vmem:[#allocation2 + $0x2c8] sm:$0xff] %vm27_vm0, %v153_v13  ;;  %v158_v18 = vld [vmem:[%s10006_s0 + $0x158] sm:$0xff]  ;;  %v155_v19 = vld [vmem:[%s10006_s0 + $0x140] sm:$0xff] }
  0x3e   :  { %219 = vst.msk [vmem:[#allocation2 + $0x2d0] sm:$0xff] %vm27_vm0, %v154_v14  ;;  %216 = vst.msk [vmem:[#allocation2 + $0x2a8] sm:$0xff] %vm27_vm0, %v151_v15  ;;  %v156_v20 = vld [vmem:[%s10006_s0 + $0x148] sm:$0xff]  ;;  %v161_v21 = vld [vmem:[%s10006_s0 + $0x170] sm:$0xff] }
  0x3f   :  { %616 = vrot.lane.b32.xlu1 %v430_v54, %s6120_s27  ;;  %217 = vst.msk [vmem:[#allocation2 + $0x2b0] sm:$0xff] %vm27_vm0, %v152_v16  ;;  %222 = vst.msk [vmem:[#allocation2 + $0x308] sm:$0xff] %vm27_vm0, %v157_v17  ;;  %v162_v23 = vld [vmem:[%s10006_s0 + $0x178] sm:$0xff]  ;;  %v159_v24 = vld [vmem:[%s10006_s0 + $0x160] sm:$0xff] }
  0x40   :  { %614 = vrot.lane.b32.xlu0 %v429_v58, %s6120_s27  ;;  %223 = vst.msk [vmem:[#allocation2 + $0x310] sm:$0xff] %vm27_vm0, %v158_v18  ;;  %220 = vst.msk [vmem:[#allocation2 + $0x2e8] sm:$0xff] %vm27_vm0, %v155_v19  ;;  %v160_v25 = vld [vmem:[%s10006_s0 + $0x168] sm:$0xff]  ;;  %v477_v28 = vld [vmem:[#allocation2 + $0x111] sm:$0xff] }
  0x41   :  { %221 = vst.msk [vmem:[#allocation2 + $0x2f0] sm:$0xff] %vm27_vm0, %v156_v20  ;;  %226 = vst.msk [vmem:[#allocation2 + $0x348] sm:$0xff] %vm27_vm0, %v161_v21  ;;  %v476_v27 = vld [vmem:[#allocation2 + $0x109] sm:$0xff]  ;;  %v475_v30 = vld [vmem:[#allocation2 + $0xf1] sm:$0xff] }
  0x42   :  { %227 = vst.msk [vmem:[#allocation2 + $0x350] sm:$0xff] %vm27_vm0, %v162_v23  ;;  %224 = vst.msk [vmem:[#allocation2 + $0x328] sm:$0xff] %vm27_vm0, %v159_v24  ;;  %v474_v29 = vld [vmem:[#allocation2 + $0xe9] sm:$0xff]  ;;  %v540_v31 = vpack.c.bf16 %v477_v28, %v476_v27  ;;  %v481_v40 = vld [vmem:[#allocation2 + $0x151] sm:$0xff] }
  0x43   :  { %724 = vrot.lane.b32.xlu1 %v538_v6, %s6119_s26  ;;  %225 = vst.msk [vmem:[#allocation2 + $0x330] sm:$0xff] %vm27_vm0, %v160_v25  ;;  %v539_v32 = vpack.c.bf16 %v475_v30, %v474_v29  ;;  %v372_v33 = vld [vmem:[#allocation2 + $0x148] sm:$0xff]  ;;  %v373_v34 = vld [vmem:[#allocation2 + $0x150] sm:$0xff]  ;;  %v166_v56 = vld [vmem:[%s10006_s0 + $0x198] sm:$0xff] }
  0x44   :  { %722 = vrot.lane.b32.xlu0 %v537_v12, %s6119_s26  ;;  %v370_v35 = vld [vmem:[#allocation2 + $0x128] sm:$0xff]  ;;  %v371_v36 = vld [vmem:[#allocation2 + $0x130] sm:$0xff]  ;;  %v434_v37 = vpack.c.bf16 %v373_v34, %v372_v33  ;;  %v163_v57 = vld [vmem:[%s10006_s0 + $0x180] sm:$0xff]  ;;  %231 = vst.msk [vmem:[#allocation2 + $0x390] sm:$0xff] %vm27_vm0, %v166_v56 }
  0x45   :  { %v433_v38 = vpack.c.bf16 %v371_v36, %v370_v35  ;;  %v480_v39 = vld [vmem:[#allocation2 + $0x149] sm:$0xff]  ;;  %v479_v42 = vld [vmem:[#allocation2 + $0x131] sm:$0xff]  ;;  %228 = vst.msk [vmem:[#allocation2 + $0x368] sm:$0xff] %vm27_vm0, %v163_v57  ;;  %v167_v62 = vld [vmem:[%s10006_s0 + $0x1a0] sm:$0xff] }
  0x46   :  { %v478_v41 = vld [vmem:[#allocation2 + $0x129] sm:$0xff]  ;;  %v542_v43 = vpack.c.bf16 %v481_v40, %v480_v39  ;;  %v485_v51 = vld [vmem:[#allocation2 + $0x191] sm:$0xff]  ;;  %232 = vst.msk [vmem:[#allocation2 + $0x3a8] sm:$0xff] %vm27_vm0, %v167_v62  ;;  %v171_v3 = vld [vmem:[%s10006_s0 + $0x1c0] sm:$0xff] }
  0x47   :  { %620 = vrot.lane.b32.xlu1 %v432_v22, %s6120_s27  ;;  %v541_v44 = vpack.c.bf16 %v479_v42, %v478_v41  ;;  %v376_v45 = vld [vmem:[#allocation2 + $0x188] sm:$0xff]  ;;  %v377_v46 = vld [vmem:[#allocation2 + $0x190] sm:$0xff]  ;;  %v170_v60 = vld [vmem:[%s10006_s0 + $0x1b8] sm:$0xff]  ;;  %236 = vst.msk [vmem:[#allocation2 + $0x3e8] sm:$0xff] %vm27_vm0, %v171_v3 }
  0x48   :  { %618 = vrot.lane.b32.xlu0 %v431_v26, %s6120_s27  ;;  %v374_v47 = vld [vmem:[#allocation2 + $0x168] sm:$0xff]  ;;  %v375_v48 = vld [vmem:[#allocation2 + $0x170] sm:$0xff]  ;;  %v436_v50 = vpack.c.bf16 %v377_v46, %v376_v45  ;;  %235 = vst.msk [vmem:[#allocation2 + $0x3d0] sm:$0xff] %vm27_vm0, %v170_v60  ;;  %v174_v2 = vld [vmem:[%s10006_s0 + $0x1d8] sm:$0xff] }
  0x49   :  { %v484_v49 = vld [vmem:[#allocation2 + $0x189] sm:$0xff]  ;;  %v483_v53 = vld [vmem:[#allocation2 + $0x171] sm:$0xff]  ;;  %v435_v54 = vpack.c.bf16 %v375_v48, %v374_v47  ;;  %239 = vst.msk [vmem:[#allocation2 + $0x410] sm:$0xff] %vm27_vm0, %v174_v2  ;;  %v6602_v12 = vld [vmem:[%s10007_s1] sm:$0x3f]  }
  0x4a   :  { %v482_v52 = vld [vmem:[#allocation2 + $0x169] sm:$0xff]  ;;  %v544_v1 = vpack.c.bf16 %v485_v51, %v484_v49  ;;  %v178_v14 = vld [vmem:[%s10006_s0 + $0x1f8] sm:$0xff]  ;;  %v175_v30 = vld [vmem:[%s10006_s0 + $0x1e0] sm:$0xff] }
  0x4b   :  { %728 = vrot.lane.b32.xlu1 %v540_v31, %s6119_s26  ;;  %v165_v55 = vld [vmem:[%s10006_s0 + $0x190] sm:$0xff]  ;;  %v164_v58 = vld [vmem:[%s10006_s0 + $0x188] sm:$0xff]  ;;  %v543_v5 = vpack.c.bf16 %v483_v53, %v482_v52  ;;  %243 = vst.msk [vmem:[#allocation2 + $0x450] sm:$0xff] %vm27_vm0, %v178_v14  ;;  %240 = vst.msk [vmem:[#allocation2 + $0x428] sm:$0xff] %vm27_vm0, %v175_v30 }
  0x4c   :  { %726 = vrot.lane.b32.xlu0 %v539_v32, %s6119_s26  ;;  %230 = vst.msk [vmem:[#allocation2 + $0x388] sm:$0xff] %vm27_vm0, %v165_v55  ;;  %v169_v59 = vld [vmem:[%s10006_s0 + $0x1b0] sm:$0xff]  ;;  %v380_v61 = vld [vmem:[#allocation2 + $0x1c8] sm:$0xff]  ;;  %229 = vst.msk [vmem:[#allocation2 + $0x370] sm:$0xff] %vm27_vm0, %v164_v58 }
  0x4d   :  { %234 = vst.msk [vmem:[#allocation2 + $0x3c8] sm:$0xff] %vm27_vm0, %v169_v59  ;;  %v168_v63 = vld [vmem:[%s10006_s0 + $0x1a8] sm:$0xff]  ;;  %v173_v0 = vld [vmem:[%s10006_s0 + $0x1d0] sm:$0xff] }
  0x4e   :  { %233 = vst.msk [vmem:[#allocation2 + $0x3b0] sm:$0xff] %vm27_vm0, %v168_v63  ;;  %238 = vst.msk [vmem:[#allocation2 + $0x408] sm:$0xff] %vm27_vm0, %v173_v0  ;;  %v172_v4 = vld [vmem:[%s10006_s0 + $0x1c8] sm:$0xff]  ;;  %v381_v6 = vld [vmem:[#allocation2 + $0x1d0] sm:$0xff] }
  0x4f   :  { %624 = vrot.lane.b32.xlu1 %v434_v37, %s6120_s27  ;;  %v378_v7 = vld [vmem:[#allocation2 + $0x1a8] sm:$0xff]  ;;  %237 = vst.msk [vmem:[#allocation2 + $0x3f0] sm:$0xff] %vm27_vm0, %v172_v4  ;;  %v379_v8 = vld [vmem:[#allocation2 + $0x1b0] sm:$0xff]  ;;  %v438_v10 = vpack.c.bf16 %v381_v6, %v380_v61 }
  0x50   :  { %622 = vrot.lane.b32.xlu0 %v433_v38, %s6120_s27  ;;  %v6108_v9 = vld [vmem:[%s10007_s1 + $0x8] sm:$0x3f]   ;;  %v177_v13 = vld [vmem:[%s10006_s0 + $0x1f0] sm:$0xff]  ;;  %v437_v15 = vpack.c.bf16 %v379_v8, %v378_v7 }
  0x51   :  { %6099 = vmatprep.subr.msk.bf16.mxu0 %vm1040_vm3, %v6108_v9  ;;  %v1042_v11 = vsel %vm1040_vm3, %v6108_v9, 0  ;;  %v488_v16 = vld [vmem:[#allocation2 + $0x1c9] sm:$0xff]  ;;  %v489_v17 = vld [vmem:[#allocation2 + $0x1d1] sm:$0xff]  ;;  %242 = vst.msk [vmem:[#allocation2 + $0x448] sm:$0xff] %vm27_vm0, %v177_v13 }
  0x52   :  { %5448 = vmatpush3.bf16.msra.mxu0 %v1042_v11  ;;  %v486_v18 = vld [vmem:[#allocation2 + $0x1a9] sm:$0xff]  ;;  %v487_v19 = vld [vmem:[#allocation2 + $0x1b1] sm:$0xff]  ;;  %v546_v20 = vpack.c.bf16 %v489_v17, %v488_v16 }
  0x53   :  { %732 = vrot.lane.b32.xlu1 %v542_v43, %s6119_s26  ;;  %6100 = vmatprep.subr.msk.bf16.mxu0 %vm1040_vm3, %v6602_v12  ;;  %v545_v21 = vpack.c.bf16 %v487_v19, %v486_v18  ;;  %v384_v22 = vld [vmem:[#allocation2 + $0x208] sm:$0xff]  ;;  %v385_v23 = vld [vmem:[#allocation2 + $0x210] sm:$0xff] }
  0x54   :  { %730 = vrot.lane.b32.xlu0 %v541_v44, %s6119_s26  ;;  %v382_v24 = vld [vmem:[#allocation2 + $0x1e8] sm:$0xff]  ;;  %v383_v25 = vld [vmem:[#allocation2 + $0x1f0] sm:$0xff]  ;;  %v440_v26 = vpack.c.bf16 %v385_v23, %v384_v22 }
  0x55   :  { %v439_v27 = vpack.c.bf16 %v383_v25, %v382_v24  ;;  %v492_v28 = vld [vmem:[#allocation2 + $0x209] sm:$0xff]  ;;  %v493_v29 = vld [vmem:[#allocation2 + $0x211] sm:$0xff] }
  0x56   :  { %v490_v31 = vld [vmem:[#allocation2 + $0x1e9] sm:$0xff]  ;;  %v491_v32 = vld [vmem:[#allocation2 + $0x1f1] sm:$0xff]  ;;  %v548_v34 = vpack.c.bf16 %v493_v29, %v492_v28 }
  0x57   :  { %628 = vrot.lane.b32.xlu1 %v436_v50, %s6120_s27  ;;  %v176_v33 = vld [vmem:[%s10006_s0 + $0x1e8] sm:$0xff]  ;;  %v547_v35 = vpack.c.bf16 %v491_v32, %v490_v31  ;;  %v393_v37 = vld [vmem:[#allocation2 + $0x290] sm:$0xff] }
  0x58   :  { %626 = vrot.lane.b32.xlu0 %v435_v54, %s6120_s27  ;;  %241 = vst.msk [vmem:[#allocation2 + $0x430] sm:$0xff] %vm27_vm0, %v176_v33  ;;  %v392_v36 = vld [vmem:[#allocation2 + $0x288] sm:$0xff]  ;;  %v391_v39 = vld [vmem:[#allocation2 + $0x270] sm:$0xff] }
  0x59   :  { %v390_v38 = vld [vmem:[#allocation2 + $0x268] sm:$0xff]  ;;  %v444_v40 = vpack.c.bf16 %v393_v37, %v392_v36  ;;  %v501_v43 = vld [vmem:[#allocation2 + $0x291] sm:$0xff] }
  0x5a   :  { %v443_v41 = vpack.c.bf16 %v391_v39, %v390_v38  ;;  %v500_v42 = vld [vmem:[#allocation2 + $0x289] sm:$0xff]  ;;  %v499_v45 = vld [vmem:[#allocation2 + $0x271] sm:$0xff] }
  0x5b   :  { %736 = vrot.lane.b32.xlu1 %v544_v1, %s6119_s26  ;;  %v498_v44 = vld [vmem:[#allocation2 + $0x269] sm:$0xff]  ;;  %v552_v46 = vpack.c.bf16 %v501_v43, %v500_v42  ;;  %v505_v55 = vld [vmem:[#allocation2 + $0x2d1] sm:$0xff] }
  0x5c   :  { %734 = vrot.lane.b32.xlu0 %v543_v5, %s6119_s26  ;;  %v551_v47 = vpack.c.bf16 %v499_v45, %v498_v44  ;;  %v396_v48 = vld [vmem:[#allocation2 + $0x2c8] sm:$0xff]  ;;  %v397_v49 = vld [vmem:[#allocation2 + $0x2d0] sm:$0xff] }
  0x5d   :  { %v394_v50 = vld [vmem:[#allocation2 + $0x2a8] sm:$0xff]  ;;  %v395_v51 = vld [vmem:[#allocation2 + $0x2b0] sm:$0xff]  ;;  %v446_v52 = vpack.c.bf16 %v397_v49, %v396_v48 }
  0x5e   :  { %v445_v53 = vpack.c.bf16 %v395_v51, %v394_v50  ;;  %v504_v54 = vld [vmem:[#allocation2 + $0x2c9] sm:$0xff]  ;;  %v503_v57 = vld [vmem:[#allocation2 + $0x2b1] sm:$0xff] }
  0x5f   :  { %632 = vrot.lane.b32.xlu1 %v438_v10, %s6120_s27  ;;  %v502_v56 = vld [vmem:[#allocation2 + $0x2a9] sm:$0xff]  ;;  %v554_v58 = vpack.c.bf16 %v505_v55, %v504_v54  ;;  %v509_v3 = vld [vmem:[#allocation2 + $0x311] sm:$0xff] }
  0x60   :  { %630 = vrot.lane.b32.xlu0 %v437_v15, %s6120_s27  ;;  %v553_v59 = vpack.c.bf16 %v503_v57, %v502_v56  ;;  %v400_v60 = vld [vmem:[#allocation2 + $0x308] sm:$0xff]  ;;  %v401_v61 = vld [vmem:[#allocation2 + $0x310] sm:$0xff] }
  0x61   :  { %v398_v62 = vld [vmem:[#allocation2 + $0x2e8] sm:$0xff]  ;;  %v399_v63 = vld [vmem:[#allocation2 + $0x2f0] sm:$0xff]  ;;  %v448_v0 = vpack.c.bf16 %v401_v61, %v400_v60 }
  0x62   :  { %v447_v1 = vpack.c.bf16 %v399_v63, %v398_v62  ;;  %v508_v2 = vld [vmem:[#allocation2 + $0x309] sm:$0xff]  ;;  %v507_v5 = vld [vmem:[#allocation2 + $0x2f1] sm:$0xff] }
  0x63   :  { %740 = vrot.lane.b32.xlu1 %v546_v20, %s6119_s26  ;;  %v506_v4 = vld [vmem:[#allocation2 + $0x2e9] sm:$0xff]  ;;  %v556_v6 = vpack.c.bf16 %v509_v3, %v508_v2  ;;  %v513_v16 = vld [vmem:[#allocation2 + $0x351] sm:$0xff] }
  0x64   :  { %738 = vrot.lane.b32.xlu0 %v545_v21, %s6119_s26  ;;  %v555_v7 = vpack.c.bf16 %v507_v5, %v506_v4  ;;  %v404_v8 = vld [vmem:[#allocation2 + $0x348] sm:$0xff]  ;;  %v405_v9 = vld [vmem:[#allocation2 + $0x350] sm:$0xff] }
  0x65   :  { %v402_v10 = vld [vmem:[#allocation2 + $0x328] sm:$0xff]  ;;  %v403_v11 = vld [vmem:[#allocation2 + $0x330] sm:$0xff]  ;;  %v450_v13 = vpack.c.bf16 %v405_v9, %v404_v8 }
  0x66   :  { %v449_v14 = vpack.c.bf16 %v403_v11, %v402_v10  ;;  %v512_v15 = vld [vmem:[#allocation2 + $0x349] sm:$0xff]  ;;  %v511_v18 = vld [vmem:[#allocation2 + $0x331] sm:$0xff] }
  0x67   :  { %636 = vrot.lane.b32.xlu1 %v440_v26, %s6120_s27  ;;  %v510_v17 = vld [vmem:[#allocation2 + $0x329] sm:$0xff]  ;;  %v558_v19 = vpack.c.bf16 %v513_v16, %v512_v15  ;;  %v517_v28 = vld [vmem:[#allocation2 + $0x391] sm:$0xff] }
  0x68   :  { %634 = vrot.lane.b32.xlu0 %v439_v27, %s6120_s27  ;;  %v557_v20 = vpack.c.bf16 %v511_v18, %v510_v17  ;;  %v408_v21 = vld [vmem:[#allocation2 + $0x388] sm:$0xff]  ;;  %v409_v22 = vld [vmem:[#allocation2 + $0x390] sm:$0xff] }
  0x69   :  { %v406_v23 = vld [vmem:[#allocation2 + $0x368] sm:$0xff]  ;;  %v407_v24 = vld [vmem:[#allocation2 + $0x370] sm:$0xff]  ;;  %v452_v25 = vpack.c.bf16 %v409_v22, %v408_v21 }
  0x6a   :  { %v451_v26 = vpack.c.bf16 %v407_v24, %v406_v23  ;;  %v516_v27 = vld [vmem:[#allocation2 + $0x389] sm:$0xff]  ;;  %v515_v30 = vld [vmem:[#allocation2 + $0x371] sm:$0xff] }
  0x6b   :  { %744 = vrot.lane.b32.xlu1 %v548_v34, %s6119_s26  ;;  %v514_v29 = vld [vmem:[#allocation2 + $0x369] sm:$0xff]  ;;  %v560_v31 = vpack.c.bf16 %v517_v28, %v516_v27  ;;  %v519_v42 = vld [vmem:[#allocation2 + $0x3b1] sm:$0xff] }
  0x6c   :  { %742 = vrot.lane.b32.xlu0 %v547_v35, %s6119_s26  ;;  %v559_v32 = vpack.c.bf16 %v515_v30, %v514_v29  ;;  %v412_v33 = vld [vmem:[#allocation2 + $0x3c8] sm:$0xff]  ;;  %v413_v34 = vld [vmem:[#allocation2 + $0x3d0] sm:$0xff] }
  0x6d   :  { %v410_v35 = vld [vmem:[#allocation2 + $0x3a8] sm:$0xff]  ;;  %v411_v36 = vld [vmem:[#allocation2 + $0x3b0] sm:$0xff]  ;;  %v454_v37 = vpack.c.bf16 %v413_v34, %v412_v33 }
  0x6e   :  { %v453_v38 = vpack.c.bf16 %v411_v36, %v410_v35  ;;  %v520_v39 = vld [vmem:[#allocation2 + $0x3c9] sm:$0xff]  ;;  %v525_v54 = vld [vmem:[#allocation2 + $0x411] sm:$0xff] }
  0x6f   :  { %644 = vrot.lane.b32.xlu1 %v444_v40, %s6120_s27  ;;  %v521_v40 = vld [vmem:[#allocation2 + $0x3d1] sm:$0xff]  ;;  %v416_v45 = vld [vmem:[#allocation2 + $0x408] sm:$0xff] }
  0x70   :  { %642 = vrot.lane.b32.xlu0 %v443_v41, %s6120_s27  ;;  %v518_v41 = vld [vmem:[#allocation2 + $0x3a9] sm:$0xff]  ;;  %v562_v43 = vpack.c.bf16 %v521_v40, %v520_v39  ;;  %v523_v56 = vld [vmem:[#allocation2 + $0x3f1] sm:$0xff] }
  0x71   :  { %v561_v44 = vpack.c.bf16 %v519_v42, %v518_v41  ;;  %v415_v48 = vld [vmem:[#allocation2 + $0x3f0] sm:$0xff]  ;;  %v246_v50 = vld [vmem:[#allocation2 + $0x27] sm:$0xff] }
  0x72   :  { %v522_v55 = vld [vmem:[#allocation2 + $0x3e9] sm:$0xff]  ;;  %v529_v10 = vld [vmem:[#allocation2 + $0x451] sm:$0xff] }
  0x73   :  { %752 = vrot.lane.b32.xlu1 %v552_v46, %s6119_s26  ;;  %v417_v46 = vld [vmem:[#allocation2 + $0x410] sm:$0xff]  ;;  %v563_v60 = vpack.c.bf16 %v523_v56, %v522_v55  ;;  %v420_v62 = vld [vmem:[#allocation2 + $0x448] sm:$0xff] }
  0x74   :  { %750 = vrot.lane.b32.xlu0 %v551_v47, %s6119_s26  ;;  %v414_v47 = vld [vmem:[#allocation2 + $0x3e8] sm:$0xff]  ;;  %v456_v49 = vpack.c.bf16 %v417_v46, %v416_v45  ;;  %v421_v63 = vld [vmem:[#allocation2 + $0x450] sm:$0xff] }
  0x75   :  { %v455_v51 = vpack.c.bf16 %v415_v48, %v414_v47  ;;  %v249_v61 = vld [vmem:[#allocation2 + $0x4f] sm:$0xff]  ;;  %v252_v16 = vld [vmem:[#allocation2 + $0x87] sm:$0xff] }
  0x76   :  { %v419_v2 = vld [vmem:[#allocation2 + $0x430] sm:$0xff]  ;;  %v352_v29 = vld [vmem:[#allocation2 + $0x8] sm:$0xff] }
  0x77   :  { %648 = vrot.lane.b32.xlu1 %v446_v52, %s6120_s27  ;;  %v247_v52 = vld [vmem:[#allocation2 + $0x2f] sm:$0xff]  ;;  %v254_v47 = vld [vmem:[#allocation2 + $0xa7] sm:$0xff] }
  0x78   :  { %646 = vrot.lane.b32.xlu0 %v445_v53, %s6120_s27  ;;  %v524_v53 = vld [vmem:[#allocation2 + $0x409] sm:$0xff]  ;;  %v317_v57 = vpack.c.bf16 %v247_v52, %v246_v50  ;;  %v461_v27 = vld [vmem:[#allocation2 + $0x11] sm:$0xff] }
  0x79   :  { %v528_v9 = vld [vmem:[#allocation2 + $0x449] sm:$0xff]  ;;  %v497_v36 = vld [vmem:[#allocation2 + $0x251] sm:$0xff] }
  0x7a   :  { %v253_v17 = vld [vmem:[#allocation2 + $0x8f] sm:$0xff]  ;;  %v566_v22 = vpack.c.bf16 %v529_v10, %v528_v9 }
  0x7b   :  { %756 = vrot.lane.b32.xlu1 %v554_v58, %s6119_s26  ;;  %v564_v58 = vpack.c.bf16 %v525_v54, %v524_v53  ;;  %v251_v21 = vld [vmem:[#allocation2 + $0x6f] sm:$0xff] }
  0x7c   :  { %754 = vrot.lane.b32.xlu0 %v553_v59, %s6119_s26  ;;  %v248_v59 = vld [vmem:[#allocation2 + $0x47] sm:$0xff]  ;;  %v6672_v23 = vld [vmem:[%s10007_s1 + $0x10] sm:$0x3f]  }
  0x7d   :  { %v318_v5 = vpack.c.bf16 %v249_v61, %v248_v59  ;;  %v353_v30 = vld [vmem:[#allocation2 + $0x10] sm:$0xff]  ;;  %v388_v39 = vld [vmem:[#allocation2 + $0x248] sm:$0xff] }
  0x7e   :  { %v424_v34 = vpack.c.bf16 %v353_v30, %v352_v29  ;;  %v496_v35 = vld [vmem:[#allocation2 + $0x249] sm:$0xff] }
  0x7f   :  { %652 = vrot.lane.b32.xlu1 %v448_v0, %s6120_s27  ;;  %v389_v40 = vld [vmem:[#allocation2 + $0x250] sm:$0xff]  ;;  %v266_v30 = vld [vmem:[#allocation2 + $0x167] sm:$0xff] }
  0x80   :  { %650 = vrot.lane.b32.xlu0 %v447_v1, %s6120_s27  ;;  %v418_v1 = vld [vmem:[#allocation2 + $0x428] sm:$0xff]  ;;  %v442_v50 = vpack.c.bf16 %v389_v40, %v388_v39 }
  0x81   :  { %v457_v8 = vpack.c.bf16 %v419_v2, %v418_v1  ;;  %v257_v45 = vld [vmem:[#allocation2 + $0xcf] sm:$0xff] }
  0x82   :  { %v255_v48 = vld [vmem:[#allocation2 + $0xaf] sm:$0xff] }
  0x83   :  { %760 = vrot.lane.b32.xlu1 %v556_v6, %s6119_s26  ;;  %v458_v6 = vpack.c.bf16 %v421_v63, %v420_v62  ;;  %v321_v53 = vpack.c.bf16 %v255_v48, %v254_v47  ;;  %v261_v61 = vld [vmem:[#allocation2 + $0x10f] sm:$0xff]  ;;  %v258_v63 = vld [vmem:[#allocation2 + $0xe7] sm:$0xff] }
  0x84   :  { %758 = vrot.lane.b32.xlu0 %v555_v7, %s6119_s26  ;;  %v271_v47 = vld [vmem:[#allocation2 + $0x1af] sm:$0xff] }
  0x87   :  { %656 = vrot.lane.b32.xlu1 %v450_v13, %s6120_s27  ;;  %v526_v13 = vld [vmem:[#allocation2 + $0x429] sm:$0xff] }
  0x88   :  { %654 = vrot.lane.b32.xlu0 %v449_v14, %s6120_s27  ;;  %v527_v14 = vld [vmem:[#allocation2 + $0x431] sm:$0xff] }
  0x8b   :  { %764 = vrot.lane.b32.xlu1 %v558_v19, %s6119_s26  ;;  %v1343_v19 = vsel %vm1040_vm3, %v6602_v12, 0  ;;  %v320_v12 = vpack.c.bf16 %v253_v17, %v252_v16  ;;  %v263_v16 = vld [vmem:[#allocation2 + $0x12f] sm:$0xff] }
  0x8c   :  { %762 = vrot.lane.b32.xlu0 %v557_v20, %s6119_s26  ;;  %v250_v20 = vld [vmem:[#allocation2 + $0x67] sm:$0xff] }
  0x8f   :  { %660 = vrot.lane.b32.xlu1 %v452_v25, %s6120_s27  ;;  %v565_v25 = vpack.c.bf16 %v527_v14, %v526_v13  ;;  %v265_v13 = vld [vmem:[#allocation2 + $0x14f] sm:$0xff] }
  0x90   :  { %658 = vrot.lane.b32.xlu0 %v451_v26, %s6120_s27  ;;  %v460_v26 = vld [vmem:[#allocation2 + $0x9] sm:$0xff] }
  0x91   :  { %v532_v33 = vpack.c.bf16 %v461_v27, %v460_v26 }
  0x93   :  { %768 = vrot.lane.b32.xlu1 %v560_v31, %s6119_s26  ;;  %v319_v31 = vpack.c.bf16 %v251_v21, %v250_v20 }
  0x94   :  { %766 = vrot.lane.b32.xlu0 %v559_v32, %s6119_s26 }
  0x97   :  { %664 = vrot.lane.b32.xlu1 %v454_v37, %s6120_s27 }
  0x98   :  { %662 = vrot.lane.b32.xlu0 %v453_v38, %s6120_s27 }
  0x9b   :  { %772 = vrot.lane.b32.xlu1 %v562_v43, %s6119_s26 }
  0x9c   :  { %770 = vrot.lane.b32.xlu0 %v561_v44, %s6119_s26  ;;  %v256_v44 = vld [vmem:[#allocation2 + $0xc7] sm:$0xff] }
  0x9f   :  { %668 = vrot.lane.b32.xlu1 %v456_v49, %s6120_s27  ;;  %v550_v49 = vpack.c.bf16 %v497_v36, %v496_v35 }
  0xa0   :  { %666 = vrot.lane.b32.xlu0 %v455_v51, %s6120_s27  ;;  %v322_v51 = vpack.c.bf16 %v257_v45, %v256_v44  ;;  %v270_v45 = vld [vmem:[#allocation2 + $0x1a7] sm:$0xff] }
  0xa1   :  { %v715_v0 = vpop.permute.xlu1 %714 }
  0xa2   :  { %v607_v3 = vpop.permute.xlu0 %606 }
  0xa3   :  { %v789_v4 = vsel %vm27_vm0, %v317_v57, %v607_v3  ;;  %776 = vrot.lane.b32.xlu1 %v564_v58, %s6119_s26 }
  0xa4   :  { %774 = vrot.lane.b32.xlu0 %v563_v60, %s6119_s26  ;;  %v6661_v7 = vsel %vm892_vm4, %v789_v4, %v715_v0  ;;  %v260_v60 = vld [vmem:[#allocation2 + $0x107] sm:$0xff]  ;;  %v259_v0 = vld [vmem:[#allocation2 + $0xef] sm:$0xff] }
  0xa5   :  { %5449 = vmatprep.mubr.msk.bf16.mxu0 %vm975_vm5, %v6661_v7  ;;  %v717_v11 = vpop.permute.xlu1 %716  ;;  %v324_v1 = vpack.c.bf16 %v261_v61, %v260_v60  ;;  %v323_v3 = vpack.c.bf16 %v259_v0, %v258_v63  ;;  %v274_v61 = vld [vmem:[#allocation2 + $0x1e7] sm:$0xff]  ;;  %v275_v63 = vld [vmem:[#allocation2 + $0x1ef] sm:$0xff] }
  0xa6   :  { %v609_v15 = vpop.permute.xlu0 %608 }
  0xa7   :  { %v792_v18 = vsel %vm27_vm0, %v318_v5, %v609_v15  ;;  %672 = vrot.lane.b32.xlu1 %v458_v6, %s6120_s27  ;;  %v262_v15 = vld [vmem:[#allocation2 + $0x127] sm:$0xff] }
  0xa8   :  { %670 = vrot.lane.b32.xlu0 %v457_v8, %s6120_s27  ;;  %v6676_v24 = vsel %vm892_vm4, %v792_v18, %v717_v11  ;;  %v264_v11 = vld [vmem:[#allocation2 + $0x147] sm:$0xff] }
  0xa9   :  { %5450 = vmatmul.mubr.msk.bf16.vlgmr.msra.gmra.mrb[0].mxu0 %vm975_vm5, %v6676_v24  ;;  %v613_v28 = vpop.permute.xlu1 %612  ;;  %v326_v17 = vpack.c.bf16 %v265_v13, %v264_v11  ;;  %v284_v11 = vld [vmem:[#allocation2 + $0x287] sm:$0xff]  ;;  %v285_v13 = vld [vmem:[#allocation2 + $0x28f] sm:$0xff] }
  0xaa   :  { %5514 = vmatpush3.bf16.msra.mxu0 %v1343_v19  ;;  %v611_v32 = vpop.permute.xlu0 %610  ;;  %v798_v37 = vsel %vm27_vm0, %v320_v12, %v613_v28  ;;  %v325_v19 = vpack.c.bf16 %v263_v16, %v262_v15  ;;  %v268_v12 = vld [vmem:[#allocation2 + $0x187] sm:$0xff]  ;;  %v269_v28 = vld [vmem:[#allocation2 + $0x18f] sm:$0xff] }
  0xab   :  { %780 = vrot.lane.b32.xlu1 %v566_v22, %s6119_s26  ;;  %6101 = vmatprep.subr.msk.bf16.mxu0 %vm1040_vm3, %v6672_v23  ;;  %v795_v41 = vsel %vm27_vm0, %v319_v31, %v611_v32  ;;  %v267_v31 = vld [vmem:[#allocation2 + $0x16f] sm:$0xff]  ;;  %v328_v32 = vpack.c.bf16 %v269_v28, %v268_v12  ;;  %v282_v16 = vld [vmem:[#allocation2 + $0x267] sm:$0xff] }
  0xac   :  { %778 = vrot.lane.b32.xlu0 %v565_v25, %s6119_s26 }
  0xad   :  { %v721_v38 = vpop.permute.xlu1 %720 }
  0xae   :  { %v6687_v42 = vsel %vm892_vm4, %v798_v37, %v721_v38  ;;  %v719_v43 = vpop.permute.xlu0 %718 }
  0xaf   :  { %v6690_v46 = vsel %vm892_vm4, %v795_v41, %v719_v43  ;;  %712 = vrot.lane.b32.xlu1 %v532_v33, %s6119_s26  ;;  %v272_v41 = vld [vmem:[#allocation2 + $0x1c7] sm:$0xff]  ;;  %v273_v43 = vld [vmem:[#allocation2 + $0x1cf] sm:$0xff] }
  0xb0   :  { %5453 = vmatprep.mubr.msk.bf16.mxu0 %vm975_vm5, %v6690_v46  ;;  %604 = vrot.lane.b32.xlu0 %v424_v34, %s6120_s27  ;;  %v327_v34 = vpack.c.bf16 %v267_v31, %v266_v30  ;;  %v330_v48 = vpack.c.bf16 %v273_v43, %v272_v41  ;;  %v288_v30 = vld [vmem:[#allocation2 + $0x2c7] sm:$0xff]  ;;  %v289_v31 = vld [vmem:[#allocation2 + $0x2cf] sm:$0xff] }
  0xb1   :  { %5454 = vmatmul.mubr.msk.bf16.gmra.mrb[4].mxu0 %vm975_vm5, %v6687_v42  ;;  %v617_v52 = vpop.permute.xlu1 %616 }
  0xb2   :  { %v615_v54 = vpop.permute.xlu0 %614  ;;  %v804_v55 = vsel %vm27_vm0, %v322_v51, %v617_v52 }
  0xb3   :  { %748 = vrot.lane.b32.xlu1 %v550_v49, %s6119_s26  ;;  %v801_v57 = vsel %vm27_vm0, %v321_v53, %v615_v54 }
  0xb4   :  { %640 = vrot.lane.b32.xlu0 %v442_v50, %s6120_s27  ;;  %v329_v50 = vpack.c.bf16 %v271_v47, %v270_v45  ;;  %v494_v45 = vld [vmem:[#allocation2 + $0x229] sm:$0xff]  ;;  %v495_v47 = vld [vmem:[#allocation2 + $0x231] sm:$0xff] }
  0xb5   :  { %v725_v56 = vpop.permute.xlu1 %724 }
  0xb6   :  { %v6703_v58 = vsel %vm892_vm4, %v804_v55, %v725_v56  ;;  %v723_v59 = vpop.permute.xlu0 %722 }
  0xb7   :  { %v6706_v62 = vsel %vm892_vm4, %v801_v57, %v723_v59  ;;  %v276_v57 = vld [vmem:[#allocation2 + $0x207] sm:$0xff]  ;;  %v277_v59 = vld [vmem:[#allocation2 + $0x20f] sm:$0xff] }
  0xb8   :  { %5457 = vmatprep.mubr.msk.bf16.mxu0 %vm975_vm5, %v6706_v62  ;;  %v332_v0 = vpack.c.bf16 %v277_v59, %v276_v57  ;;  %v290_v59 = vld [vmem:[#allocation2 + $0x2e7] sm:$0xff] }
  0xb9   :  { %5458 = vmatmul.mubr.msk.bf16.gmra.mrb[8].mxu0 %vm975_vm5, %v6703_v58  ;;  %v621_v2 = vpop.permute.xlu1 %620 }
  0xba   :  { %v619_v4 = vpop.permute.xlu0 %618  ;;  %v810_v5 = vsel %vm27_vm0, %v324_v1, %v621_v2  ;;  %v331_v2 = vpack.c.bf16 %v275_v63, %v274_v61  ;;  %v291_v61 = vld [vmem:[#allocation2 + $0x2ef] sm:$0xff] }
  0xbb   :  { %v807_v8 = vsel %vm27_vm0, %v323_v3, %v619_v4 }
  0xbd   :  { %v729_v6 = vpop.permute.xlu1 %728 }
  0xbe   :  { %v6715_v9 = vsel %vm892_vm4, %v810_v5, %v729_v6  ;;  %v727_v10 = vpop.permute.xlu0 %726 }
  0xbf   :  { %v6718_v14 = vsel %vm892_vm4, %v807_v8, %v727_v10 }
  0xc0   :  { %5461 = vmatprep.mubr.msk.bf16.mxu0 %vm975_vm5, %v6718_v14 }
  0xc1   :  { %5462 = vmatmul.mubr.msk.bf16.gmra.mrb[12].mxu0 %vm975_vm5, %v6715_v9  ;;  %v625_v18 = vpop.permute.xlu1 %624 }
  0xc2   :  { %v623_v20 = vpop.permute.xlu0 %622  ;;  %v816_v21 = vsel %vm27_vm0, %v326_v17, %v625_v18  ;;  %v283_v17 = vld [vmem:[#allocation2 + $0x26f] sm:$0xff]  ;;  %v336_v18 = vpack.c.bf16 %v285_v13, %v284_v11  ;;  %v296_v11 = vld [vmem:[#allocation2 + $0x347] sm:$0xff] }
  0xc3   :  { %v813_v25 = vsel %vm27_vm0, %v325_v19, %v623_v20  ;;  %v335_v20 = vpack.c.bf16 %v283_v17, %v282_v16  ;;  %v297_v13 = vld [vmem:[#allocation2 + $0x34f] sm:$0xff]  ;;  %v294_v17 = vld [vmem:[#allocation2 + $0x327] sm:$0xff] }
  0xc5   :  { %v733_v22 = vpop.permute.xlu1 %732 }
  0xc6   :  { %v6727_v26 = vsel %vm892_vm4, %v816_v21, %v733_v22  ;;  %v731_v27 = vpop.permute.xlu0 %730 }
  0xc7   :  { %v6730_v29 = vsel %vm892_vm4, %v813_v25, %v731_v27 }
  0xc8   :  { %5465 = vmatprep.mubr.msk.bf16.mxu0 %vm975_vm5, %v6730_v29 }
  0xc9   :  { %5466 = vmatmul.mubr.msk.bf16.gmra.mrb[16].mxu0 %vm975_vm5, %v6727_v26  ;;  %v629_v33 = vpop.permute.xlu1 %628 }
  0xca   :  { %v627_v35 = vpop.permute.xlu0 %626  ;;  %v822_v36 = vsel %vm27_vm0, %v328_v32, %v629_v33  ;;  %v286_v33 = vld [vmem:[#allocation2 + $0x2a7] sm:$0xff] }
  0xcb   :  { %v819_v38 = vsel %vm27_vm0, %v327_v34, %v627_v35  ;;  %v287_v34 = vld [vmem:[#allocation2 + $0x2af] sm:$0xff]  ;;  %v338_v35 = vpack.c.bf16 %v289_v31, %v288_v30 }
  0xcd   :  { %v737_v37 = vpop.permute.xlu1 %736 }
  0xce   :  { %v6739_v39 = vsel %vm892_vm4, %v822_v36, %v737_v37  ;;  %v735_v40 = vpop.permute.xlu0 %734  ;;  %v386_v37 = vld [vmem:[#allocation2 + $0x228] sm:$0xff] }
  0xcf   :  { %v6742_v44 = vsel %vm892_vm4, %v819_v38, %v735_v40  ;;  %v387_v38 = vld [vmem:[#allocation2 + $0x230] sm:$0xff]  ;;  %v337_v40 = vpack.c.bf16 %v287_v34, %v286_v33  ;;  %v300_v33 = vld [vmem:[#allocation2 + $0x387] sm:$0xff] }
  0xd0   :  { %5469 = vmatprep.mubr.msk.bf16.mxu0 %vm975_vm5, %v6742_v44  ;;  %v441_v43 = vpack.c.bf16 %v387_v38, %v386_v37  ;;  %v301_v34 = vld [vmem:[#allocation2 + $0x38f] sm:$0xff] }
  0xd1   :  { %5470 = vmatmul.mubr.msk.bf16.gmra.mrb[20].mxu0 %vm975_vm5, %v6739_v39  ;;  %v633_v49 = vpop.permute.xlu1 %632  ;;  %v299_v37 = vld [vmem:[#allocation2 + $0x36f] sm:$0xff]  ;;  %v344_v38 = vpack.c.bf16 %v301_v34, %v300_v33 }
  0xd2   :  { %v631_v51 = vpop.permute.xlu0 %630  ;;  %v828_v52 = vsel %vm27_vm0, %v330_v48, %v633_v49  ;;  %v549_v48 = vpack.c.bf16 %v495_v47, %v494_v45  ;;  %638 = vrot.lane.b32.xlu0 %v441_v43, %s6120_s27 }
  0xd3   :  { %v825_v54 = vsel %vm27_vm0, %v329_v50, %v631_v51 }
  0xd4   :  { %746 = vrot.lane.b32.xlu1 %v549_v48, %s6119_s26 }
  0xd5   :  { %v741_v53 = vpop.permute.xlu1 %740 }
  0xd6   :  { %v6751_v55 = vsel %vm892_vm4, %v828_v52, %v741_v53  ;;  %v739_v56 = vpop.permute.xlu0 %738 }
  0xd7   :  { %v6754_v60 = vsel %vm892_vm4, %v825_v54, %v739_v56  ;;  %v292_v54 = vld [vmem:[#allocation2 + $0x307] sm:$0xff]  ;;  %v293_v56 = vld [vmem:[#allocation2 + $0x30f] sm:$0xff] }
  0xd8   :  { %5473 = vmatprep.mubr.msk.bf16.mxu0 %vm975_vm5, %v6754_v60  ;;  %v340_v63 = vpack.c.bf16 %v293_v56, %v292_v54  ;;  %v302_v56 = vld [vmem:[#allocation2 + $0x3a7] sm:$0xff] }
  0xd9   :  { %5474 = vmatmul.mubr.msk.bf16.gmra.mrb[24].mxu0 %vm975_vm5, %v6751_v55  ;;  %v637_v1 = vpop.permute.xlu1 %636 }
  0xda   :  { %v635_v3 = vpop.permute.xlu0 %634  ;;  %v834_v4 = vsel %vm27_vm0, %v332_v0, %v637_v1  ;;  %v339_v1 = vpack.c.bf16 %v291_v61, %v290_v59  ;;  %v303_v59 = vld [vmem:[#allocation2 + $0x3af] sm:$0xff] }
  0xdb   :  { %v831_v6 = vsel %vm27_vm0, %v331_v2, %v635_v3 }
  0xdd   :  { %v745_v5 = vpop.permute.xlu1 %744 }
  0xde   :  { %v6763_v8 = vsel %vm892_vm4, %v834_v4, %v745_v5  ;;  %v743_v10 = vpop.permute.xlu0 %742 }
  0xdf   :  { %v6766_v15 = vsel %vm892_vm4, %v831_v6, %v743_v10 }
  0xe0   :  { %5477 = vmatprep.mubr.msk.bf16.mxu0 %vm975_vm5, %v6766_v15 }
  0xe1   :  { %5478 = vmatmul.mubr.msk.bf16.gmra.mrb[28].mxu0 %vm975_vm5, %v6763_v8  ;;  %v645_v19 = vpop.permute.xlu1 %644 }
  0xe2   :  { %v643_v21 = vpop.permute.xlu0 %642  ;;  %v846_v22 = vsel %vm27_vm0, %v336_v18, %v645_v19  ;;  %v295_v18 = vld [vmem:[#allocation2 + $0x32f] sm:$0xff]  ;;  %v342_v19 = vpack.c.bf16 %v297_v13, %v296_v11  ;;  %v308_v11 = vld [vmem:[#allocation2 + $0x407] sm:$0xff] }
  0xe3   :  { %v843_v27 = vsel %vm27_vm0, %v335_v20, %v643_v21  ;;  %v341_v21 = vpack.c.bf16 %v295_v18, %v294_v17  ;;  %v309_v13 = vld [vmem:[#allocation2 + $0x40f] sm:$0xff]  ;;  %v306_v18 = vld [vmem:[#allocation2 + $0x3e7] sm:$0xff] }
  0xe5   :  { %v753_v25 = vpop.permute.xlu1 %752 }
  0xe6   :  { %v6775_v12 = vsel %vm892_vm4, %v846_v22, %v753_v25  ;;  %v751_v28 = vpop.permute.xlu0 %750 }
  0xe7   :  { %v6778_v32 = vsel %vm892_vm4, %v843_v27, %v751_v28 }
  0xe8   :  { %5481 = vmatprep.mubr.msk.bf16.mxu0 %vm975_vm5, %v6778_v32 }
  0xe9   :  { %5482 = vmatmul.mubr.msk.bf16.gmra.mrb[32].mxu0 %vm975_vm5, %v6775_v12  ;;  %v649_v36 = vpop.permute.xlu1 %648 }
  0xea   :  { %v647_v41 = vpop.permute.xlu0 %646  ;;  %v852_v49 = vsel %vm27_vm0, %v338_v35, %v649_v36  ;;  %v298_v36 = vld [vmem:[#allocation2 + $0x367] sm:$0xff] }
  0xeb   :  { %v849_v51 = vsel %vm27_vm0, %v337_v40, %v647_v41  ;;  %v343_v41 = vpack.c.bf16 %v299_v37, %v298_v36  ;;  %v312_v36 = vld [vmem:[#allocation2 + $0x447] sm:$0xff]  ;;  %v313_v37 = vld [vmem:[#allocation2 + $0x44f] sm:$0xff] }
  0xed   :  { %v757_v50 = vpop.permute.xlu1 %756 }
  0xee   :  { %v6789_v52 = vsel %vm892_vm4, %v852_v49, %v757_v50  ;;  %v755_v53 = vpop.permute.xlu0 %754 }
  0xef   :  { %v6792_v57 = vsel %vm892_vm4, %v849_v51, %v755_v53  ;;  %v304_v51 = vld [vmem:[#allocation2 + $0x3c7] sm:$0xff]  ;;  %v305_v53 = vld [vmem:[#allocation2 + $0x3cf] sm:$0xff] }
  0xf0   :  { %5485 = vmatprep.mubr.msk.bf16.mxu0 %vm975_vm5, %v6792_v57  ;;  %v346_v61 = vpack.c.bf16 %v305_v53, %v304_v51  ;;  %v245_v51 = vld [vmem:[#allocation2 + $0xf] sm:$0xff] }
  0xf1   :  { %5486 = vmatmul.mubr.msk.bf16.gmra.mrb[36].mxu0 %vm975_vm5, %v6789_v52  ;;  %v653_v0 = vpop.permute.xlu1 %652 }
  0xf2   :  { %v651_v2 = vpop.permute.xlu0 %650  ;;  %v858_v3 = vsel %vm27_vm0, %v340_v63, %v653_v0  ;;  %v345_v0 = vpack.c.bf16 %v303_v59, %v302_v56 }
  0xf3   :  { %v855_v5 = vsel %vm27_vm0, %v339_v1, %v651_v2 }
  0xf5   :  { %v761_v4 = vpop.permute.xlu1 %760 }
  0xf6   :  { %v6801_v6 = vsel %vm892_vm4, %v858_v3, %v761_v4  ;;  %v759_v10 = vpop.permute.xlu0 %758 }
  0xf7   :  { %v6804_v16 = vsel %vm892_vm4, %v855_v5, %v759_v10 }
  0xf8   :  { %5489 = vmatprep.mubr.msk.bf16.mxu0 %vm975_vm5, %v6804_v16 }
  0xf9   :  { %5490 = vmatmul.mubr.msk.bf16.gmra.mrb[40].mxu0 %vm975_vm5, %v6801_v6  ;;  %v657_v20 = vpop.permute.xlu1 %656 }
  0xfa   :  { %v655_v22 = vpop.permute.xlu0 %654  ;;  %v864_v25 = vsel %vm27_vm0, %v342_v19, %v657_v20  ;;  %v307_v19 = vld [vmem:[#allocation2 + $0x3ef] sm:$0xff]  ;;  %v348_v20 = vpack.c.bf16 %v309_v13, %v308_v11  ;;  %v1647_v11 = vsel %vm1040_vm3, %v6672_v23, 0 }
  0xfb   :  { %v861_v28 = vsel %vm27_vm0, %v341_v21, %v655_v22  ;;  %v347_v22 = vpack.c.bf16 %v307_v19, %v306_v18  ;;  %v422_v13 = vld [vmem:[#allocation2 + $0x468] sm:$0xff]  ;;  %v423_v18 = vld [vmem:[#allocation2 + $0x470] sm:$0xff] }
  0xfc   :  { %v459_v19 = vpack.c.bf16 %v423_v18, %v422_v13  ;;  %v281_v23 = vld [vmem:[#allocation2 + $0x24f] sm:$0xff] }
  0xfd   :  { %v765_v27 = vpop.permute.xlu1 %764 }
  0xfe   :  { %v6813_v30 = vsel %vm892_vm4, %v864_v25, %v765_v27  ;;  %v763_v31 = vpop.permute.xlu0 %762  ;;  %674 = vrot.lane.b32.xlu0 %v459_v19, %s6120_s27 }
  0xff   :  { %v6816_v35 = vsel %vm892_vm4, %v861_v28, %v763_v31 }
 0x100   :  { %5493 = vmatprep.mubr.msk.bf16.mxu0 %vm975_vm5, %v6816_v35 }
 0x101   :  { %5494 = vmatmul.mubr.msk.bf16.gmra.mrb[44].mxu0 %vm975_vm5, %v6813_v30  ;;  %v661_v40 = vpop.permute.xlu1 %660 }
 0x102   :  { %v659_v43 = vpop.permute.xlu0 %658  ;;  %v870_v45 = vsel %vm27_vm0, %v344_v38, %v661_v40  ;;  %v310_v40 = vld [vmem:[#allocation2 + $0x427] sm:$0xff] }
 0x103   :  { %v867_v48 = vsel %vm27_vm0, %v343_v41, %v659_v43  ;;  %v311_v41 = vld [vmem:[#allocation2 + $0x42f] sm:$0xff]  ;;  %v350_v43 = vpack.c.bf16 %v313_v37, %v312_v36 }
 0x105   :  { %v769_v47 = vpop.permute.xlu1 %768 }
 0x106   :  { %v6825_v49 = vsel %vm892_vm4, %v870_v45, %v769_v47  ;;  %v767_v50 = vpop.permute.xlu0 %766  ;;  %v349_v47 = vpack.c.bf16 %v311_v41, %v310_v40 }
 0x107   :  { %v6828_v54 = vsel %vm892_vm4, %v867_v48, %v767_v50  ;;  %v244_v50 = vld [vmem:[#allocation2 + $0x7] sm:$0xff] }
 0x108   :  { %5497 = vmatprep.mubr.msk.bf16.mxu0 %vm975_vm5, %v6828_v54 }
 0x109   :  { %5498 = vmatmul.mubr.msk.bf16.gmra.mrb[48].mxu0 %vm975_vm5, %v6825_v49  ;;  %v665_v63 = vpop.permute.xlu1 %664 }
 0x10a   :  { %v663_v1 = vpop.permute.xlu0 %662  ;;  %v876_v2 = vsel %vm27_vm0, %v346_v61, %v665_v63 }
 0x10b   :  { %v873_v4 = vsel %vm27_vm0, %v345_v0, %v663_v1  ;;  %v316_v1 = vpack.c.bf16 %v245_v51, %v244_v50 }
 0x10d   :  { %v773_v3 = vpop.permute.xlu1 %772 }
 0x10e   :  { %v6837_v5 = vsel %vm892_vm4, %v876_v2, %v773_v3  ;;  %v771_v10 = vpop.permute.xlu0 %770 }
 0x10f   :  { %v6840_v17 = vsel %vm892_vm4, %v873_v4, %v771_v10 }
 0x110   :  { %5501 = vmatprep.mubr.msk.bf16.mxu0 %vm975_vm5, %v6840_v17 }
 0x111   :  { %5502 = vmatmul.mubr.msk.bf16.gmra.mrb[52].mxu0 %vm975_vm5, %v6837_v5  ;;  %v669_v21 = vpop.permute.xlu1 %668 }
 0x112   :  { %v667_v25 = vpop.permute.xlu0 %666  ;;  %v882_v27 = vsel %vm27_vm0, %v348_v20, %v669_v21  ;;  %v530_v20 = vld [vmem:[#allocation2 + $0x469] sm:$0xff]  ;;  %v531_v21 = vld [vmem:[#allocation2 + $0x471] sm:$0xff] }
 0x113   :  { %v879_v31 = vsel %vm27_vm0, %v347_v22, %v667_v25  ;;  %v567_v22 = vpack.c.bf16 %v531_v21, %v530_v20 }
 0x115   :  { %v777_v28 = vpop.permute.xlu1 %776  ;;  %782 = vrot.lane.b32.xlu1 %v567_v22, %s6119_s26 }
 0x116   :  { %v6849_v33 = vsel %vm892_vm4, %v882_v27, %v777_v28  ;;  %v775_v34 = vpop.permute.xlu0 %774 }
 0x117   :  { %v6852_v38 = vsel %vm892_vm4, %v879_v31, %v775_v34 }
 0x118   :  { %5505 = vmatprep.mubr.msk.bf16.mxu0 %vm975_vm5, %v6852_v38 }
 0x119   :  { %5506 = vmatmul.mubr.msk.bf16.gmra.mrb[56].mxu0 %vm975_vm5, %v6849_v33  ;;  %v673_v45 = vpop.permute.xlu1 %672 }
 0x11a   :  { %v671_v48 = vpop.permute.xlu0 %670  ;;  %v888_v53 = vsel %vm27_vm0, %v350_v43, %v673_v45 }
 0x11b   :  { %v885_v59 = vsel %vm27_vm0, %v349_v47, %v671_v48 }
 0x11d   :  { %v781_v56 = vpop.permute.xlu1 %780 }
 0x11e   :  { %v6861_v61 = vsel %vm892_vm4, %v888_v53, %v781_v56  ;;  %v779_v63 = vpop.permute.xlu0 %778 }
 0x11f   :  { %v6864_v0 = vsel %vm892_vm4, %v885_v59, %v779_v63 }
 0x120   :  { %5509 = vmatprep.mubr.msk.bf16.mxu0 %vm975_vm5, %v6864_v0 }
 0x121   :  { %5510 = vmatmul.mubr.msk.bf16.gmra.mrb[60].mxu0 %vm975_vm5, %v6861_v61  ;;  %v713_v2 = vpop.permute.xlu1 %712 }
 0x122   :  { %v605_v3 = vpop.permute.xlu0 %604 }
 0x123   :  { %v786_v4 = vsel %vm27_vm0, %v316_v1, %v605_v3 }
 0x124   :  { %v894_v10 = vsel %vm892_vm4, %v786_v4, %v713_v2 }
 0x125   :  { %5515 = vmatprep.mubr.msk.bf16.mxu0 %vm975_vm5, %v894_v10  ;;  %v749_v31 = vpop.permute.xlu1 %748 }
 0x126   :  { %v641_v27 = vpop.permute.xlu0 %640 }
 0x129   :  { %5516 = vmatmul.mubr.msk.bf16.vlgmr.msra.gmra.mrb[0].mxu0 %vm975_vm5, %v6661_v7  ;;  %v280_v7 = vld [vmem:[#allocation2 + $0x247] sm:$0xff] }
 0x12a   :  { %5580 = vmatpush3.bf16.msra.mxu0 %v1647_v11  ;;  %5519 = vmatprep.mubr.msk.bf16.mxu0 %vm975_vm5, %v6676_v24  ;;  %v334_v25 = vpack.c.bf16 %v281_v23, %v280_v7 }
 0x12c   :  { %v840_v28 = vsel %vm27_vm0, %v334_v25, %v641_v27 }
 0x12d   :  { %v930_v34 = vsel %vm892_vm4, %v840_v28, %v749_v31 }
 0x131   :  { %5520 = vmatmul.mubr.msk.bf16.gmra.mrb[4].mxu0 %vm975_vm5, %v6690_v46 }
 0x132   :  { %5523 = vmatprep.mubr.msk.bf16.mxu0 %vm975_vm5, %v6687_v42 }
 0x139   :  { %5524 = vmatmul.mubr.msk.bf16.gmra.mrb[8].mxu0 %vm975_vm5, %v6706_v62 }
 0x13a   :  { %5527 = vmatprep.mubr.msk.bf16.mxu0 %vm975_vm5, %v6703_v58 }
 0x141   :  { %5528 = vmatmul.mubr.msk.bf16.gmra.mrb[12].mxu0 %vm975_vm5, %v6718_v14 }
 0x142   :  { %5531 = vmatprep.mubr.msk.bf16.mxu0 %vm975_vm5, %v6715_v9 }
 0x149   :  { %5532 = vmatmul.mubr.msk.bf16.gmra.mrb[16].mxu0 %vm975_vm5, %v6730_v29 }
 0x14a   :  { %5535 = vmatprep.mubr.msk.bf16.mxu0 %vm975_vm5, %v6727_v26 }
 0x151   :  { %5536 = vmatmul.mubr.msk.bf16.gmra.mrb[20].mxu0 %vm975_vm5, %v6742_v44 }
 0x152   :  { %5539 = vmatprep.mubr.msk.bf16.mxu0 %vm975_vm5, %v6739_v39 }
 0x159   :  { %5540 = vmatmul.mubr.msk.bf16.gmra.mrb[24].mxu0 %vm975_vm5, %v6754_v60 }
 0x15a   :  { %5543 = vmatprep.mubr.msk.bf16.mxu0 %vm975_vm5, %v6751_v55 }
 0x161   :  { %5544 = vmatmul.mubr.msk.bf16.gmra.mrb[28].mxu0 %vm975_vm5, %v6766_v15 }
 0x162   :  { %5547 = vmatprep.mubr.msk.bf16.mxu0 %vm975_vm5, %v930_v34 }
 0x169   :  { %5548 = vmatmul.mubr.msk.bf16.gmra.mrb[32].mxu0 %vm975_vm5, %v6778_v32 }
 0x16a   :  { %5551 = vmatprep.mubr.msk.bf16.mxu0 %vm975_vm5, %v6775_v12 }
 0x171   :  { %5552 = vmatmul.mubr.msk.bf16.gmra.mrb[36].mxu0 %vm975_vm5, %v6792_v57 }
 0x172   :  { %5555 = vmatprep.mubr.msk.bf16.mxu0 %vm975_vm5, %v6789_v52 }
 0x179   :  { %5556 = vmatmul.mubr.msk.bf16.gmra.mrb[40].mxu0 %vm975_vm5, %v6804_v16 }
 0x17a   :  { %5559 = vmatprep.mubr.msk.bf16.mxu0 %vm975_vm5, %v6801_v6 }
 0x181   :  { %5560 = vmatmul.mubr.msk.bf16.gmra.mrb[44].mxu0 %vm975_vm5, %v6816_v35 }
 0x182   :  { %5563 = vmatprep.mubr.msk.bf16.mxu0 %vm975_vm5, %v6813_v30 }
 0x189   :  { %5564 = vmatmul.mubr.msk.bf16.gmra.mrb[48].mxu0 %vm975_vm5, %v6828_v54 }
 0x18a   :  { %5567 = vmatprep.mubr.msk.bf16.mxu0 %vm975_vm5, %v6825_v49 }
 0x191   :  { %5568 = vmatmul.mubr.msk.bf16.gmra.mrb[52].mxu0 %vm975_vm5, %v6840_v17 }
 0x192   :  { %5571 = vmatprep.mubr.msk.bf16.mxu0 %vm975_vm5, %v6837_v5 }
 0x199   :  { %5572 = vmatmul.mubr.msk.bf16.gmra.mrb[56].mxu0 %vm975_vm5, %v6852_v38 }
 0x19a   :  { %5575 = vmatprep.mubr.msk.bf16.mxu0 %vm975_vm5, %v6849_v33 }
 0x1a1   :  { %5576 = vmatmul.mubr.msk.bf16.gmra.mrb[60].mxu0 %vm975_vm5, %v6864_v0 }
 0x1a2   :  { %5581 = vmatprep.mubr.msk.bf16.mxu0 %vm975_vm5, %v6676_v24  ;;  %v278_v24 = vld [vmem:[#allocation2 + $0x227] sm:$0xff] }
 0x1a9   :  { %5582 = vmatmul.mubr.msk.bf16.vlgmr.msra.gmra.mrb[0].mxu0 %vm975_vm5, %v6690_v46 }
 0x1aa   :  { %5585 = vmatprep.mubr.msk.bf16.mxu0 %vm975_vm5, %v6687_v42  ;;  %v279_v42 = vld [vmem:[#allocation2 + $0x22f] sm:$0xff] }
 0x1ab   :  { %v333_v46 = vpack.c.bf16 %v279_v42, %v278_v24 }
 0x1b1   :  { %5586 = vmatmul.mubr.msk.bf16.gmra.mrb[4].mxu0 %vm975_vm5, %v6706_v62 }
 0x1b2   :  { %5589 = vmatprep.mubr.msk.bf16.mxu0 %vm975_vm5, %v6703_v58  ;;  %v639_v58 = vpop.permute.xlu0 %638 }
 0x1b3   :  { %v837_v62 = vsel %vm27_vm0, %v333_v46, %v639_v58 }
 0x1b9   :  { %5590 = vmatmul.mubr.msk.bf16.gmra.mrb[8].mxu0 %vm975_vm5, %v6718_v14 }
 0x1ba   :  { %5593 = vmatprep.mubr.msk.bf16.mxu0 %vm975_vm5, %v6715_v9  ;;  %v747_v9 = vpop.permute.xlu1 %746 }
 0x1bb   :  { %v928_v14 = vsel %vm892_vm4, %v837_v62, %v747_v9 }
 0x1c1   :  { %5594 = vmatmul.mubr.msk.bf16.gmra.mrb[12].mxu0 %vm975_vm5, %v6730_v29  ;;  %v315_v29 = vld [vmem:[#allocation2 + $0x46f] sm:$0xff] }
 0x1c2   :  { %5597 = vmatprep.mubr.msk.bf16.mxu0 %vm975_vm5, %v6727_v26  ;;  %v314_v26 = vld [vmem:[#allocation2 + $0x467] sm:$0xff] }
 0x1c9   :  { %5598 = vmatmul.mubr.msk.bf16.gmra.mrb[16].mxu0 %vm975_vm5, %v6742_v44  ;;  %v675_v44 = vpop.permute.xlu0 %674 }
 0x1ca   :  { %5601 = vmatprep.mubr.msk.bf16.mxu0 %vm975_vm5, %v6739_v39  ;;  %v351_v39 = vpack.c.bf16 %v315_v29, %v314_v26 }
 0x1d1   :  { %5602 = vmatmul.mubr.msk.bf16.gmra.mrb[20].mxu0 %vm975_vm5, %v6754_v60  ;;  %v783_v60 = vpop.permute.xlu1 %782 }
 0x1d2   :  { %5605 = vmatprep.mubr.msk.bf16.mxu0 %vm975_vm5, %v6751_v55  ;;  %v891_v55 = vsel %vm27_vm0, %v351_v39, %v675_v44 }
 0x1d9   :  { %5606 = vmatmul.mubr.msk.bf16.gmra.mrb[24].mxu0 %vm975_vm5, %v6766_v15 }
 0x1da   :  { %5609 = vmatprep.mubr.msk.bf16.mxu0 %vm975_vm5, %v6763_v8  ;;  %v964_v8 = vsel %vm892_vm4, %v891_v55, %v783_v60 }
 0x1e1   :  { %5610 = vmatmul.mubr.msk.bf16.gmra.mrb[28].mxu0 %vm975_vm5, %v928_v14 }
 0x1e2   :  { %5613 = vmatprep.mubr.msk.bf16.mxu0 %vm975_vm5, %v6775_v12 }
 0x1e9   :  { %5614 = vmatmul.mubr.msk.bf16.gmra.mrb[32].mxu0 %vm975_vm5, %v6792_v57 }
 0x1ea   :  { %5617 = vmatprep.mubr.msk.bf16.mxu0 %vm975_vm5, %v6789_v52 }
 0x1f1   :  { %5618 = vmatmul.mubr.msk.bf16.gmra.mrb[36].mxu0 %vm975_vm5, %v6804_v16 }
 0x1f2   :  { %5621 = vmatprep.mubr.msk.bf16.mxu0 %vm975_vm5, %v6801_v6 }
 0x1f9   :  { %5622 = vmatmul.mubr.msk.bf16.gmra.mrb[40].mxu0 %vm975_vm5, %v6816_v35 }
 0x1fa   :  { %5625 = vmatprep.mubr.msk.bf16.mxu0 %vm975_vm5, %v6813_v30 }
 0x201   :  { %5626 = vmatmul.mubr.msk.bf16.gmra.mrb[44].mxu0 %vm975_vm5, %v6828_v54 }
 0x202   :  { %5629 = vmatprep.mubr.msk.bf16.mxu0 %vm975_vm5, %v6825_v49 }
 0x209   :  { %5630 = vmatmul.mubr.msk.bf16.gmra.mrb[48].mxu0 %vm975_vm5, %v6840_v17 }
 0x20a   :  { %5633 = vmatprep.mubr.msk.bf16.mxu0 %vm975_vm5, %v6837_v5 }
 0x211   :  { %5634 = vmatmul.mubr.msk.bf16.gmra.mrb[52].mxu0 %vm975_vm5, %v6852_v38 }
 0x212   :  { %5637 = vmatprep.mubr.msk.bf16.mxu0 %vm975_vm5, %v6849_v33 }
 0x219   :  { %5638 = vmatmul.mubr.msk.bf16.gmra.mrb[56].mxu0 %vm975_vm5, %v6864_v0 }
 0x21a   :  { %5641 = vmatprep.mubr.msk.bf16.mxu0 %vm975_vm5, %v6861_v61 }
 0x221   :  { %5642 = vmatmul.mubr.msk.bf16.gmra.mrb[60].mxu0 %vm975_vm5, %v964_v8 }
 0x27c   :  { %v7006_v15 = vpop.f32.mrb[0].mxu0 }
 0x27d   :  { %v7008_v12 = vpop.f32.mrb[1].mxu0  ;;  %v2137_v6 = vmul.f32 %v7006_v15, %v7006_v15  ;;  %v2005_v54 = vsel %vm27_vm0, %v7006_v15, 0.0 }
 0x27e   :  { %v2135_v32 = vmul.f32 %v7008_v12, %v7008_v12  ;;  %v7012_v52 = vpop.f32.mrb[2].mxu0  ;;  %v2002_v16 = vsel %vm27_vm0, %v7008_v12, 0.0 }
 0x27f   :  { %v7014_v57 = vpop.f32.mrb[3].mxu0  ;;  %v2138_v17 = vmul.f32 %v7012_v52, %v7012_v52  ;;  %v2202_v38 = vsel %vm27_vm0, %v2137_v6, 0.0  ;;  %v2007_v40 = vsel %vm27_vm0, %v7012_v52, 0.0 }
 0x280   :  { %v2003_v30 = vsel %vm27_vm0, %v7014_v57, 0.0  ;;  %v2136_v35 = vmul.f32 %v7014_v57, %v7014_v57  ;;  %v2199_v5 = vsel %vm27_vm0, %v2135_v32, 0.0 }
 0x281   :  { %v2004_v49 = vadd.f32 %v2003_v30, %v2002_v16  ;;  %v2204_v48 = vsel %vm27_vm0, %v2138_v17, 0.0 }
 0x282   :  { %v2200_v33 = vsel %vm27_vm0, %v2136_v35, 0.0 }
 0x283   :  { %v2006_v36 = vadd.f32 %v2005_v54, %v2004_v49  ;;  %v2201_v37 = vadd.f32 %v2200_v33, %v2199_v5 }
 0x284   :  { %v7033_v41 = vpop.f32.mrb[4].mxu0 }
 0x285   :  { %v2203_v43 = vadd.f32 %v2202_v38, %v2201_v37  ;;  %v7035_v45 = vpop.f32.mrb[5].mxu0  ;;  %v2008_v47 = vadd.f32 %v2007_v40, %v2006_v36  ;;  %v2141_v63 = vmul.f32 %v7033_v41, %v7033_v41  ;;  %v2013_v10 = vsel %vm27_vm0, %v7033_v41, 0.0 }
 0x286   :  { %v2009_v50 = vsel %vm27_vm0, %v7035_v45, 0.0  ;;  %v2139_v51 = vmul.f32 %v7035_v45, %v7035_v45  ;;  %v7042_v53 = vpop.f32.mrb[6].mxu0 }
 0x287   :  { %v2010_v56 = vadd.f32 %v2009_v50, %v2008_v47  ;;  %v2205_v59 = vadd.f32 %v2204_v48, %v2203_v43  ;;  %v7044_v61 = vpop.f32.mrb[7].mxu0  ;;  %v2142_v11 = vmul.f32 %v7042_v53, %v7042_v53  ;;  %v2210_v20 = vsel %vm27_vm0, %v2141_v63, 0.0 }
 0x288   :  { %v2206_v0 = vsel %vm27_vm0, %v2139_v51, 0.0  ;;  %v2011_v1 = vsel %vm27_vm0, %v7044_v61, 0.0  ;;  %v2140_v2 = vmul.f32 %v7044_v61, %v7044_v61  ;;  %v2015_v21 = vsel %vm27_vm0, %v7042_v53, 0.0 }
 0x289   :  { %v2207_v3 = vadd.f32 %v2206_v0, %v2205_v59  ;;  %v2012_v4 = vadd.f32 %v2011_v1, %v2010_v56  ;;  %v2212_v27 = vsel %vm27_vm0, %v2142_v11, 0.0 }
 0x28a   :  { %v2208_v13 = vsel %vm27_vm0, %v2140_v2, 0.0 }
 0x28b   :  { %v2014_v18 = vadd.f32 %v2013_v10, %v2012_v4  ;;  %v2209_v19 = vadd.f32 %v2208_v13, %v2207_v3 }
 0x28c   :  { %v7061_v22 = vpop.f32.mrb[8].mxu0 }
 0x28d   :  { %v2211_v7 = vadd.f32 %v2210_v20, %v2209_v19  ;;  %v7063_v23 = vpop.f32.mrb[9].mxu0  ;;  %v2016_v25 = vadd.f32 %v2015_v21, %v2014_v18  ;;  %v2145_v58 = vmul.f32 %v7061_v22, %v7061_v22  ;;  %v2021_v39 = vsel %vm27_vm0, %v7061_v22, 0.0 }
 0x28e   :  { %v2017_v28 = vsel %vm27_vm0, %v7063_v23, 0.0  ;;  %v2143_v31 = vmul.f32 %v7063_v23, %v7063_v23  ;;  %v7070_v34 = vpop.f32.mrb[10].mxu0 }
 0x28f   :  { %v2018_v24 = vadd.f32 %v2017_v28, %v2016_v25  ;;  %v2213_v42 = vadd.f32 %v2212_v27, %v2211_v7  ;;  %v7072_v46 = vpop.f32.mrb[11].mxu0  ;;  %v2146_v44 = vmul.f32 %v7070_v34, %v7070_v34  ;;  %v2218_v32 = vsel %vm27_vm0, %v2145_v58, 0.0 }
 0x290   :  { %v2214_v62 = vsel %vm27_vm0, %v2143_v31, 0.0  ;;  %v2019_v9 = vsel %vm27_vm0, %v7072_v46, 0.0  ;;  %v2144_v14 = vmul.f32 %v7072_v46, %v7072_v46  ;;  %v2023_v6 = vsel %vm27_vm0, %v7070_v34, 0.0 }
 0x291   :  { %v2215_v26 = vadd.f32 %v2214_v62, %v2213_v42  ;;  %v2020_v29 = vadd.f32 %v2019_v9, %v2018_v24  ;;  %v2220_v54 = vsel %vm27_vm0, %v2146_v44, 0.0 }
 0x292   :  { %v2216_v55 = vsel %vm27_vm0, %v2144_v14, 0.0 }
 0x293   :  { %v2022_v60 = vadd.f32 %v2021_v39, %v2020_v29  ;;  %v2217_v8 = vadd.f32 %v2216_v55, %v2215_v26 }
 0x294   :  { %v7089_v16 = vpop.f32.mrb[12].mxu0 }
 0x295   :  { %v2219_v30 = vadd.f32 %v2218_v32, %v2217_v8  ;;  %v7091_v35 = vpop.f32.mrb[13].mxu0  ;;  %v2024_v49 = vadd.f32 %v2023_v6, %v2022_v60  ;;  %v2149_v40 = vmul.f32 %v7089_v16, %v7089_v16  ;;  %v2029_v56 = vsel %vm27_vm0, %v7089_v16, 0.0 }
 0x296   :  { %v2025_v5 = vsel %vm27_vm0, %v7091_v35, 0.0  ;;  %v2147_v17 = vmul.f32 %v7091_v35, %v7091_v35  ;;  %v7098_v33 = vpop.f32.mrb[14].mxu0 }
 0x297   :  { %v2026_v36 = vadd.f32 %v2025_v5, %v2024_v49  ;;  %v2221_v37 = vadd.f32 %v2220_v54, %v2219_v30  ;;  %v7100_v38 = vpop.f32.mrb[15].mxu0  ;;  %v2150_v59 = vmul.f32 %v7098_v33, %v7098_v33  ;;  %v2226_v2 = vsel %vm27_vm0, %v2149_v40, 0.0 }
 0x298   :  { %v2222_v43 = vsel %vm27_vm0, %v2147_v17, 0.0  ;;  %v2027_v47 = vsel %vm27_vm0, %v7100_v38, 0.0  ;;  %v2148_v48 = vmul.f32 %v7100_v38, %v7100_v38  ;;  %v2031_v3 = vsel %vm27_vm0, %v7098_v33, 0.0 }
 0x299   :  { %v2223_v50 = vadd.f32 %v2222_v43, %v2221_v37  ;;  %v2028_v51 = vadd.f32 %v2027_v47, %v2026_v36  ;;  %v2228_v18 = vsel %vm27_vm0, %v2150_v59, 0.0 }
 0x29a   :  { %v2224_v63 = vsel %vm27_vm0, %v2148_v48, 0.0 }
 0x29b   :  { %v2030_v0 = vadd.f32 %v2029_v56, %v2028_v51  ;;  %v2225_v1 = vadd.f32 %v2224_v63, %v2223_v50 }
 0x29c   :  { %v7117_v4 = vpop.f32.mrb[16].mxu0 }
 0x29d   :  { %v2227_v10 = vadd.f32 %v2226_v2, %v2225_v1  ;;  %v7119_v11 = vpop.f32.mrb[17].mxu0  ;;  %v2032_v13 = vadd.f32 %v2031_v3, %v2030_v0  ;;  %v2153_v28 = vmul.f32 %v7117_v4, %v7117_v4  ;;  %v2037_v9 = vsel %vm27_vm0, %v7117_v4, 0.0 }
 0x29e   :  { %v2033_v19 = vsel %vm27_vm0, %v7119_v11, 0.0  ;;  %v2151_v20 = vmul.f32 %v7119_v11, %v7119_v11  ;;  %v7126_v21 = vpop.f32.mrb[18].mxu0 }
 0x29f   :  { %v2034_v7 = vadd.f32 %v2033_v19, %v2032_v13  ;;  %v2229_v25 = vadd.f32 %v2228_v18, %v2227_v10  ;;  %v7128_v27 = vpop.f32.mrb[19].mxu0  ;;  %v2154_v14 = vmul.f32 %v7126_v21, %v7126_v21  ;;  %v2234_v44 = vsel %vm27_vm0, %v2153_v28, 0.0 }
 0x2a0   :  { %v2230_v31 = vsel %vm27_vm0, %v2151_v20, 0.0  ;;  %v2035_v24 = vsel %vm27_vm0, %v7128_v27, 0.0  ;;  %v2152_v42 = vmul.f32 %v7128_v27, %v7128_v27  ;;  %v2039_v55 = vsel %vm27_vm0, %v7126_v21, 0.0 }
 0x2a1   :  { %v2231_v58 = vadd.f32 %v2230_v31, %v2229_v25  ;;  %v2036_v62 = vadd.f32 %v2035_v24, %v2034_v7  ;;  %v2236_v30 = vsel %vm27_vm0, %v2154_v14, 0.0 }
 0x2a2   :  { %v2232_v26 = vsel %vm27_vm0, %v2152_v42, 0.0 }
 0x2a3   :  { %v2038_v29 = vadd.f32 %v2037_v9, %v2036_v62  ;;  %v2233_v39 = vadd.f32 %v2232_v26, %v2231_v58 }
 0x2a4   :  { %v7145_v60 = vpop.f32.mrb[20].mxu0 }
 0x2a5   :  { %v2235_v8 = vadd.f32 %v2234_v44, %v2233_v39  ;;  %v7147_v32 = vpop.f32.mrb[21].mxu0  ;;  %v2040_v6 = vadd.f32 %v2039_v55, %v2038_v29  ;;  %v2157_v40 = vmul.f32 %v7145_v60, %v7145_v60  ;;  %v2045_v56 = vsel %vm27_vm0, %v7145_v60, 0.0 }
 0x2a6   :  { %v2041_v49 = vsel %vm27_vm0, %v7147_v32, 0.0  ;;  %v2155_v54 = vmul.f32 %v7147_v32, %v7147_v32  ;;  %v7154_v5 = vpop.f32.mrb[22].mxu0 }
 0x2a7   :  { %v2042_v17 = vadd.f32 %v2041_v49, %v2040_v6  ;;  %v2237_v36 = vadd.f32 %v2236_v30, %v2235_v8  ;;  %v7156_v37 = vpop.f32.mrb[23].mxu0  ;;  %v2158_v59 = vmul.f32 %v7154_v5, %v7154_v5  ;;  %v2242_v2 = vsel %vm27_vm0, %v2157_v40, 0.0 }
 0x2a8   :  { %v2238_v43 = vsel %vm27_vm0, %v2155_v54, 0.0  ;;  %v2043_v47 = vsel %vm27_vm0, %v7156_v37, 0.0  ;;  %v2156_v48 = vmul.f32 %v7156_v37, %v7156_v37  ;;  %v2047_v3 = vsel %vm27_vm0, %v7154_v5, 0.0 }
 0x2a9   :  { %v2239_v50 = vadd.f32 %v2238_v43, %v2237_v36  ;;  %v2044_v51 = vadd.f32 %v2043_v47, %v2042_v17  ;;  %v2244_v20 = vsel %vm27_vm0, %v2158_v59, 0.0 }
 0x2aa   :  { %v2240_v63 = vsel %vm27_vm0, %v2156_v48, 0.0 }
 0x2ab   :  { %v2046_v0 = vadd.f32 %v2045_v56, %v2044_v51  ;;  %v2241_v1 = vadd.f32 %v2240_v63, %v2239_v50 }
 0x2ac   :  { %v7173_v10 = vpop.f32.mrb[24].mxu0 }
 0x2ad   :  { %v2243_v13 = vadd.f32 %v2242_v2, %v2241_v1  ;;  %v7175_v18 = vpop.f32.mrb[25].mxu0  ;;  %v2048_v19 = vadd.f32 %v2047_v3, %v2046_v0  ;;  %v2161_v58 = vmul.f32 %v7173_v10, %v7173_v10  ;;  %v2053_v39 = vsel %vm27_vm0, %v7173_v10, 0.0 }
 0x2ae   :  { %v2049_v7 = vsel %vm27_vm0, %v7175_v18, 0.0  ;;  %v2159_v25 = vmul.f32 %v7175_v18, %v7175_v18  ;;  %v7182_v28 = vpop.f32.mrb[26].mxu0 }
 0x2af   :  { %v2050_v31 = vadd.f32 %v2049_v7, %v2048_v19  ;;  %v2245_v24 = vadd.f32 %v2244_v20, %v2243_v13  ;;  %v7184_v42 = vpop.f32.mrb[27].mxu0  ;;  %v2162_v44 = vmul.f32 %v7182_v28, %v7182_v28  ;;  %v2250_v30 = vsel %vm27_vm0, %v2161_v58, 0.0 }
 0x2b0   :  { %v2246_v62 = vsel %vm27_vm0, %v2159_v25, 0.0  ;;  %v2051_v9 = vsel %vm27_vm0, %v7184_v42, 0.0  ;;  %v2160_v14 = vmul.f32 %v7184_v42, %v7184_v42  ;;  %v2055_v49 = vsel %vm27_vm0, %v7182_v28, 0.0 }
 0x2b1   :  { %v2247_v26 = vadd.f32 %v2246_v62, %v2245_v24  ;;  %v2052_v29 = vadd.f32 %v2051_v9, %v2050_v31  ;;  %v2252_v43 = vsel %vm27_vm0, %v2162_v44, 0.0 }
 0x2b2   :  { %v2248_v55 = vsel %vm27_vm0, %v2160_v14, 0.0 }
 0x2b3   :  { %v2054_v8 = vadd.f32 %v2053_v39, %v2052_v29  ;;  %v2249_v6 = vadd.f32 %v2248_v55, %v2247_v26 }
 0x2b4   :  { %v7201_v54 = vpop.f32.mrb[28].mxu0 }
 0x2b5   :  { %v2251_v17 = vadd.f32 %v2250_v30, %v2249_v6  ;;  %v7203_v36 = vpop.f32.mrb[29].mxu0  ;;  %v2056_v40 = vadd.f32 %v2055_v49, %v2054_v8  ;;  %v2165_v63 = vmul.f32 %v7201_v54, %v7201_v54  ;;  %v2061_v19 = vsel %vm27_vm0, %v7201_v54, 0.0 }
 0x2b6   :  { %v2057_v47 = vsel %vm27_vm0, %v7203_v36, 0.0  ;;  %v2163_v48 = vmul.f32 %v7203_v36, %v7203_v36  ;;  %v7210_v50 = vpop.f32.mrb[30].mxu0 }
 0x2b7   :  { %v2058_v51 = vadd.f32 %v2057_v47, %v2056_v40  ;;  %v2253_v56 = vadd.f32 %v2252_v43, %v2251_v17  ;;  %v7212_v59 = vpop.f32.mrb[31].mxu0  ;;  %v2166_v20 = vmul.f32 %v7210_v50, %v7210_v50  ;;  %v2258_v24 = vsel %vm27_vm0, %v2165_v63, 0.0 }
 0x2b8   :  { %v2254_v0 = vsel %vm27_vm0, %v2163_v48, 0.0  ;;  %v2059_v1 = vsel %vm27_vm0, %v7212_v59, 0.0  ;;  %v2164_v2 = vmul.f32 %v7212_v59, %v7212_v59  ;;  %v2063_v58 = vsel %vm27_vm0, %v7210_v50, 0.0 }
 0x2b9   :  { %v2255_v3 = vadd.f32 %v2254_v0, %v2253_v56  ;;  %v2060_v13 = vadd.f32 %v2059_v1, %v2058_v51  ;;  %v2260_v29 = vsel %vm27_vm0, %v2166_v20, 0.0 }
 0x2ba   :  { %v2256_v7 = vsel %vm27_vm0, %v2164_v2, 0.0 }
 0x2bb   :  { %v2062_v25 = vadd.f32 %v2061_v19, %v2060_v13  ;;  %v2257_v31 = vadd.f32 %v2256_v7, %v2255_v3 }
 0x2bc   :  { %v7229_v62 = vpop.f32.mrb[32].mxu0 }
 0x2bd   :  { %v2259_v9 = vadd.f32 %v2258_v24, %v2257_v31  ;;  %v7231_v14 = vpop.f32.mrb[33].mxu0  ;;  %v2064_v26 = vadd.f32 %v2063_v58, %v2062_v25  ;;  %v2169_v49 = vmul.f32 %v7229_v62, %v7229_v62  ;;  %v2069_v51 = vsel %vm27_vm0, %v7229_v62, 0.0 }
 0x2be   :  { %v2065_v39 = vsel %vm27_vm0, %v7231_v14, 0.0  ;;  %v2167_v44 = vmul.f32 %v7231_v14, %v7231_v14  ;;  %v7238_v55 = vpop.f32.mrb[34].mxu0 }
 0x2bf   :  { %v2066_v8 = vadd.f32 %v2065_v39, %v2064_v26  ;;  %v2261_v6 = vadd.f32 %v2260_v29, %v2259_v9  ;;  %v7240_v30 = vpop.f32.mrb[35].mxu0  ;;  %v2170_v56 = vmul.f32 %v7238_v55, %v7238_v55  ;;  %v2266_v2 = vsel %vm27_vm0, %v2169_v49, 0.0 }
 0x2c0   :  { %v2262_v17 = vsel %vm27_vm0, %v2167_v44, 0.0  ;;  %v2067_v40 = vsel %vm27_vm0, %v7240_v30, 0.0  ;;  %v2168_v43 = vmul.f32 %v7240_v30, %v7240_v30  ;;  %v2071_v3 = vsel %vm27_vm0, %v7238_v55, 0.0 }
 0x2c1   :  { %v2263_v47 = vadd.f32 %v2262_v17, %v2261_v6  ;;  %v2068_v48 = vadd.f32 %v2067_v40, %v2066_v8  ;;  %v2268_v25 = vsel %vm27_vm0, %v2170_v56, 0.0 }
 0x2c2   :  { %v2264_v63 = vsel %vm27_vm0, %v2168_v43, 0.0 }
 0x2c3   :  { %v2070_v0 = vadd.f32 %v2069_v51, %v2068_v48  ;;  %v2265_v1 = vadd.f32 %v2264_v63, %v2263_v47 }
 0x2c4   :  { %v7257_v13 = vpop.f32.mrb[36].mxu0 }
 0x2c5   :  { %v2267_v19 = vadd.f32 %v2266_v2, %v2265_v1  ;;  %v7259_v20 = vpop.f32.mrb[37].mxu0  ;;  %v2072_v7 = vadd.f32 %v2071_v3, %v2070_v0  ;;  %v2173_v39 = vmul.f32 %v7257_v13, %v7257_v13  ;;  %v2077_v40 = vsel %vm27_vm0, %v7257_v13, 0.0 }
 0x2c6   :  { %v2073_v31 = vsel %vm27_vm0, %v7259_v20, 0.0  ;;  %v2171_v24 = vmul.f32 %v7259_v20, %v7259_v20  ;;  %v7266_v58 = vpop.f32.mrb[38].mxu0 }
 0x2c7   :  { %10064 = vst [vmem:[#allocation3_spill] sm:$0xff] %v7266_v58  ;;  %v2074_v9 = vadd.f32 %v2073_v31, %v2072_v7  ;;  %v2269_v26 = vadd.f32 %v2268_v25, %v2267_v19  ;;  %v7268_v29 = vpop.f32.mrb[39].mxu0  ;;  %v2174_v43 = vmul.f32 %v7266_v58, %v7266_v58  ;;  %v2274_v56 = vsel %vm27_vm0, %v2173_v39, 0.0 }
 0x2c8   :  { %v2270_v44 = vsel %vm27_vm0, %v2171_v24, 0.0  ;;  %v2075_v8 = vsel %vm27_vm0, %v7268_v29, 0.0  ;;  %v2172_v6 = vmul.f32 %v7268_v29, %v7268_v29  ;;  %v2079_v63 = vsel %vm27_vm0, %v7266_v58, 0.0 }
 0x2c9   :  { %v2271_v49 = vadd.f32 %v2270_v44, %v2269_v26  ;;  %v2076_v17 = vadd.f32 %v2075_v8, %v2074_v9  ;;  %v2276_v19 = vsel %vm27_vm0, %v2174_v43, 0.0 }
 0x2ca   :  { %v2272_v47 = vsel %vm27_vm0, %v2172_v6, 0.0 }
 0x2cb   :  { %v2078_v48 = vadd.f32 %v2077_v40, %v2076_v17  ;;  %v2273_v51 = vadd.f32 %v2272_v47, %v2271_v49 }
 0x2cc   :  { %v7285_v0 = vpop.f32.mrb[40].mxu0 }
 0x2cd   :  { %10065 = vst [vmem:[#allocation4_spill] sm:$0xff] %v7285_v0  ;;  %v2275_v1 = vadd.f32 %v2274_v56, %v2273_v51  ;;  %v7287_v2 = vpop.f32.mrb[41].mxu0  ;;  %v2080_v3 = vadd.f32 %v2079_v63, %v2078_v48  ;;  %v2177_v39 = vmul.f32 %v7285_v0, %v7285_v0  ;;  %v2085_v40 = vsel %vm27_vm0, %v7285_v0, 0.0 }
 0x2ce   :  { %10066 = vst [vmem:[#allocation5_spill] sm:$0xff] %v7287_v2  ;;  %v2081_v7 = vsel %vm27_vm0, %v7287_v2, 0.0  ;;  %v2175_v25 = vmul.f32 %v7287_v2, %v7287_v2  ;;  %v7294_v31 = vpop.f32.mrb[42].mxu0 }
 0x2cf   :  { %10067 = vst [vmem:[#allocation6_spill] sm:$0xff] %v7294_v31  ;;  %v2082_v24 = vadd.f32 %v2081_v7, %v2080_v3  ;;  %v2277_v9 = vadd.f32 %v2276_v19, %v2275_v1  ;;  %v7296_v26 = vpop.f32.mrb[43].mxu0  ;;  %v2178_v43 = vmul.f32 %v7294_v31, %v7294_v31  ;;  %v2282_v56 = vsel %vm27_vm0, %v2177_v39, 0.0 }
 0x2d0   :  { %10068 = vst [vmem:[#allocation7_spill] sm:$0xff] %v7296_v26  ;;  %v2278_v44 = vsel %vm27_vm0, %v2175_v25, 0.0  ;;  %v2083_v8 = vsel %vm27_vm0, %v7296_v26, 0.0  ;;  %v2176_v6 = vmul.f32 %v7296_v26, %v7296_v26  ;;  %v2087_v63 = vsel %vm27_vm0, %v7294_v31, 0.0 }
 0x2d1   :  { %v2279_v49 = vadd.f32 %v2278_v44, %v2277_v9  ;;  %v2084_v17 = vadd.f32 %v2083_v8, %v2082_v24  ;;  %v2284_v25 = vsel %vm27_vm0, %v2178_v43, 0.0 }
 0x2d2   :  { %v2280_v47 = vsel %vm27_vm0, %v2176_v6, 0.0 }
 0x2d3   :  { %v2086_v48 = vadd.f32 %v2085_v40, %v2084_v17  ;;  %v2281_v51 = vadd.f32 %v2280_v47, %v2279_v49 }
 0x2d4   :  { %v7313_v1 = vpop.f32.mrb[44].mxu0 }
 0x2d5   :  { %10069 = vst [vmem:[#allocation8_spill] sm:$0xff] %v7313_v1  ;;  %v2283_v3 = vadd.f32 %v2282_v56, %v2281_v51  ;;  %v7315_v19 = vpop.f32.mrb[45].mxu0  ;;  %v2088_v7 = vadd.f32 %v2087_v63, %v2086_v48  ;;  %v2181_v49 = vmul.f32 %v7313_v1, %v7313_v1  ;;  %v2093_v51 = vsel %vm27_vm0, %v7313_v1, 0.0 }
 0x2d6   :  { %10070 = vst [vmem:[#allocation9_spill] sm:$0xff] %v7315_v19  ;;  %v2089_v24 = vsel %vm27_vm0, %v7315_v19, 0.0  ;;  %v2179_v9 = vmul.f32 %v7315_v19, %v7315_v19  ;;  %v7322_v44 = vpop.f32.mrb[46].mxu0 }
 0x2d7   :  { %10071 = vst [vmem:[#allocation10_spill] sm:$0xff] %v7322_v44  ;;  %v2090_v39 = vadd.f32 %v2089_v24, %v2088_v7  ;;  %v2285_v8 = vadd.f32 %v2284_v25, %v2283_v3  ;;  %v7324_v6 = vpop.f32.mrb[47].mxu0  ;;  %v2182_v56 = vmul.f32 %v7322_v44, %v7322_v44  ;;  %v2290_v25 = vsel %vm27_vm0, %v2181_v49, 0.0 }
 0x2d8   :  { %10072 = vst [vmem:[#allocation11_spill] sm:$0xff] %v7324_v6  ;;  %v2286_v17 = vsel %vm27_vm0, %v2179_v9, 0.0  ;;  %v2091_v40 = vsel %vm27_vm0, %v7324_v6, 0.0  ;;  %v2180_v43 = vmul.f32 %v7324_v6, %v7324_v6  ;;  %v2095_v24 = vsel %vm27_vm0, %v7322_v44, 0.0 }
 0x2d9   :  { %v2287_v47 = vadd.f32 %v2286_v17, %v2285_v8  ;;  %v2092_v48 = vadd.f32 %v2091_v40, %v2090_v39  ;;  %v2292_v17 = vsel %vm27_vm0, %v2182_v56, 0.0 }
 0x2da   :  { %v2288_v63 = vsel %vm27_vm0, %v2180_v43, 0.0 }
 0x2db   :  { %v2094_v3 = vadd.f32 %v2093_v51, %v2092_v48  ;;  %v2289_v7 = vadd.f32 %v2288_v63, %v2287_v47 }
 0x2dc   :  { %v7341_v9 = vpop.f32.mrb[48].mxu0 }
 0x2dd   :  { %10073 = vst [vmem:[#allocation12_spill] sm:$0xff] %v7341_v9  ;;  %v2291_v6 = vadd.f32 %v2290_v25, %v2289_v7  ;;  %v7343_v8 = vpop.f32.mrb[49].mxu0  ;;  %v2096_v39 = vadd.f32 %v2095_v24, %v2094_v3  ;;  %v2185_v63 = vmul.f32 %v7341_v9, %v7341_v9 }
 0x2de   :  { %10074 = vst [vmem:[#allocation13_spill] sm:$0xff] %v7343_v8  ;;  %v2097_v40 = vsel %vm27_vm0, %v7343_v8, 0.0  ;;  %v2183_v43 = vmul.f32 %v7343_v8, %v7343_v8  ;;  %v7350_v47 = vpop.f32.mrb[50].mxu0  ;;  %v2101_v8 = vsel %vm27_vm0, %v7341_v9, 0.0 }
 0x2df   :  { %10075 = vst [vmem:[#allocation14_spill] sm:$0xff] %v7350_v47  ;;  %v2098_v49 = vadd.f32 %v2097_v40, %v2096_v39  ;;  %v2293_v48 = vadd.f32 %v2292_v17, %v2291_v6  ;;  %v7352_v51 = vpop.f32.mrb[51].mxu0  ;;  %v2186_v6 = vmul.f32 %v7350_v47, %v7350_v47  ;;  %v2103_v44 = vsel %vm27_vm0, %v7350_v47, 0.0 }
 0x2e0   :  { %10076 = vst [vmem:[#allocation15_spill] sm:$0xff] %v7352_v51  ;;  %v2294_v7 = vsel %vm27_vm0, %v2183_v43, 0.0  ;;  %v2099_v56 = vsel %vm27_vm0, %v7352_v51, 0.0  ;;  %v2184_v3 = vmul.f32 %v7352_v51, %v7352_v51  ;;  %v2298_v43 = vsel %vm27_vm0, %v2185_v63, 0.0 }
 0x2e1   :  { %v2295_v25 = vadd.f32 %v2294_v7, %v2293_v48  ;;  %v2100_v24 = vadd.f32 %v2099_v56, %v2098_v49  ;;  %v2300_v7 = vsel %vm27_vm0, %v2186_v6, 0.0 }
 0x2e2   :  { %v2296_v39 = vsel %vm27_vm0, %v2184_v3, 0.0 }
 0x2e3   :  { %v2102_v17 = vadd.f32 %v2101_v8, %v2100_v24  ;;  %v2297_v40 = vadd.f32 %v2296_v39, %v2295_v25 }
 0x2e4   :  { %v7369_v1 = vpop.f32.mrb[52].mxu0 }
 0x2e5   :  { %10077 = vst [vmem:[#allocation16_spill] sm:$0xff] %v7369_v1  ;;  %v2299_v51 = vadd.f32 %v2298_v43, %v2297_v40  ;;  %v7371_v48 = vpop.f32.mrb[53].mxu0  ;;  %v2104_v49 = vadd.f32 %v2103_v44, %v2102_v17  ;;  %v2189_v39 = vmul.f32 %v7369_v1, %v7369_v1 }
 0x2e6   :  { %10078 = vst [vmem:[#allocation17_spill] sm:$0xff] %v7371_v48  ;;  %v2105_v56 = vsel %vm27_vm0, %v7371_v48, 0.0  ;;  %v2187_v8 = vmul.f32 %v7371_v48, %v7371_v48  ;;  %v7378_v3 = vpop.f32.mrb[54].mxu0  ;;  %v2109_v48 = vsel %vm27_vm0, %v7369_v1, 0.0 }
 0x2e7   :  { %10079 = vst [vmem:[#allocation18_spill] sm:$0xff] %v7378_v3  ;;  %v2106_v63 = vadd.f32 %v2105_v56, %v2104_v49  ;;  %v2301_v25 = vadd.f32 %v2300_v7, %v2299_v51  ;;  %v7380_v24 = vpop.f32.mrb[55].mxu0  ;;  %v2190_v51 = vmul.f32 %v7378_v3, %v7378_v3  ;;  %v2111_v47 = vsel %vm27_vm0, %v7378_v3, 0.0 }
 0x2e8   :  { %10080 = vst [vmem:[#allocation19_spill] sm:$0xff] %v7380_v24  ;;  %v2302_v40 = vsel %vm27_vm0, %v2187_v8, 0.0  ;;  %v2107_v44 = vsel %vm27_vm0, %v7380_v24, 0.0  ;;  %v2188_v6 = vmul.f32 %v7380_v24, %v7380_v24  ;;  %v2306_v8 = vsel %vm27_vm0, %v2189_v39, 0.0 }
 0x2e9   :  { %v2303_v17 = vadd.f32 %v2302_v40, %v2301_v25  ;;  %v2108_v43 = vadd.f32 %v2107_v44, %v2106_v63  ;;  %v2308_v40 = vsel %vm27_vm0, %v2190_v51, 0.0 }
 0x2ea   :  { %v2304_v49 = vsel %vm27_vm0, %v2188_v6, 0.0 }
 0x2eb   :  { %v2110_v7 = vadd.f32 %v2109_v48, %v2108_v43  ;;  %v2305_v56 = vadd.f32 %v2304_v49, %v2303_v17 }
 0x2ec   :  { %v7397_v9 = vpop.f32.mrb[56].mxu0 }
 0x2ed   :  { %10081 = vst [vmem:[#allocation20_spill] sm:$0xff] %v7397_v9  ;;  %v2307_v24 = vadd.f32 %v2306_v8, %v2305_v56  ;;  %v7399_v25 = vpop.f32.mrb[57].mxu0  ;;  %v2112_v63 = vadd.f32 %v2111_v47, %v2110_v7  ;;  %v2193_v49 = vmul.f32 %v7397_v9, %v7397_v9 }
 0x2ee   :  { %10082 = vst [vmem:[#allocation21_spill] sm:$0xff] %v7399_v25  ;;  %v2113_v44 = vsel %vm27_vm0, %v7399_v25, 0.0  ;;  %v2191_v48 = vmul.f32 %v7399_v25, %v7399_v25  ;;  %v7406_v6 = vpop.f32.mrb[58].mxu0  ;;  %v2117_v25 = vsel %vm27_vm0, %v7397_v9, 0.0 }
 0x2ef   :  { %10083 = vst [vmem:[#allocation22_spill] sm:$0xff] %v7406_v6  ;;  %v2114_v39 = vadd.f32 %v2113_v44, %v2112_v63  ;;  %v2309_v17 = vadd.f32 %v2308_v40, %v2307_v24  ;;  %v7408_v43 = vpop.f32.mrb[59].mxu0  ;;  %v2194_v24 = vmul.f32 %v7406_v6, %v7406_v6  ;;  %v2119_v3 = vsel %vm27_vm0, %v7406_v6, 0.0 }
 0x2f0   :  { %10084 = vst [vmem:[#allocation23_spill] sm:$0xff] %v7408_v43  ;;  %v2310_v56 = vsel %vm27_vm0, %v2191_v48, 0.0  ;;  %v2115_v47 = vsel %vm27_vm0, %v7408_v43, 0.0  ;;  %v2192_v51 = vmul.f32 %v7408_v43, %v7408_v43  ;;  %v2314_v48 = vsel %vm27_vm0, %v2193_v49, 0.0 }
 0x2f1   :  { %v2311_v7 = vadd.f32 %v2310_v56, %v2309_v17  ;;  %v2116_v8 = vadd.f32 %v2115_v47, %v2114_v39  ;;  %v2316_v56 = vsel %vm27_vm0, %v2194_v24, 0.0 }
 0x2f2   :  { %v2312_v63 = vsel %vm27_vm0, %v2192_v51, 0.0 }
 0x2f3   :  { %v2118_v40 = vadd.f32 %v2117_v25, %v2116_v8  ;;  %v2313_v44 = vadd.f32 %v2312_v63, %v2311_v7 }
 0x2f4   :  { %v7425_v1 = vpop.f32.mrb[60].mxu0 }
 0x2f5   :  { %10085 = vst [vmem:[#allocation24_spill] sm:$0xff] %v7425_v1  ;;  %v2315_v43 = vadd.f32 %v2314_v48, %v2313_v44  ;;  %v7427_v17 = vpop.f32.mrb[61].mxu0  ;;  %v2120_v39 = vadd.f32 %v2119_v3, %v2118_v40  ;;  %v2197_v63 = vmul.f32 %v7425_v1, %v7425_v1  ;;  %v2125_v6 = vsel %vm27_vm0, %v7425_v1, 0.0 }
 0x2f6   :  { %10086 = vst [vmem:[#allocation25_spill] sm:$0xff] %v7427_v17  ;;  %v2121_v47 = vsel %vm27_vm0, %v7427_v17, 0.0  ;;  %v2195_v25 = vmul.f32 %v7427_v17, %v7427_v17  ;;  %v7434_v51 = vpop.f32.mrb[62].mxu0 }
 0x2f7   :  { %10087 = vst [vmem:[#allocation26_spill] sm:$0xff] %v7434_v51  ;;  %v2122_v49 = vadd.f32 %v2121_v47, %v2120_v39  ;;  %v2317_v7 = vadd.f32 %v2316_v56, %v2315_v43  ;;  %v1926_v8 = vpop.f32.mrb[63].mxu0  ;;  %v2198_v17 = vmul.f32 %v7434_v51, %v7434_v51  ;;  %v2322_v47 = vsel %vm27_vm0, %v2197_v63, 0.0 }
 0x2f8   :  { %v2318_v44 = vsel %vm27_vm0, %v2195_v25, 0.0  ;;  %v2123_v3 = vsel %vm27_vm0, %v1926_v8, 0.0  ;;  %v2196_v40 = vmul.f32 %v1926_v8, %v1926_v8  ;;  %v2127_v25 = vsel %vm27_vm0, %v7434_v51, 0.0 }
 0x2f9   :  { %v2319_v24 = vadd.f32 %v2318_v44, %v2317_v7  ;;  %v2124_v48 = vadd.f32 %v2123_v3, %v2122_v49  ;;  %v2324_v7 = vsel %vm27_vm0, %v2198_v17, 0.0  ;;  %v2344_v17 = vlaneseq }
 0x2fa   :  { %v2320_v39 = vsel %vm27_vm0, %v2196_v40, 0.0 }
 0x2fb   :  { %v2126_v43 = vadd.f32 %v2125_v6, %v2124_v48  ;;  %v2321_v56 = vadd.f32 %v2320_v39, %v2319_v24 }
 0x2fd   :  { %v2128_v9 = vadd.f32 %v2127_v25, %v2126_v43  ;;  %v2323_v19 = vadd.f32 %v2322_v47, %v2321_v56  ;;  %v2345_v47 = vshrl.u32 %v2344_v17, 7 }
 0x2ff   :  { %v2129_v49 = vrot.slane %v2128_v9, 4  ;;  %v2325_v44 = vadd.f32 %v2324_v7, %v2323_v19  ;;  %v2336_v19 = vld [vmem:[%s10008_s2] sm:$0x1] }
 0x301   :  { %v2130_v3 = vadd.f32 %v2129_v49, %v2128_v9  ;;  %v2326_v1 = vrot.slane %v2325_v44, 4 }
 0x303   :  { %v2131_v31 = vrot.slane %v2130_v3, 2  ;;  %v2327_v0 = vadd.f32 %v2326_v1, %v2325_v44  ;;  %v7452_v1 = vsub.s32 0, %v2345_v47  ;;  %v10095_v47 = vld [vmem:[#allocation11_spill] sm:$0xff] }
 0x305   :  { %v2132_v26 = vadd.f32 %v2131_v31, %v2130_v3  ;;  %v2328_v2 = vrot.slane %v2327_v0, 2  ;;  %10088 = vst [vmem:[#allocation27_spill] sm:$0xff] %v7452_v1 }
 0x307   :  { %v2133_v40 = vrot.slane %v2132_v26, 1  ;;  %v2329_v6 = vadd.f32 %v2328_v2, %v2327_v0  ;;  %v2340_v0 = vld [vmem:[%s10009_s3] sm:$0x1] }
 0x309   :  { %v2134_v24 = vadd.f32 %v2133_v40, %v2132_v26  ;;  %v2330_v48 = vrot.slane %v2329_v6, 1 }
 0x30b   :  { %v2331_v63 = vadd.f32 %v2330_v48, %v2329_v6  ;;  %v2332_v39 = vmul.f32 0.001953125, %v2134_v24  ;;  %v10089_v24 = vld [vmem:[#allocation3_spill] sm:$0xff]  ;;  %v10090_v48 = vld [vmem:[#allocation5_spill] sm:$0xff] }
 0x30d   :  { %v2333_v58 = vmul.f32 0.001953125, %v2331_v63  ;;  %v2334_v51 = vmul.f32 %v2332_v39, %v2332_v39  ;;  %v10091_v63 = vld [vmem:[#allocation7_spill] sm:$0xff] }
 0x30f   :  { %v2335_v43 = vsub.f32 %v2333_v58, %v2334_v51 }
 0x311   :  { %v2337_v56 = vadd.f32 1e-05, %v2335_v43  ;;  %v10093_v43 = vld [vmem:[#allocation6_spill] sm:$0xff] }
 0x313   :  { %6114 = vrsqrt.f32 %v2337_v56  ;;  %v10094_v56 = vld [vmem:[#allocation9_spill] sm:$0xff] }
 0x31d   :  { %v6115_v31 = vpop.eup %6114 }
 0x31e   :  { %v2339_v9 = vmul.f32 %v6115_v31, %v2336_v19  ;;  %v10096_v31 = vld [vmem:[#allocation8_spill] sm:$0xff] }
 0x320   :  { %v2341_v2 = vmul.f32 %v2339_v9, %v2332_v39  ;;  %v7458_v26 = vrot.slane %v2339_v9, %v7452_v1  ;;  %v10092_v39 = vld [vmem:[#allocation4_spill] sm:$0xff] }
 0x322   :  { %v2342_v58 = vsub.f32 %v2340_v0, %v2341_v2  ;;  %v2410_v51 = vmul.f32 %v7458_v26, %v1926_v8  ;;  %v7463_v25 = vmul.f32 %v7458_v26, %v7008_v12  ;;  %v7467_v7 = vmul.f32 %v7458_v26, %v7014_v57  ;;  %v10097_v0 = vld [vmem:[#allocation10_spill] sm:$0xff] }
 0x323   :  { %v7471_v49 = vmul.f32 %v7006_v15, %v7458_v26  ;;  %v7475_v44 = vmul.f32 %v7012_v52, %v7458_v26  ;;  %v7479_v3 = vmul.f32 %v7458_v26, %v7035_v45  ;;  %v7483_v12 = vmul.f32 %v7458_v26, %v7044_v61 }
 0x324   :  { %v7486_v8 = vrot.slane %v2342_v58, %v7452_v1  ;;  %v7490_v57 = vmul.f32 %v7033_v41, %v7458_v26  ;;  %v7494_v15 = vmul.f32 %v7042_v53, %v7458_v26  ;;  %v7498_v52 = vmul.f32 %v7458_v26, %v7063_v23  ;;  %v10098_v58 = vld [vmem:[#allocation13_spill] sm:$0xff] }
 0x325   :  { %v7502_v45 = vmul.f32 %v7458_v26, %v7072_v46  ;;  %v7506_v61 = vmul.f32 %v7061_v22, %v7458_v26  ;;  %v7510_v41 = vmul.f32 %v7070_v34, %v7458_v26  ;;  %v7514_v53 = vmul.f32 %v7458_v26, %v7091_v35  ;;  %v10111_v1 = vld [vmem:[#allocation21_spill] sm:$0xff] }
 0x326   :  { %v2480_v40 = vadd.f32 %v7486_v8, %v2410_v51  ;;  %v7519_v23 = vmul.f32 %v7458_v26, %v7100_v38  ;;  %v7523_v46 = vmul.f32 %v7089_v16, %v7458_v26  ;;  %v7527_v22 = vmul.f32 %v7098_v33, %v7458_v26 }
 0x327   :  { %v7531_v34 = vmul.f32 %v7458_v26, %v7119_v11  ;;  %v7535_v35 = vmul.f32 %v7458_v26, %v7128_v27  ;;  %v7539_v38 = vmul.f32 %v7117_v4, %v7458_v26  ;;  %v7543_v16 = vmul.f32 %v7126_v21, %v7458_v26 }
 0x328   :  { %v2544_v6 = vmax.f32 %v2480_v40, 0.0  ;;  %v7547_v33 = vmul.f32 %v7458_v26, %v7147_v32  ;;  %v7551_v11 = vmul.f32 %v7458_v26, %v7156_v37  ;;  %v7555_v27 = vmul.f32 %v7145_v60, %v7458_v26  ;;  %v10099_v40 = vld [vmem:[#allocation15_spill] sm:$0xff] }
 0x329   :  { %v7559_v4 = vmul.f32 %v7154_v5, %v7458_v26  ;;  %v7563_v21 = vmul.f32 %v7458_v26, %v7175_v18  ;;  %v7567_v32 = vmul.f32 %v7458_v26, %v7184_v42  ;;  %v7571_v37 = vmul.f32 %v7173_v10, %v7458_v26 }
 0x32a   :  { %2608 = vst.msk [vmem:[#allocation2 + $0x430] sm:$0xff] %vm27_vm0, %v2544_v6  ;;  %v7576_v60 = vmul.f32 %v7182_v28, %v7458_v26  ;;  %v7580_v5 = vmul.f32 %v7458_v26, %v7203_v36  ;;  %v7584_v18 = vmul.f32 %v7458_v26, %v7212_v59  ;;  %v7588_v42 = vmul.f32 %v7201_v54, %v7458_v26 }
 0x32b   :  { %v7592_v10 = vmul.f32 %v7210_v50, %v7458_v26  ;;  %v7596_v28 = vmul.f32 %v7458_v26, %v7231_v14  ;;  %v7600_v36 = vmul.f32 %v7458_v26, %v7240_v30  ;;  %v7604_v59 = vmul.f32 %v7229_v62, %v7458_v26 }
 0x32c   :  { %v7608_v54 = vmul.f32 %v7238_v55, %v7458_v26  ;;  %v7612_v50 = vmul.f32 %v7458_v26, %v7259_v20  ;;  %v7616_v14 = vmul.f32 %v7458_v26, %v7268_v29  ;;  %v7620_v30 = vmul.f32 %v7257_v13, %v7458_v26 }
 0x32d   :  { %v7624_v62 = vmul.f32 %v10089_v24, %v7458_v26  ;;  %v7628_v55 = vmul.f32 %v7458_v26, %v10090_v48  ;;  %v7632_v20 = vmul.f32 %v7458_v26, %v10091_v63  ;;  %v7636_v29 = vmul.f32 %v10092_v39, %v7458_v26  ;;  %v10100_v24 = vld [vmem:[#allocation12_spill] sm:$0xff]  ;;  %v10101_v63 = vld [vmem:[#allocation14_spill] sm:$0xff] }
 0x32e   :  { %v7640_v13 = vmul.f32 %v10093_v43, %v7458_v26  ;;  %v7644_v17 = vmul.f32 %v7458_v26, %v10094_v56  ;;  %v7648_v19 = vmul.f32 %v7458_v26, %v10095_v47  ;;  %v7652_v9 = vmul.f32 %v10096_v31, %v7458_v26  ;;  %v10103_v43 = vld [vmem:[#allocation17_spill] sm:$0xff]  ;;  %v10105_v47 = vld [vmem:[#allocation19_spill] sm:$0xff] }
 0x32f   :  { %v7656_v2 = vmul.f32 %v10097_v0, %v7458_v26  ;;  %v7660_v51 = vmul.f32 %v7458_v26, %v10098_v58  ;;  %v7664_v6 = vmul.f32 %v7458_v26, %v10099_v40  ;;  %v7668_v48 = vmul.f32 %v10100_v24, %v7458_v26  ;;  %v10107_v0 = vld [vmem:[#allocation16_spill] sm:$0xff]  ;;  %v10109_v40 = vld [vmem:[#allocation18_spill] sm:$0xff] }
 0x330   :  { %v7672_v39 = vmul.f32 %v10101_v63, %v7458_v26  ;;  %v7676_v56 = vmul.f32 %v7458_v26, %v10103_v43  ;;  %v7680_v31 = vmul.f32 %v7458_v26, %v10105_v47  ;;  %v7684_v58 = vmul.f32 %v10107_v0, %v7458_v26 }
 0x331   :  { %v7688_v24 = vmul.f32 %v10109_v40, %v7458_v26  ;;  %v7692_v63 = vmul.f32 %v7458_v26, %v10111_v1 }
 0x332   :  { %10102 = vst [vmem:[#allocation3_spill] sm:$0xff] %v7672_v39  ;;  %10104 = vst [vmem:[#allocation5_spill] sm:$0xff] %v7676_v56  ;;  %v10113_v39 = vld [vmem:[#allocation23_spill] sm:$0xff]  ;;  %v10114_v56 = vld [vmem:[#allocation20_spill] sm:$0xff] }
 0x333   :  { %10106 = vst [vmem:[#allocation7_spill] sm:$0xff] %v7680_v31  ;;  %10108 = vst [vmem:[#allocation4_spill] sm:$0xff] %v7684_v58  ;;  %v7696_v43 = vmul.f32 %v7458_v26, %v10113_v39  ;;  %v7700_v47 = vmul.f32 %v10114_v56, %v7458_v26  ;;  %v10116_v31 = vld [vmem:[#allocation22_spill] sm:$0xff]  ;;  %v10117_v58 = vld [vmem:[#allocation25_spill] sm:$0xff]  ;;  %v2421_v56 = vadd.f32 %v7486_v8, %v7471_v49 }
 0x334   :  { %10110 = vst [vmem:[#allocation6_spill] sm:$0xff] %v7688_v24  ;;  %10112 = vst [vmem:[#allocation9_spill] sm:$0xff] %v7692_v63  ;;  %v7704_v0 = vmul.f32 %v10116_v31, %v7458_v26  ;;  %v7708_v40 = vmul.f32 %v7458_v26, %v10117_v58  ;;  %v10118_v24 = vld [vmem:[#allocation24_spill] sm:$0xff]  ;;  %v10119_v63 = vld [vmem:[#allocation26_spill] sm:$0xff]  ;;  %v7724_v31 = vadd.f32 %v7486_v8, %v7463_v25 }
 0x335   :  { %10115 = vst [vmem:[#allocation11_spill] sm:$0xff] %v7700_v47  ;;  %v7712_v1 = vmul.f32 %v10118_v24, %v7458_v26  ;;  %v7716_v39 = vmul.f32 %v10119_v63, %v7458_v26  ;;  %v2422_v47 = vadd.f32 %v7486_v8, %v7475_v44  ;;  %v7728_v58 = vadd.f32 %v7486_v8, %v7467_v7 }
 0x336   :  { %v7732_v24 = vadd.f32 %v7486_v8, %v7479_v3  ;;  %v7736_v26 = vadd.f32 %v7486_v8, %v7483_v12  ;;  %v7740_v49 = vadd.f32 %v7486_v8, %v7490_v57  ;;  %v7744_v25 = vadd.f32 %v7486_v8, %v7494_v15 }
 0x337   :  { %v2485_v44 = vmax.f32 %v2421_v56, 0.0  ;;  %v2486_v63 = vmax.f32 %v2422_v47, 0.0  ;;  %v7748_v7 = vadd.f32 %v7486_v8, %v7498_v52  ;;  %v7752_v3 = vadd.f32 %v7486_v8, %v7502_v45 }
 0x338   :  { %v7756_v12 = vadd.f32 %v7486_v8, %v7506_v61  ;;  %v7760_v57 = vadd.f32 %v7486_v8, %v7510_v41  ;;  %v7764_v15 = vadd.f32 %v7486_v8, %v7514_v53  ;;  %v7768_v52 = vadd.f32 %v7486_v8, %v7519_v23 }
 0x339   :  { %2549 = vst.msk [vmem:[#allocation2 + $0x48] sm:$0xff] %vm27_vm0, %v2485_v44  ;;  %2550 = vst.msk [vmem:[#allocation2 + $0x50] sm:$0xff] %vm27_vm0, %v2486_v63  ;;  %v7774_v45 = vadd.f32 %v7486_v8, %v7523_v46  ;;  %v7778_v61 = vadd.f32 %v7486_v8, %v7527_v22  ;;  %v7782_v41 = vadd.f32 %v7486_v8, %v7531_v34  ;;  %v10122_v63 = vld [vmem:[#allocation3_spill] sm:$0xff] }
 0x33a   :  { %v7786_v53 = vadd.f32 %v7486_v8, %v7535_v35  ;;  %v7790_v23 = vadd.f32 %v7486_v8, %v7539_v38  ;;  %v7794_v46 = vadd.f32 %v7486_v8, %v7543_v16  ;;  %v7798_v22 = vadd.f32 %v7486_v8, %v7547_v33 }
 0x33b   :  { %v7802_v34 = vadd.f32 %v7486_v8, %v7551_v11  ;;  %v7806_v35 = vadd.f32 %v7486_v8, %v7555_v27  ;;  %v7810_v38 = vadd.f32 %v7486_v8, %v7559_v4  ;;  %v7814_v16 = vadd.f32 %v7486_v8, %v7563_v21 }
 0x33c   :  { %v7818_v33 = vadd.f32 %v7486_v8, %v7567_v32  ;;  %v7822_v11 = vadd.f32 %v7486_v8, %v7571_v37  ;;  %v7826_v27 = vadd.f32 %v7486_v8, %v7576_v60  ;;  %v7830_v4 = vadd.f32 %v7486_v8, %v7580_v5 }
 0x33d   :  { %v7834_v21 = vadd.f32 %v7486_v8, %v7584_v18  ;;  %v7838_v32 = vadd.f32 %v7486_v8, %v7588_v42  ;;  %v7842_v37 = vadd.f32 %v7486_v8, %v7592_v10  ;;  %v7846_v60 = vadd.f32 %v7486_v8, %v7596_v28 }
 0x33e   :  { %v7850_v5 = vadd.f32 %v7486_v8, %v7600_v36  ;;  %v7854_v18 = vadd.f32 %v7486_v8, %v7604_v59  ;;  %v7858_v42 = vadd.f32 %v7486_v8, %v7608_v54  ;;  %v7862_v10 = vadd.f32 %v7486_v8, %v7612_v50 }
 0x33f   :  { %v7866_v28 = vadd.f32 %v7486_v8, %v7616_v14  ;;  %v7870_v36 = vadd.f32 %v7486_v8, %v7620_v30  ;;  %v7874_v59 = vadd.f32 %v7486_v8, %v7624_v62  ;;  %v7878_v54 = vadd.f32 %v7486_v8, %v7628_v55 }
 0x340   :  { %v7882_v50 = vadd.f32 %v7486_v8, %v7632_v20  ;;  %v2723_v47 = vld [vmem:[#allocation2 + $0x48] sm:$0xff]  ;;  %v2724_v56 = vld [vmem:[#allocation2 + $0x50] sm:$0xff]  ;;  %v7886_v14 = vadd.f32 %v7486_v8, %v7636_v29  ;;  %v7890_v30 = vadd.f32 %v7486_v8, %v7640_v13  ;;  %v7894_v62 = vadd.f32 %v7486_v8, %v7644_v17 }
 0x341   :  { %v7898_v55 = vadd.f32 %v7486_v8, %v7648_v19  ;;  %v2793_v20 = vpack.c.bf16 %v2724_v56, %v2723_v47  ;;  %v7902_v44 = vadd.f32 %v7486_v8, %v7652_v9  ;;  %v7906_v29 = vadd.f32 %v7486_v8, %v7656_v2  ;;  %v10124_v47 = vld [vmem:[#allocation5_spill] sm:$0xff] }
 0x342   :  { %v7910_v13 = vadd.f32 %v7486_v8, %v7660_v51  ;;  %v7914_v17 = vadd.f32 %v7486_v8, %v7664_v6  ;;  %v7918_v19 = vadd.f32 %v7486_v8, %v7668_v48  ;;  %v7922_v9 = vadd.f32 %v7486_v8, %v10122_v63  ;;  %v10125_v51 = vld [vmem:[#allocation7_spill] sm:$0xff]  ;;  %v10126_v6 = vld [vmem:[#allocation4_spill] sm:$0xff]  ;;  %v10127_v48 = vld [vmem:[#allocation6_spill] sm:$0xff] }
 0x343   :  { %v7926_v2 = vadd.f32 %v7486_v8, %v10124_v47  ;;  %2975 = vrot.lane.b32.xlu1 %v2793_v20, %s6120_s27  ;;  %v7931_v56 = vadd.f32 %v7486_v8, %v10125_v51  ;;  %v10128_v63 = vld [vmem:[#allocation9_spill] sm:$0xff]  ;;  %v7947_v47 = vadd.f32 %v7486_v8, %v7696_v43  ;;  %v10130_v20 = vld [vmem:[#allocation11_spill] sm:$0xff]  ;;  %v7967_v43 = vadd.f32 %v7486_v8, %v7716_v39 }
 0x344   :  { %10120 = vst [vmem:[#allocation8_spill] sm:$0xff] %v7914_v17  ;;  %10121 = vst [vmem:[#allocation10_spill] sm:$0xff] %v7918_v19  ;;  %v7935_v17 = vadd.f32 %v7486_v8, %v10126_v6  ;;  %v7939_v19 = vadd.f32 %v7486_v8, %v10127_v48  ;;  %v7951_v51 = vadd.f32 %v7486_v8, %v10130_v20  ;;  %v2484_v20 = vmax.f32 %v7728_v58, 0.0 }
 0x345   :  { %10123 = vst [vmem:[#allocation13_spill] sm:$0xff] %v7922_v9  ;;  %v7943_v9 = vadd.f32 %v7486_v8, %v10128_v63  ;;  %10129 = vst [vmem:[#allocation15_spill] sm:$0xff] %v7947_v47  ;;  %v7955_v6 = vadd.f32 %v7486_v8, %v7704_v0  ;;  %v7959_v48 = vadd.f32 %v7486_v8, %v7708_v40  ;;  %v2483_v47 = vmax.f32 %v7724_v31, 0.0 }
 0x346   :  { %10131 = vst [vmem:[#allocation12_spill] sm:$0xff] %v7951_v51  ;;  %v7963_v63 = vadd.f32 %v7486_v8, %v7712_v1  ;;  %v2487_v51 = vmax.f32 %v7732_v24, 0.0  ;;  %v2488_v0 = vmax.f32 %v7736_v26, 0.0  ;;  %v2490_v40 = vmax.f32 %v7744_v25, 0.0  ;;  %v7978_v1 = vld [vmem:[%s10010_s4 + $0x8] sm:$0x3f]  }
 0x347   :  { %10132 = vst [vmem:[#allocation14_spill] sm:$0xff] %v7955_v6  ;;  %v2489_v6 = vmax.f32 %v7740_v49, 0.0  ;;  %2547 = vst.msk [vmem:[#allocation2 + $0x28] sm:$0xff] %vm27_vm0, %v2483_v47  ;;  %v2491_v8 = vmax.f32 %v7748_v7, 0.0  ;;  %v2492_v39 = vmax.f32 %v7752_v3, 0.0  ;;  %v2493_v31 = vmax.f32 %v7756_v12, 0.0  ;;  %6102 = vmatprep.subr.msk.bf16.mxu1 %vm1040_vm3, %v7978_v1 }
 0x348   :  { %2548 = vst.msk [vmem:[#allocation2 + $0x30] sm:$0xff] %vm27_vm0, %v2484_v20  ;;  %v2494_v58 = vmax.f32 %v7760_v57, 0.0  ;;  %v2495_v24 = vmax.f32 %v7764_v15, 0.0  ;;  %v2496_v26 = vmax.f32 %v7768_v52, 0.0  ;;  %v2497_v49 = vmax.f32 %v7774_v45, 0.0  ;;  %2551 = vst.msk [vmem:[#allocation2 + $0x68] sm:$0xff] %vm27_vm0, %v2487_v51 }
 0x349   :  { %v2498_v25 = vmax.f32 %v7778_v61, 0.0  ;;  %2552 = vst.msk [vmem:[#allocation2 + $0x70] sm:$0xff] %vm27_vm0, %v2488_v0  ;;  %2553 = vst.msk [vmem:[#allocation2 + $0x88] sm:$0xff] %vm27_vm0, %v2489_v6  ;;  %v2499_v7 = vmax.f32 %v7782_v41, 0.0  ;;  %v2500_v3 = vmax.f32 %v7786_v53, 0.0  ;;  %v2501_v12 = vmax.f32 %v7790_v23, 0.0 }
 0x34a   :  { %2554 = vst.msk [vmem:[#allocation2 + $0x90] sm:$0xff] %vm27_vm0, %v2490_v40  ;;  %v2502_v57 = vmax.f32 %v7794_v46, 0.0  ;;  %2555 = vst.msk [vmem:[#allocation2 + $0xa8] sm:$0xff] %vm27_vm0, %v2491_v8  ;;  %v2503_v15 = vmax.f32 %v7798_v22, 0.0  ;;  %v2504_v52 = vmax.f32 %v7802_v34, 0.0  ;;  %v2505_v45 = vmax.f32 %v7806_v35, 0.0 }
 0x34b   :  { %2556 = vst.msk [vmem:[#allocation2 + $0xb0] sm:$0xff] %vm27_vm0, %v2492_v39  ;;  %2557 = vst.msk [vmem:[#allocation2 + $0xc8] sm:$0xff] %vm27_vm0, %v2493_v31  ;;  %v2506_v61 = vmax.f32 %v7810_v38, 0.0  ;;  %v2507_v41 = vmax.f32 %v7814_v16, 0.0  ;;  %v2508_v53 = vmax.f32 %v7818_v33, 0.0  ;;  %v2509_v23 = vmax.f32 %v7822_v11, 0.0 }
 0x34c   :  { %2558 = vst.msk [vmem:[#allocation2 + $0xd0] sm:$0xff] %vm27_vm0, %v2494_v58  ;;  %2559 = vst.msk [vmem:[#allocation2 + $0xe8] sm:$0xff] %vm27_vm0, %v2495_v24  ;;  %v2510_v46 = vmax.f32 %v7826_v27, 0.0  ;;  %v2511_v22 = vmax.f32 %v7830_v4, 0.0  ;;  %v2512_v34 = vmax.f32 %v7834_v21, 0.0  ;;  %v2513_v35 = vmax.f32 %v7838_v32, 0.0 }
 0x34d   :  { %2560 = vst.msk [vmem:[#allocation2 + $0xf0] sm:$0xff] %vm27_vm0, %v2496_v26  ;;  %2561 = vst.msk [vmem:[#allocation2 + $0x108] sm:$0xff] %vm27_vm0, %v2497_v49  ;;  %v2514_v38 = vmax.f32 %v7842_v37, 0.0  ;;  %v2515_v16 = vmax.f32 %v7846_v60, 0.0  ;;  %v2516_v33 = vmax.f32 %v7850_v5, 0.0  ;;  %v2517_v11 = vmax.f32 %v7854_v18, 0.0 }
 0x34e   :  { %2562 = vst.msk [vmem:[#allocation2 + $0x110] sm:$0xff] %vm27_vm0, %v2498_v25  ;;  %2563 = vst.msk [vmem:[#allocation2 + $0x128] sm:$0xff] %vm27_vm0, %v2499_v7  ;;  %v2518_v27 = vmax.f32 %v7858_v42, 0.0  ;;  %v2721_v4 = vld [vmem:[#allocation2 + $0x28] sm:$0xff]  ;;  %v2519_v32 = vmax.f32 %v7862_v10, 0.0  ;;  %v2520_v37 = vmax.f32 %v7866_v28, 0.0 }
 0x34f   :  { %2564 = vst.msk [vmem:[#allocation2 + $0x130] sm:$0xff] %vm27_vm0, %v2500_v3  ;;  %2565 = vst.msk [vmem:[#allocation2 + $0x148] sm:$0xff] %vm27_vm0, %v2501_v12  ;;  %v2722_v21 = vld [vmem:[#allocation2 + $0x30] sm:$0xff]  ;;  %v2521_v60 = vmax.f32 %v7870_v36, 0.0  ;;  %v2522_v5 = vmax.f32 %v7874_v59, 0.0  ;;  %v2523_v42 = vmax.f32 %v7878_v54, 0.0 }
 0x350   :  { %2566 = vst.msk [vmem:[#allocation2 + $0x150] sm:$0xff] %vm27_vm0, %v2502_v57  ;;  %2567 = vst.msk [vmem:[#allocation2 + $0x168] sm:$0xff] %vm27_vm0, %v2503_v15  ;;  %v2792_v18 = vpack.c.bf16 %v2722_v21, %v2721_v4  ;;  %v2524_v47 = vmax.f32 %v7882_v50, 0.0  ;;  %v2525_v10 = vmax.f32 %v7886_v14, 0.0  ;;  %v2526_v28 = vmax.f32 %v7890_v30, 0.0  ;;  %v10133_v30 = vld [vmem:[#allocation8_spill] sm:$0xff] }
 0x351   :  { %2568 = vst.msk [vmem:[#allocation2 + $0x170] sm:$0xff] %vm27_vm0, %v2504_v52  ;;  %2569 = vst.msk [vmem:[#allocation2 + $0x188] sm:$0xff] %vm27_vm0, %v2505_v45  ;;  %v2527_v36 = vmax.f32 %v7894_v62, 0.0  ;;  %v2528_v59 = vmax.f32 %v7898_v55, 0.0  ;;  %v2529_v54 = vmax.f32 %v7902_v44, 0.0  ;;  %v2530_v50 = vmax.f32 %v7906_v29, 0.0 }
 0x352   :  { %2570 = vst.msk [vmem:[#allocation2 + $0x190] sm:$0xff] %vm27_vm0, %v2506_v61  ;;  %2571 = vst.msk [vmem:[#allocation2 + $0x1a8] sm:$0xff] %vm27_vm0, %v2507_v41  ;;  %2973 = vrot.lane.b32.xlu0 %v2792_v18, %s6120_s27  ;;  %v2531_v14 = vmax.f32 %v7910_v13, 0.0  ;;  %v2532_v62 = vmax.f32 %v10133_v30, 0.0  ;;  %v10134_v51 = vld [vmem:[#allocation10_spill] sm:$0xff]  ;;  %v2831_v6 = vld [vmem:[#allocation2 + $0x49] sm:$0xff] }
 0x353   :  { %2572 = vst.msk [vmem:[#allocation2 + $0x1b0] sm:$0xff] %vm27_vm0, %v2508_v53  ;;  %2573 = vst.msk [vmem:[#allocation2 + $0x1c8] sm:$0xff] %vm27_vm0, %v2509_v23  ;;  %v2533_v55 = vmax.f32 %v10134_v51, 0.0  ;;  %v2832_v44 = vld [vmem:[#allocation2 + $0x51] sm:$0xff]  ;;  %v2535_v40 = vmax.f32 %v7926_v2, 0.0  ;;  %v2536_v29 = vmax.f32 %v7931_v56, 0.0 }
 0x354   :  { %2574 = vst.msk [vmem:[#allocation2 + $0x1d0] sm:$0xff] %vm27_vm0, %v2510_v46  ;;  %2575 = vst.msk [vmem:[#allocation2 + $0x1e8] sm:$0xff] %vm27_vm0, %v2511_v22  ;;  %v10135_v20 = vld [vmem:[#allocation13_spill] sm:$0xff]  ;;  %v2537_v13 = vmax.f32 %v7935_v17, 0.0  ;;  %v2538_v31 = vmax.f32 %v7939_v19, 0.0  ;;  %v2539_v58 = vmax.f32 %v7943_v9, 0.0  ;;  %v2901_v7 = vpack.c.bf16 %v2832_v44, %v2831_v6 }
 0x355   :  { %2576 = vst.msk [vmem:[#allocation2 + $0x1f0] sm:$0xff] %vm27_vm0, %v2512_v34  ;;  %2577 = vst.msk [vmem:[#allocation2 + $0x208] sm:$0xff] %vm27_vm0, %v2513_v35  ;;  %v2534_v0 = vmax.f32 %v10135_v20, 0.0  ;;  %v2829_v8 = vld [vmem:[#allocation2 + $0x29] sm:$0xff]  ;;  %v2830_v39 = vld [vmem:[#allocation2 + $0x31] sm:$0xff]  ;;  %v2543_v25 = vmax.f32 %v7959_v48, 0.0 }
 0x356   :  { %2578 = vst.msk [vmem:[#allocation2 + $0x210] sm:$0xff] %vm27_vm0, %v2514_v38  ;;  %2579 = vst.msk [vmem:[#allocation2 + $0x268] sm:$0xff] %vm27_vm0, %v2515_v16  ;;  %v10136_v24 = vld [vmem:[#allocation15_spill] sm:$0xff]  ;;  %v10137_v26 = vld [vmem:[#allocation12_spill] sm:$0xff]  ;;  %v2545_v19 = vmax.f32 %v7963_v63, 0.0  ;;  %v2546_v9 = vmax.f32 %v7967_v43, 0.0  ;;  %v2900_v48 = vpack.c.bf16 %v2830_v39, %v2829_v8  ;;  %3083 = vrot.lane.b32.xlu1 %v2901_v7, %s6119_s26 }
 0x357   :  { %2580 = vst.msk [vmem:[#allocation2 + $0x270] sm:$0xff] %vm27_vm0, %v2516_v33  ;;  %2581 = vst.msk [vmem:[#allocation2 + $0x288] sm:$0xff] %vm27_vm0, %v2517_v11  ;;  %v2540_v2 = vmax.f32 %v10136_v24, 0.0  ;;  %v2541_v56 = vmax.f32 %v10137_v26, 0.0  ;;  %v10138_v17 = vld [vmem:[#allocation14_spill] sm:$0xff]  ;;  %v2727_v63 = vld [vmem:[#allocation2 + $0x88] sm:$0xff] }
 0x358   :  { %2582 = vst.msk [vmem:[#allocation2 + $0x290] sm:$0xff] %vm27_vm0, %v2518_v27  ;;  %2583 = vst.msk [vmem:[#allocation2 + $0x2a8] sm:$0xff] %vm27_vm0, %v2519_v32  ;;  %v2542_v49 = vmax.f32 %v10138_v17, 0.0  ;;  %v8098_v43 = vld [vmem:[%s10010_s4] sm:$0x3f]   ;;  %v2728_v3 = vld [vmem:[#allocation2 + $0x90] sm:$0xff]  ;;  %3081 = vrot.lane.b32.xlu0 %v2900_v48, %s6119_s26 }
 0x359   :  { %2584 = vst.msk [vmem:[#allocation2 + $0x2b0] sm:$0xff] %vm27_vm0, %v2520_v37  ;;  %2585 = vst.msk [vmem:[#allocation2 + $0x2c8] sm:$0xff] %vm27_vm0, %v2521_v60  ;;  %v2725_v12 = vld [vmem:[#allocation2 + $0x68] sm:$0xff]  ;;  %v2726_v57 = vld [vmem:[#allocation2 + $0x70] sm:$0xff]  ;;  %v3406_v15 = vsel %vm1040_vm3, %v7978_v1, 0  ;;  %v2795_v52 = vpack.c.bf16 %v2728_v3, %v2727_v63 }
 0x35a   :  { %2586 = vst.msk [vmem:[#allocation2 + $0x2d0] sm:$0xff] %vm27_vm0, %v2522_v5  ;;  %2587 = vst.msk [vmem:[#allocation2 + $0x2e8] sm:$0xff] %vm27_vm0, %v2523_v42  ;;  %5646 = vmatpush3.bf16.msra.mxu1 %v3406_v15  ;;  %v2794_v45 = vpack.c.bf16 %v2726_v57, %v2725_v12  ;;  %v2835_v61 = vld [vmem:[#allocation2 + $0x89] sm:$0xff]  ;;  %v2836_v41 = vld [vmem:[#allocation2 + $0x91] sm:$0xff] }
 0x35b   :  { %2588 = vst.msk [vmem:[#allocation2 + $0x2f0] sm:$0xff] %vm27_vm0, %v2524_v47  ;;  %2589 = vst.msk [vmem:[#allocation2 + $0x308] sm:$0xff] %vm27_vm0, %v2525_v10  ;;  %6103 = vmatprep.subr.msk.bf16.mxu1 %vm1040_vm3, %v8098_v43  ;;  %v2833_v53 = vld [vmem:[#allocation2 + $0x69] sm:$0xff]  ;;  %v2834_v23 = vld [vmem:[#allocation2 + $0x71] sm:$0xff]  ;;  %2979 = vrot.lane.b32.xlu1 %v2795_v52, %s6120_s27  ;;  %v2903_v46 = vpack.c.bf16 %v2836_v41, %v2835_v61 }
 0x35c   :  { %2590 = vst.msk [vmem:[#allocation2 + $0x310] sm:$0xff] %vm27_vm0, %v2526_v28  ;;  %2591 = vst.msk [vmem:[#allocation2 + $0x328] sm:$0xff] %vm27_vm0, %v2527_v36  ;;  %2977 = vrot.lane.b32.xlu0 %v2794_v45, %s6120_s27  ;;  %v2902_v22 = vpack.c.bf16 %v2834_v23, %v2833_v53  ;;  %v2731_v34 = vld [vmem:[#allocation2 + $0xc8] sm:$0xff]  ;;  %v2732_v35 = vld [vmem:[#allocation2 + $0xd0] sm:$0xff] }
 0x35d   :  { %2592 = vst.msk [vmem:[#allocation2 + $0x330] sm:$0xff] %vm27_vm0, %v2528_v59  ;;  %2593 = vst.msk [vmem:[#allocation2 + $0x348] sm:$0xff] %vm27_vm0, %v2529_v54  ;;  %v2729_v38 = vld [vmem:[#allocation2 + $0xa8] sm:$0xff]  ;;  %v2730_v1 = vld [vmem:[#allocation2 + $0xb0] sm:$0xff]  ;;  %v2797_v16 = vpack.c.bf16 %v2732_v35, %v2731_v34 }
 0x35e   :  { %2594 = vst.msk [vmem:[#allocation2 + $0x350] sm:$0xff] %vm27_vm0, %v2530_v50  ;;  %2595 = vst.msk [vmem:[#allocation2 + $0x368] sm:$0xff] %vm27_vm0, %v2531_v14  ;;  %v2796_v33 = vpack.c.bf16 %v2730_v1, %v2729_v38  ;;  %v2839_v11 = vld [vmem:[#allocation2 + $0xc9] sm:$0xff]  ;;  %v2840_v27 = vld [vmem:[#allocation2 + $0xd1] sm:$0xff] }
 0x35f   :  { %2596 = vst.msk [vmem:[#allocation2 + $0x370] sm:$0xff] %vm27_vm0, %v2532_v62  ;;  %2597 = vst.msk [vmem:[#allocation2 + $0x388] sm:$0xff] %vm27_vm0, %v2533_v55  ;;  %3087 = vrot.lane.b32.xlu1 %v2903_v46, %s6119_s26  ;;  %v2837_v4 = vld [vmem:[#allocation2 + $0xa9] sm:$0xff]  ;;  %v2838_v21 = vld [vmem:[#allocation2 + $0xb1] sm:$0xff]  ;;  %v2905_v32 = vpack.c.bf16 %v2840_v27, %v2839_v11 }
 0x360   :  { %2598 = vst.msk [vmem:[#allocation2 + $0x390] sm:$0xff] %vm27_vm0, %v2534_v0  ;;  %2599 = vst.msk [vmem:[#allocation2 + $0x3a8] sm:$0xff] %vm27_vm0, %v2535_v40  ;;  %3085 = vrot.lane.b32.xlu0 %v2902_v22, %s6119_s26  ;;  %v2904_v37 = vpack.c.bf16 %v2838_v21, %v2837_v4  ;;  %v2735_v60 = vld [vmem:[#allocation2 + $0x108] sm:$0xff]  ;;  %v2736_v5 = vld [vmem:[#allocation2 + $0x110] sm:$0xff] }
 0x361   :  { %2600 = vst.msk [vmem:[#allocation2 + $0x3b0] sm:$0xff] %vm27_vm0, %v2536_v29  ;;  %2601 = vst.msk [vmem:[#allocation2 + $0x3c8] sm:$0xff] %vm27_vm0, %v2537_v13  ;;  %v2733_v18 = vld [vmem:[#allocation2 + $0xe8] sm:$0xff]  ;;  %v2734_v42 = vld [vmem:[#allocation2 + $0xf0] sm:$0xff]  ;;  %v2799_v47 = vpack.c.bf16 %v2736_v5, %v2735_v60 }
 0x362   :  { %2602 = vst.msk [vmem:[#allocation2 + $0x3d0] sm:$0xff] %vm27_vm0, %v2538_v31  ;;  %2603 = vst.msk [vmem:[#allocation2 + $0x3e8] sm:$0xff] %vm27_vm0, %v2539_v58  ;;  %v2798_v10 = vpack.c.bf16 %v2734_v42, %v2733_v18  ;;  %v2843_v28 = vld [vmem:[#allocation2 + $0x109] sm:$0xff]  ;;  %v2844_v36 = vld [vmem:[#allocation2 + $0x111] sm:$0xff] }
 0x363   :  { %2604 = vst.msk [vmem:[#allocation2 + $0x3f0] sm:$0xff] %vm27_vm0, %v2540_v2  ;;  %2605 = vst.msk [vmem:[#allocation2 + $0x408] sm:$0xff] %vm27_vm0, %v2541_v56  ;;  %2983 = vrot.lane.b32.xlu1 %v2797_v16, %s6120_s27  ;;  %v2841_v59 = vld [vmem:[#allocation2 + $0xe9] sm:$0xff]  ;;  %v2842_v54 = vld [vmem:[#allocation2 + $0xf1] sm:$0xff]  ;;  %v2907_v50 = vpack.c.bf16 %v2844_v36, %v2843_v28 }
 0x364   :  { %2606 = vst.msk [vmem:[#allocation2 + $0x410] sm:$0xff] %vm27_vm0, %v2542_v49  ;;  %2607 = vst.msk [vmem:[#allocation2 + $0x428] sm:$0xff] %vm27_vm0, %v2543_v25  ;;  %2981 = vrot.lane.b32.xlu0 %v2796_v33, %s6120_s27  ;;  %v2906_v14 = vpack.c.bf16 %v2842_v54, %v2841_v59  ;;  %v2739_v30 = vld [vmem:[#allocation2 + $0x148] sm:$0xff]  ;;  %v2740_v62 = vld [vmem:[#allocation2 + $0x150] sm:$0xff] }
 0x365   :  { %2609 = vst.msk [vmem:[#allocation2 + $0x448] sm:$0xff] %vm27_vm0, %v2545_v19  ;;  %2610 = vst.msk [vmem:[#allocation2 + $0x450] sm:$0xff] %vm27_vm0, %v2546_v9  ;;  %v2737_v51 = vld [vmem:[#allocation2 + $0x128] sm:$0xff]  ;;  %v2738_v55 = vld [vmem:[#allocation2 + $0x130] sm:$0xff]  ;;  %v2801_v6 = vpack.c.bf16 %v2740_v62, %v2739_v30 }
 0x366   :  { %v2800_v44 = vpack.c.bf16 %v2738_v55, %v2737_v51  ;;  %v2847_v20 = vld [vmem:[#allocation2 + $0x149] sm:$0xff]  ;;  %v2848_v0 = vld [vmem:[#allocation2 + $0x151] sm:$0xff] }
 0x367   :  { %3091 = vrot.lane.b32.xlu1 %v2905_v32, %s6119_s26  ;;  %v2845_v40 = vld [vmem:[#allocation2 + $0x129] sm:$0xff]  ;;  %v2846_v29 = vld [vmem:[#allocation2 + $0x131] sm:$0xff]  ;;  %v2909_v13 = vpack.c.bf16 %v2848_v0, %v2847_v20 }
 0x368   :  { %3089 = vrot.lane.b32.xlu0 %v2904_v37, %s6119_s26  ;;  %v2908_v8 = vpack.c.bf16 %v2846_v29, %v2845_v40  ;;  %v2743_v39 = vld [vmem:[#allocation2 + $0x188] sm:$0xff]  ;;  %v2744_v31 = vld [vmem:[#allocation2 + $0x190] sm:$0xff] }
 0x369   :  { %v2741_v58 = vld [vmem:[#allocation2 + $0x168] sm:$0xff]  ;;  %v2742_v24 = vld [vmem:[#allocation2 + $0x170] sm:$0xff]  ;;  %v2803_v2 = vpack.c.bf16 %v2744_v31, %v2743_v39 }
 0x36a   :  { %v2802_v26 = vpack.c.bf16 %v2742_v24, %v2741_v58  ;;  %v2851_v56 = vld [vmem:[#allocation2 + $0x189] sm:$0xff]  ;;  %v2852_v17 = vld [vmem:[#allocation2 + $0x191] sm:$0xff] }
 0x36b   :  { %2987 = vrot.lane.b32.xlu1 %v2799_v47, %s6120_s27  ;;  %v2849_v49 = vld [vmem:[#allocation2 + $0x169] sm:$0xff]  ;;  %v2850_v25 = vld [vmem:[#allocation2 + $0x171] sm:$0xff]  ;;  %v2911_v19 = vpack.c.bf16 %v2852_v17, %v2851_v56 }
 0x36c   :  { %2985 = vrot.lane.b32.xlu0 %v2798_v10, %s6120_s27  ;;  %v2910_v9 = vpack.c.bf16 %v2850_v25, %v2849_v49  ;;  %v2747_v7 = vld [vmem:[#allocation2 + $0x1c8] sm:$0xff]  ;;  %v2748_v48 = vld [vmem:[#allocation2 + $0x1d0] sm:$0xff] }
 0x36d   :  { %v2745_v63 = vld [vmem:[#allocation2 + $0x1a8] sm:$0xff]  ;;  %v2746_v3 = vld [vmem:[#allocation2 + $0x1b0] sm:$0xff]  ;;  %v2805_v12 = vpack.c.bf16 %v2748_v48, %v2747_v7 }
 0x36e   :  { %v2804_v57 = vpack.c.bf16 %v2746_v3, %v2745_v63  ;;  %v2855_v15 = vld [vmem:[#allocation2 + $0x1c9] sm:$0xff]  ;;  %v2856_v52 = vld [vmem:[#allocation2 + $0x1d1] sm:$0xff] }
 0x36f   :  { %3095 = vrot.lane.b32.xlu1 %v2907_v50, %s6119_s26  ;;  %v2853_v45 = vld [vmem:[#allocation2 + $0x1a9] sm:$0xff]  ;;  %v2854_v61 = vld [vmem:[#allocation2 + $0x1b1] sm:$0xff]  ;;  %v2913_v41 = vpack.c.bf16 %v2856_v52, %v2855_v15 }
 0x370   :  { %3093 = vrot.lane.b32.xlu0 %v2906_v14, %s6119_s26  ;;  %v2912_v53 = vpack.c.bf16 %v2854_v61, %v2853_v45  ;;  %v2751_v23 = vld [vmem:[#allocation2 + $0x208] sm:$0xff]  ;;  %v2752_v46 = vld [vmem:[#allocation2 + $0x210] sm:$0xff] }
 0x371   :  { %v2749_v22 = vld [vmem:[#allocation2 + $0x1e8] sm:$0xff]  ;;  %v2750_v34 = vld [vmem:[#allocation2 + $0x1f0] sm:$0xff]  ;;  %v2807_v35 = vpack.c.bf16 %v2752_v46, %v2751_v23 }
 0x372   :  { %v2806_v38 = vpack.c.bf16 %v2750_v34, %v2749_v22  ;;  %v2859_v1 = vld [vmem:[#allocation2 + $0x209] sm:$0xff]  ;;  %v2860_v16 = vld [vmem:[#allocation2 + $0x211] sm:$0xff] }
 0x373   :  { %2991 = vrot.lane.b32.xlu1 %v2801_v6, %s6120_s27  ;;  %v2857_v33 = vld [vmem:[#allocation2 + $0x1e9] sm:$0xff]  ;;  %v2858_v11 = vld [vmem:[#allocation2 + $0x1f1] sm:$0xff]  ;;  %v2915_v27 = vpack.c.bf16 %v2860_v16, %v2859_v1 }
 0x374   :  { %2989 = vrot.lane.b32.xlu0 %v2800_v44, %s6120_s27  ;;  %v2914_v4 = vpack.c.bf16 %v2858_v11, %v2857_v33  ;;  %v2759_v21 = vld [vmem:[#allocation2 + $0x288] sm:$0xff]  ;;  %v2760_v32 = vld [vmem:[#allocation2 + $0x290] sm:$0xff] }
 0x375   :  { %v2757_v37 = vld [vmem:[#allocation2 + $0x268] sm:$0xff]  ;;  %v2758_v60 = vld [vmem:[#allocation2 + $0x270] sm:$0xff]  ;;  %v2811_v5 = vpack.c.bf16 %v2760_v32, %v2759_v21 }
 0x376   :  { %v2810_v18 = vpack.c.bf16 %v2758_v60, %v2757_v37  ;;  %v2867_v42 = vld [vmem:[#allocation2 + $0x289] sm:$0xff]  ;;  %v2868_v47 = vld [vmem:[#allocation2 + $0x291] sm:$0xff] }
 0x377   :  { %3099 = vrot.lane.b32.xlu1 %v2909_v13, %s6119_s26  ;;  %v2865_v10 = vld [vmem:[#allocation2 + $0x269] sm:$0xff]  ;;  %v2866_v28 = vld [vmem:[#allocation2 + $0x271] sm:$0xff]  ;;  %v2919_v36 = vpack.c.bf16 %v2868_v47, %v2867_v42 }
 0x378   :  { %3097 = vrot.lane.b32.xlu0 %v2908_v8, %s6119_s26  ;;  %v2918_v59 = vpack.c.bf16 %v2866_v28, %v2865_v10  ;;  %v2763_v54 = vld [vmem:[#allocation2 + $0x2c8] sm:$0xff]  ;;  %v2764_v50 = vld [vmem:[#allocation2 + $0x2d0] sm:$0xff] }
 0x379   :  { %v2761_v14 = vld [vmem:[#allocation2 + $0x2a8] sm:$0xff]  ;;  %v2762_v30 = vld [vmem:[#allocation2 + $0x2b0] sm:$0xff]  ;;  %v2813_v62 = vpack.c.bf16 %v2764_v50, %v2763_v54 }
 0x37a   :  { %v2812_v51 = vpack.c.bf16 %v2762_v30, %v2761_v14  ;;  %v2871_v55 = vld [vmem:[#allocation2 + $0x2c9] sm:$0xff]  ;;  %v2872_v6 = vld [vmem:[#allocation2 + $0x2d1] sm:$0xff] }
 0x37b   :  { %2995 = vrot.lane.b32.xlu1 %v2803_v2, %s6120_s27  ;;  %v2869_v44 = vld [vmem:[#allocation2 + $0x2a9] sm:$0xff]  ;;  %v2870_v20 = vld [vmem:[#allocation2 + $0x2b1] sm:$0xff]  ;;  %v2921_v0 = vpack.c.bf16 %v2872_v6, %v2871_v55 }
 0x37c   :  { %2993 = vrot.lane.b32.xlu0 %v2802_v26, %s6120_s27  ;;  %v2920_v40 = vpack.c.bf16 %v2870_v20, %v2869_v44  ;;  %v2767_v29 = vld [vmem:[#allocation2 + $0x308] sm:$0xff]  ;;  %v2768_v13 = vld [vmem:[#allocation2 + $0x310] sm:$0xff] }
 0x37d   :  { %v2765_v8 = vld [vmem:[#allocation2 + $0x2e8] sm:$0xff]  ;;  %v2766_v39 = vld [vmem:[#allocation2 + $0x2f0] sm:$0xff]  ;;  %v2815_v31 = vpack.c.bf16 %v2768_v13, %v2767_v29 }
 0x37e   :  { %v2814_v58 = vpack.c.bf16 %v2766_v39, %v2765_v8  ;;  %v2875_v24 = vld [vmem:[#allocation2 + $0x309] sm:$0xff]  ;;  %v2876_v2 = vld [vmem:[#allocation2 + $0x311] sm:$0xff] }
 0x37f   :  { %3103 = vrot.lane.b32.xlu1 %v2911_v19, %s6119_s26  ;;  %v2873_v26 = vld [vmem:[#allocation2 + $0x2e9] sm:$0xff]  ;;  %v2874_v56 = vld [vmem:[#allocation2 + $0x2f1] sm:$0xff]  ;;  %v2923_v17 = vpack.c.bf16 %v2876_v2, %v2875_v24 }
 0x380   :  { %3101 = vrot.lane.b32.xlu0 %v2910_v9, %s6119_s26  ;;  %v2922_v49 = vpack.c.bf16 %v2874_v56, %v2873_v26  ;;  %v2771_v25 = vld [vmem:[#allocation2 + $0x348] sm:$0xff]  ;;  %v2772_v19 = vld [vmem:[#allocation2 + $0x350] sm:$0xff] }
 0x381   :  { %v2769_v9 = vld [vmem:[#allocation2 + $0x328] sm:$0xff]  ;;  %v2770_v7 = vld [vmem:[#allocation2 + $0x330] sm:$0xff]  ;;  %v2817_v48 = vpack.c.bf16 %v2772_v19, %v2771_v25 }
 0x382   :  { %v2816_v63 = vpack.c.bf16 %v2770_v7, %v2769_v9  ;;  %v2879_v3 = vld [vmem:[#allocation2 + $0x349] sm:$0xff]  ;;  %v2878_v15 = vld [vmem:[#allocation2 + $0x331] sm:$0xff] }
 0x383   :  { %2999 = vrot.lane.b32.xlu1 %v2805_v12, %s6120_s27  ;;  %v2880_v12 = vld [vmem:[#allocation2 + $0x351] sm:$0xff]  ;;  %v2775_v61 = vld [vmem:[#allocation2 + $0x388] sm:$0xff] }
 0x384   :  { %2997 = vrot.lane.b32.xlu0 %v2804_v57, %s6120_s27  ;;  %v2877_v57 = vld [vmem:[#allocation2 + $0x329] sm:$0xff]  ;;  %v2925_v52 = vpack.c.bf16 %v2880_v12, %v2879_v3  ;;  %v2882_v1 = vld [vmem:[#allocation2 + $0x371] sm:$0xff] }
 0x385   :  { %v2924_v45 = vpack.c.bf16 %v2878_v15, %v2877_v57  ;;  %v2774_v23 = vld [vmem:[#allocation2 + $0x370] sm:$0xff]  ;;  %v2779_v11 = vld [vmem:[#allocation2 + $0x3c8] sm:$0xff] }
 0x386   :  { %v2883_v34 = vld [vmem:[#allocation2 + $0x389] sm:$0xff]  ;;  %v2886_v42 = vld [vmem:[#allocation2 + $0x3b1] sm:$0xff] }
 0x387   :  { %3107 = vrot.lane.b32.xlu1 %v2913_v41, %s6119_s26  ;;  %v2776_v41 = vld [vmem:[#allocation2 + $0x390] sm:$0xff]  ;;  %v2783_v28 = vld [vmem:[#allocation2 + $0x408] sm:$0xff] }
 0x388   :  { %3105 = vrot.lane.b32.xlu0 %v2912_v53, %s6119_s26  ;;  %v2773_v53 = vld [vmem:[#allocation2 + $0x368] sm:$0xff]  ;;  %v2819_v46 = vpack.c.bf16 %v2776_v41, %v2775_v61  ;;  %v2778_v21 = vld [vmem:[#allocation2 + $0x3b0] sm:$0xff] }
 0x389   :  { %v2818_v22 = vpack.c.bf16 %v2774_v23, %v2773_v53  ;;  %v2887_v60 = vld [vmem:[#allocation2 + $0x3c9] sm:$0xff]  ;;  %v2890_v55 = vld [vmem:[#allocation2 + $0x3f1] sm:$0xff] }
 0x38a   :  { %v2782_v54 = vld [vmem:[#allocation2 + $0x3f0] sm:$0xff]  ;;  %v2615_v44 = vld [vmem:[#allocation2 + $0x47] sm:$0xff] }
 0x38b   :  { %3003 = vrot.lane.b32.xlu1 %v2807_v35, %s6120_s27  ;;  %v2884_v35 = vld [vmem:[#allocation2 + $0x391] sm:$0xff]  ;;  %v2891_v30 = vld [vmem:[#allocation2 + $0x409] sm:$0xff] }
 0x38c   :  { %3001 = vrot.lane.b32.xlu0 %v2806_v38, %s6120_s27  ;;  %v2881_v38 = vld [vmem:[#allocation2 + $0x369] sm:$0xff]  ;;  %v2927_v16 = vpack.c.bf16 %v2884_v35, %v2883_v34  ;;  %v2894_v7 = vld [vmem:[#allocation2 + $0x431] sm:$0xff] }
 0x38d   :  { %v2926_v33 = vpack.c.bf16 %v2882_v1, %v2881_v38  ;;  %v2614_v29 = vld [vmem:[#allocation2 + $0x2f] sm:$0xff]  ;;  %v2619_v3 = vld [vmem:[#allocation2 + $0x87] sm:$0xff] }
 0x38e   :  { %v2786_v39 = vld [vmem:[#allocation2 + $0x430] sm:$0xff]  ;;  %v2785_v24 = vld [vmem:[#allocation2 + $0x428] sm:$0xff] }
 0x38f   :  { %3111 = vrot.lane.b32.xlu1 %v2915_v27, %s6119_s26  ;;  %v2780_v27 = vld [vmem:[#allocation2 + $0x3d0] sm:$0xff]  ;;  %v2824_v9 = vpack.c.bf16 %v2786_v39, %v2785_v24  ;;  %v2617_v61 = vld [vmem:[#allocation2 + $0x67] sm:$0xff] }
 0x390   :  { %3109 = vrot.lane.b32.xlu0 %v2914_v4, %s6119_s26  ;;  %v2777_v4 = vld [vmem:[#allocation2 + $0x3a8] sm:$0xff]  ;;  %v2821_v32 = vpack.c.bf16 %v2780_v27, %v2779_v11  ;;  %v2896_v57 = vld [vmem:[#allocation2 + $0x451] sm:$0xff] }
 0x391   :  { %v2820_v37 = vpack.c.bf16 %v2778_v21, %v2777_v4  ;;  %v2895_v12 = vld [vmem:[#allocation2 + $0x449] sm:$0xff]  ;;  %v2828_v1 = vld [vmem:[#allocation2 + $0x11] sm:$0xff] }
 0x392   :  { %v2893_v15 = vld [vmem:[#allocation2 + $0x429] sm:$0xff]  ;;  %v2933_v35 = vpack.c.bf16 %v2896_v57, %v2895_v12 }
 0x393   :  { %3011 = vrot.lane.b32.xlu1 %v2811_v5, %s6120_s27  ;;  %v2888_v5 = vld [vmem:[#allocation2 + $0x3d1] sm:$0xff]  ;;  %v2719_v53 = vld [vmem:[#allocation2 + $0x8] sm:$0xff] }
 0x394   :  { %3009 = vrot.lane.b32.xlu0 %v2810_v18, %s6120_s27  ;;  %v2885_v18 = vld [vmem:[#allocation2 + $0x3a9] sm:$0xff]  ;;  %v2929_v47 = vpack.c.bf16 %v2888_v5, %v2887_v60 }
 0x395   :  { %v2928_v10 = vpack.c.bf16 %v2886_v42, %v2885_v18  ;;  %v2618_v41 = vld [vmem:[#allocation2 + $0x6f] sm:$0xff]  ;;  %v2625_v39 = vld [vmem:[#allocation2 + $0xe7] sm:$0xff] }
 0x396   :  { %v2720_v23 = vld [vmem:[#allocation2 + $0x10] sm:$0xff]  ;;  %v2755_v4 = vld [vmem:[#allocation2 + $0x248] sm:$0xff] }
 0x397   :  { %3119 = vrot.lane.b32.xlu1 %v2919_v36, %s6119_s26  ;;  %v2784_v36 = vld [vmem:[#allocation2 + $0x410] sm:$0xff]  ;;  %v2791_v11 = vpack.c.bf16 %v2720_v23, %v2719_v53  ;;  %v2629_v12 = vld [vmem:[#allocation2 + $0x127] sm:$0xff] }
 0x398   :  { %3117 = vrot.lane.b32.xlu0 %v2918_v59, %s6119_s26  ;;  %v2781_v59 = vld [vmem:[#allocation2 + $0x3e8] sm:$0xff]  ;;  %v2823_v50 = vpack.c.bf16 %v2784_v36, %v2783_v28  ;;  %v2756_v21 = vld [vmem:[#allocation2 + $0x250] sm:$0xff] }
 0x399   :  { %v2822_v14 = vpack.c.bf16 %v2782_v54, %v2781_v59  ;;  %v2827_v38 = vld [vmem:[#allocation2 + $0x9] sm:$0xff]  ;;  %v2864_v42 = vld [vmem:[#allocation2 + $0x251] sm:$0xff]  ;;  %v2809_v36 = vpack.c.bf16 %v2756_v21, %v2755_v4 }
 0x39a   :  { %v2899_v27 = vpack.c.bf16 %v2828_v1, %v2827_v38  ;;  %v2863_v18 = vld [vmem:[#allocation2 + $0x249] sm:$0xff] }
 0x39b   :  { %3015 = vrot.lane.b32.xlu1 %v2813_v62, %s6120_s27  ;;  %v2892_v62 = vld [vmem:[#allocation2 + $0x411] sm:$0xff]  ;;  %v2623_v28 = vld [vmem:[#allocation2 + $0xc7] sm:$0xff] }
 0x39c   :  { %3013 = vrot.lane.b32.xlu0 %v2812_v51, %s6120_s27  ;;  %v2889_v51 = vld [vmem:[#allocation2 + $0x3e9] sm:$0xff]  ;;  %v2931_v13 = vpack.c.bf16 %v2892_v62, %v2891_v30 }
 0x39d   :  { %v2930_v8 = vpack.c.bf16 %v2890_v55, %v2889_v51  ;;  %v2624_v59 = vld [vmem:[#allocation2 + $0xcf] sm:$0xff]  ;;  %v2621_v54 = vld [vmem:[#allocation2 + $0xa7] sm:$0xff] }
 0x39e   :  { %v2689_v51 = vpack.c.bf16 %v2624_v59, %v2623_v28  ;;  %v2630_v57 = vld [vmem:[#allocation2 + $0x12f] sm:$0xff]  ;;  %v2633_v1 = vld [vmem:[#allocation2 + $0x167] sm:$0xff] }
 0x39f   :  { %3123 = vrot.lane.b32.xlu1 %v2921_v0, %s6119_s26  ;;  %v2616_v0 = vld [vmem:[#allocation2 + $0x4f] sm:$0xff] }
 0x3a0   :  { %3121 = vrot.lane.b32.xlu0 %v2920_v40, %s6119_s26  ;;  %v2613_v40 = vld [vmem:[#allocation2 + $0x27] sm:$0xff]  ;;  %v2685_v2 = vpack.c.bf16 %v2616_v0, %v2615_v44  ;;  %v2636_v38 = vld [vmem:[#allocation2 + $0x18f] sm:$0xff] }
 0x3a1   :  { %v2684_v26 = vpack.c.bf16 %v2614_v29, %v2613_v40  ;;  %v2640_v28 = vld [vmem:[#allocation2 + $0x1cf] sm:$0xff] }
 0x3a2   :  { %v2638_v59 = vld [vmem:[#allocation2 + $0x1af] sm:$0xff] }
 0x3a3   :  { %3019 = vrot.lane.b32.xlu1 %v2815_v31, %s6120_s27  ;;  %v2787_v31 = vld [vmem:[#allocation2 + $0x448] sm:$0xff] }
 0x3a4   :  { %3017 = vrot.lane.b32.xlu0 %v2814_v58, %s6120_s27  ;;  %v2788_v58 = vld [vmem:[#allocation2 + $0x450] sm:$0xff] }
 0x3a5   :  { %v2825_v19 = vpack.c.bf16 %v2788_v58, %v2787_v31  ;;  %v2626_v31 = vld [vmem:[#allocation2 + $0xef] sm:$0xff] }
 0x3a7   :  { %3127 = vrot.lane.b32.xlu1 %v2923_v17, %s6119_s26 }
 0x3a8   :  { %3125 = vrot.lane.b32.xlu0 %v2922_v49, %s6119_s26 }
 0x3ab   :  { %3023 = vrot.lane.b32.xlu1 %v2817_v48, %s6120_s27 }
 0x3ac   :  { %3021 = vrot.lane.b32.xlu0 %v2816_v63, %s6120_s27 }
 0x3af   :  { %3131 = vrot.lane.b32.xlu1 %v2925_v52, %s6119_s26  ;;  %v3707_v52 = vsel %vm1040_vm3, %v8098_v43, 0  ;;  %v2932_v43 = vpack.c.bf16 %v2894_v7, %v2893_v15  ;;  %v2631_v7 = vld [vmem:[#allocation2 + $0x147] sm:$0xff] }
 0x3b0   :  { %3129 = vrot.lane.b32.xlu0 %v2924_v45, %s6119_s26  ;;  %v2620_v45 = vld [vmem:[#allocation2 + $0x8f] sm:$0xff] }
 0x3b3   :  { %3027 = vrot.lane.b32.xlu1 %v2819_v46, %s6120_s27  ;;  %v8183_v46 = vld [vmem:[%s10010_s4 + $0x10] sm:$0x3f]  }
 0x3b4   :  { %3025 = vrot.lane.b32.xlu0 %v2818_v22, %s6120_s27 }
 0x3b5   :  { %v2976_v6 = vpop.permute.xlu1 %2975 }
 0x3b6   :  { %v3159_v56 = vsel %vm27_vm0, %v2685_v2, %v2976_v6 }
 0x3b7   :  { %3135 = vrot.lane.b32.xlu1 %v2927_v16, %s6119_s26  ;;  %v2687_v16 = vpack.c.bf16 %v2620_v45, %v2619_v3  ;;  %v2632_v3 = vld [vmem:[#allocation2 + $0x14f] sm:$0xff] }
 0x3b8   :  { %3133 = vrot.lane.b32.xlu0 %v2926_v33, %s6119_s26  ;;  %v2686_v33 = vpack.c.bf16 %v2618_v41, %v2617_v61  ;;  %v2693_v45 = vpack.c.bf16 %v2632_v3, %v2631_v7  ;;  %v2692_v61 = vpack.c.bf16 %v2630_v57, %v2629_v12  ;;  %v2651_v3 = vld [vmem:[#allocation2 + $0x287] sm:$0xff]  ;;  %v2652_v12 = vld [vmem:[#allocation2 + $0x28f] sm:$0xff] }
 0x3b9   :  { %v2649_v57 = vld [vmem:[#allocation2 + $0x267] sm:$0xff] }
 0x3bb   :  { %3031 = vrot.lane.b32.xlu1 %v2821_v32, %s6120_s27 }
 0x3bc   :  { %3029 = vrot.lane.b32.xlu0 %v2820_v37, %s6120_s27 }
 0x3bf   :  { %3139 = vrot.lane.b32.xlu1 %v2929_v47, %s6119_s26 }
 0x3c0   :  { %3137 = vrot.lane.b32.xlu0 %v2928_v10, %s6119_s26 }
 0x3c3   :  { %3035 = vrot.lane.b32.xlu1 %v2823_v50, %s6120_s27  ;;  %v2622_v50 = vld [vmem:[#allocation2 + $0xaf] sm:$0xff] }
 0x3c4   :  { %3033 = vrot.lane.b32.xlu0 %v2822_v14, %s6120_s27  ;;  %v2974_v20 = vpop.permute.xlu0 %2973  ;;  %v2917_v14 = vpack.c.bf16 %v2864_v42, %v2863_v18  ;;  %v2688_v55 = vpack.c.bf16 %v2622_v50, %v2621_v54  ;;  %v2639_v42 = vld [vmem:[#allocation2 + $0x1c7] sm:$0xff] }
 0x3c5   :  { %v3156_v17 = vsel %vm27_vm0, %v2684_v26, %v2974_v20  ;;  %v2690_v26 = vpack.c.bf16 %v2626_v31, %v2625_v39  ;;  %v2642_v39 = vld [vmem:[#allocation2 + $0x1ef] sm:$0xff] }
 0x3c7   :  { %3143 = vrot.lane.b32.xlu1 %v2931_v13, %s6119_s26  ;;  %v2627_v13 = vld [vmem:[#allocation2 + $0x107] sm:$0xff] }
 0x3c8   :  { %3141 = vrot.lane.b32.xlu0 %v2930_v8, %s6119_s26  ;;  %v3084_v49 = vpop.permute.xlu1 %3083  ;;  %v2628_v8 = vld [vmem:[#allocation2 + $0x10f] sm:$0xff] }
 0x3c9   :  { %v8169_v48 = vsel %vm892_vm4, %v3159_v56, %v3084_v49  ;;  %v2691_v2 = vpack.c.bf16 %v2628_v8, %v2627_v13  ;;  %v2644_v13 = vld [vmem:[#allocation2 + $0x20f] sm:$0xff]  ;;  %v2641_v8 = vld [vmem:[#allocation2 + $0x1e7] sm:$0xff] }
 0x3ca   :  { %v3082_v25 = vpop.permute.xlu0 %3081 }
 0x3cb   :  { %v8172_v63 = vsel %vm892_vm4, %v3156_v17, %v3082_v25  ;;  %3039 = vrot.lane.b32.xlu1 %v2825_v19, %s6120_s27 }
 0x3cc   :  { %3037 = vrot.lane.b32.xlu0 %v2824_v9, %s6120_s27  ;;  %5647 = vmatprep.mubr.msk.bf16.mxu1 %vm975_vm5, %v8172_v63 }
 0x3cd   :  { %5648 = vmatmul.mubr.msk.bf16.vlgmr.msra.gmra.mrb[0].mxu1 %vm975_vm5, %v8169_v48  ;;  %v2980_v22 = vpop.permute.xlu1 %2979 }
 0x3ce   :  { %v2978_v34 = vpop.permute.xlu0 %2977  ;;  %5712 = vmatpush3.bf16.msra.mxu1 %v3707_v52  ;;  %v3165_v32 = vsel %vm27_vm0, %v2687_v16, %v2980_v22  ;;  %v2634_v16 = vld [vmem:[#allocation2 + $0x16f] sm:$0xff] }
 0x3cf   :  { %3147 = vrot.lane.b32.xlu1 %v2933_v35, %s6119_s26  ;;  %6104 = vmatprep.subr.msk.bf16.mxu1 %vm1040_vm3, %v8183_v46  ;;  %v3162_v37 = vsel %vm27_vm0, %v2686_v33, %v2978_v34  ;;  %v2694_v4 = vpack.c.bf16 %v2634_v16, %v2633_v1  ;;  %v2655_v16 = vld [vmem:[#allocation2 + $0x2c7] sm:$0xff] }
 0x3d0   :  { %3145 = vrot.lane.b32.xlu0 %v2932_v43, %s6119_s26  ;;  %v2635_v43 = vld [vmem:[#allocation2 + $0x187] sm:$0xff] }
 0x3d1   :  { %v3088_v60 = vpop.permute.xlu1 %3087 }
 0x3d2   :  { %v3086_v5 = vpop.permute.xlu0 %3085  ;;  %v8194_v47 = vsel %vm892_vm4, %v3165_v32, %v3088_v60 }
 0x3d3   :  { %v8197_v10 = vsel %vm892_vm4, %v3162_v37, %v3086_v5  ;;  %3079 = vrot.lane.b32.xlu1 %v2899_v27, %s6119_s26  ;;  %v2695_v27 = vpack.c.bf16 %v2636_v38, %v2635_v43 }
 0x3d4   :  { %5651 = vmatprep.mubr.msk.bf16.mxu1 %vm975_vm5, %v8197_v10  ;;  %2971 = vrot.lane.b32.xlu0 %v2791_v11, %s6120_s27 }
 0x3d5   :  { %5652 = vmatmul.mubr.msk.bf16.gmra.mrb[4].mxu1 %vm975_vm5, %v8194_v47  ;;  %v2984_v30 = vpop.permute.xlu1 %2983 }
 0x3d6   :  { %v2982_v62 = vpop.permute.xlu0 %2981  ;;  %v3171_v6 = vsel %vm27_vm0, %v2689_v51, %v2984_v30 }
 0x3d7   :  { %3115 = vrot.lane.b32.xlu1 %v2917_v14, %s6119_s26  ;;  %v3168_v44 = vsel %vm27_vm0, %v2688_v55, %v2982_v62  ;;  %v2697_v14 = vpack.c.bf16 %v2640_v28, %v2639_v42 }
 0x3d8   :  { %3007 = vrot.lane.b32.xlu0 %v2809_v36, %s6120_s27  ;;  %v2637_v36 = vld [vmem:[#allocation2 + $0x1a7] sm:$0xff] }
 0x3d9   :  { %v3092_v20 = vpop.permute.xlu1 %3091  ;;  %v2696_v30 = vpack.c.bf16 %v2638_v59, %v2637_v36  ;;  %v2862_v59 = vld [vmem:[#allocation2 + $0x231] sm:$0xff] }
 0x3da   :  { %v3090_v0 = vpop.permute.xlu0 %3089  ;;  %v8210_v40 = vsel %vm892_vm4, %v3171_v6, %v3092_v20 }
 0x3db   :  { %v8213_v29 = vsel %vm892_vm4, %v3168_v44, %v3090_v0  ;;  %v2643_v0 = vld [vmem:[#allocation2 + $0x207] sm:$0xff] }
 0x3dc   :  { %5655 = vmatprep.mubr.msk.bf16.mxu1 %vm975_vm5, %v8213_v29 }
 0x3dd   :  { %5656 = vmatmul.mubr.msk.bf16.gmra.mrb[8].mxu1 %vm975_vm5, %v8210_v40  ;;  %v2988_v58 = vpop.permute.xlu1 %2987 }
 0x3de   :  { %v2986_v24 = vpop.permute.xlu0 %2985  ;;  %v3177_v56 = vsel %vm27_vm0, %v2691_v2, %v2988_v58  ;;  %v2698_v2 = vpack.c.bf16 %v2642_v39, %v2641_v8  ;;  %v2658_v8 = vld [vmem:[#allocation2 + $0x2ef] sm:$0xff] }
 0x3df   :  { %v3174_v17 = vsel %vm27_vm0, %v2690_v26, %v2986_v24  ;;  %v2699_v24 = vpack.c.bf16 %v2644_v13, %v2643_v0  ;;  %v2660_v0 = vld [vmem:[#allocation2 + $0x30f] sm:$0xff]  ;;  %v2657_v13 = vld [vmem:[#allocation2 + $0x2e7] sm:$0xff] }
 0x3e1   :  { %v3096_v49 = vpop.permute.xlu1 %3095 }
 0x3e2   :  { %v3094_v25 = vpop.permute.xlu0 %3093  ;;  %v8222_v19 = vsel %vm892_vm4, %v3177_v56, %v3096_v49 }
 0x3e3   :  { %v8225_v9 = vsel %vm892_vm4, %v3174_v17, %v3094_v25 }
 0x3e4   :  { %5659 = vmatprep.mubr.msk.bf16.mxu1 %vm975_vm5, %v8225_v9 }
 0x3e5   :  { %5660 = vmatmul.mubr.msk.bf16.gmra.mrb[12].mxu1 %vm975_vm5, %v8222_v19  ;;  %v2992_v15 = vpop.permute.xlu1 %2991 }
 0x3e6   :  { %v2990_v52 = vpop.permute.xlu0 %2989  ;;  %v3183_v41 = vsel %vm27_vm0, %v2693_v45, %v2992_v15  ;;  %v2650_v15 = vld [vmem:[#allocation2 + $0x26f] sm:$0xff] }
 0x3e7   :  { %v3180_v53 = vsel %vm27_vm0, %v2692_v61, %v2990_v52  ;;  %v2703_v61 = vpack.c.bf16 %v2652_v12, %v2651_v3  ;;  %v2663_v12 = vld [vmem:[#allocation2 + $0x347] sm:$0xff] }
 0x3e9   :  { %v3100_v23 = vpop.permute.xlu1 %3099 }
 0x3ea   :  { %v3098_v22 = vpop.permute.xlu0 %3097  ;;  %v8234_v34 = vsel %vm892_vm4, %v3183_v41, %v3100_v23  ;;  %v2702_v41 = vpack.c.bf16 %v2650_v15, %v2649_v57  ;;  %v2664_v57 = vld [vmem:[#allocation2 + $0x34f] sm:$0xff]  ;;  %v2661_v15 = vld [vmem:[#allocation2 + $0x327] sm:$0xff] }
 0x3eb   :  { %v8237_v35 = vsel %vm892_vm4, %v3180_v53, %v3098_v22 }
 0x3ec   :  { %5663 = vmatprep.mubr.msk.bf16.mxu1 %vm975_vm5, %v8237_v35 }
 0x3ed   :  { %5664 = vmatmul.mubr.msk.bf16.gmra.mrb[16].mxu1 %vm975_vm5, %v8234_v34  ;;  %v2996_v33 = vpop.permute.xlu1 %2995 }
 0x3ee   :  { %v2994_v11 = vpop.permute.xlu0 %2993  ;;  %v3189_v21 = vsel %vm27_vm0, %v2695_v27, %v2996_v33  ;;  %v2656_v33 = vld [vmem:[#allocation2 + $0x2cf] sm:$0xff] }
 0x3ef   :  { %v3186_v32 = vsel %vm27_vm0, %v2694_v4, %v2994_v11  ;;  %v2653_v11 = vld [vmem:[#allocation2 + $0x2a7] sm:$0xff]  ;;  %v2654_v27 = vld [vmem:[#allocation2 + $0x2af] sm:$0xff]  ;;  %v2705_v42 = vpack.c.bf16 %v2656_v33, %v2655_v16 }
 0x3f0   :  { %v2704_v28 = vpack.c.bf16 %v2654_v27, %v2653_v11  ;;  %v2667_v27 = vld [vmem:[#allocation2 + $0x387] sm:$0xff] }
 0x3f1   :  { %v3104_v37 = vpop.permute.xlu1 %3103 }
 0x3f2   :  { %v3102_v60 = vpop.permute.xlu0 %3101  ;;  %v8246_v5 = vsel %vm892_vm4, %v3189_v21, %v3104_v37  ;;  %v2754_v37 = vld [vmem:[#allocation2 + $0x230] sm:$0xff] }
 0x3f3   :  { %v8249_v18 = vsel %vm892_vm4, %v3186_v32, %v3102_v60  ;;  %v2753_v32 = vld [vmem:[#allocation2 + $0x228] sm:$0xff] }
 0x3f4   :  { %5667 = vmatprep.mubr.msk.bf16.mxu1 %vm975_vm5, %v8249_v18  ;;  %v2861_v60 = vld [vmem:[#allocation2 + $0x229] sm:$0xff]  ;;  %v2808_v36 = vpack.c.bf16 %v2754_v37, %v2753_v32 }
 0x3f5   :  { %5668 = vmatmul.mubr.msk.bf16.gmra.mrb[20].mxu1 %vm975_vm5, %v8246_v5  ;;  %v3000_v54 = vpop.permute.xlu1 %2999  ;;  %v2666_v32 = vld [vmem:[#allocation2 + $0x36f] sm:$0xff] }
 0x3f6   :  { %v2998_v50 = vpop.permute.xlu0 %2997  ;;  %v3195_v62 = vsel %vm27_vm0, %v2697_v14, %v3000_v54  ;;  %v2916_v54 = vpack.c.bf16 %v2862_v59, %v2861_v60  ;;  %3005 = vrot.lane.b32.xlu0 %v2808_v36, %s6120_s27 }
 0x3f7   :  { %v3192_v51 = vsel %vm27_vm0, %v2696_v30, %v2998_v50 }
 0x3f8   :  { %3113 = vrot.lane.b32.xlu1 %v2916_v54, %s6119_s26 }
 0x3f9   :  { %v3108_v55 = vpop.permute.xlu1 %3107 }
 0x3fa   :  { %v3106_v6 = vpop.permute.xlu0 %3105  ;;  %v8258_v44 = vsel %vm892_vm4, %v3195_v62, %v3108_v55 }
 0x3fb   :  { %v8261_v20 = vsel %vm892_vm4, %v3192_v51, %v3106_v6  ;;  %v2659_v6 = vld [vmem:[#allocation2 + $0x307] sm:$0xff] }
 0x3fc   :  { %5671 = vmatprep.mubr.msk.bf16.mxu1 %vm975_vm5, %v8261_v20 }
 0x3fd   :  { %5672 = vmatmul.mubr.msk.bf16.gmra.mrb[24].mxu1 %vm975_vm5, %v8258_v44  ;;  %v3004_v31 = vpop.permute.xlu1 %3003 }
 0x3fe   :  { %v3002_v58 = vpop.permute.xlu0 %3001  ;;  %v3201_v26 = vsel %vm27_vm0, %v2699_v24, %v3004_v31  ;;  %v2706_v24 = vpack.c.bf16 %v2658_v8, %v2657_v13  ;;  %v2670_v13 = vld [vmem:[#allocation2 + $0x3af] sm:$0xff] }
 0x3ff   :  { %v3198_v56 = vsel %vm27_vm0, %v2698_v2, %v3002_v58  ;;  %v2707_v58 = vpack.c.bf16 %v2660_v0, %v2659_v6  ;;  %v2672_v6 = vld [vmem:[#allocation2 + $0x3cf] sm:$0xff]  ;;  %v2669_v0 = vld [vmem:[#allocation2 + $0x3a7] sm:$0xff] }
 0x401   :  { %v3112_v17 = vpop.permute.xlu1 %3111 }
 0x402   :  { %v3110_v49 = vpop.permute.xlu0 %3109  ;;  %v8270_v25 = vsel %vm892_vm4, %v3201_v26, %v3112_v17 }
 0x403   :  { %v8273_v7 = vsel %vm892_vm4, %v3198_v56, %v3110_v49 }
 0x404   :  { %5675 = vmatprep.mubr.msk.bf16.mxu1 %vm975_vm5, %v8273_v7 }
 0x405   :  { %5676 = vmatmul.mubr.msk.bf16.gmra.mrb[28].mxu1 %vm975_vm5, %v8270_v25  ;;  %v3012_v52 = vpop.permute.xlu1 %3011 }
 0x406   :  { %v3010_v45 = vpop.permute.xlu0 %3009  ;;  %v3213_v53 = vsel %vm27_vm0, %v2703_v61, %v3012_v52  ;;  %v2662_v52 = vld [vmem:[#allocation2 + $0x32f] sm:$0xff] }
 0x407   :  { %v3210_v23 = vsel %vm27_vm0, %v2702_v41, %v3010_v45  ;;  %v2709_v41 = vpack.c.bf16 %v2664_v57, %v2663_v12  ;;  %v2675_v57 = vld [vmem:[#allocation2 + $0x407] sm:$0xff] }
 0x409   :  { %v3120_v22 = vpop.permute.xlu1 %3119 }
 0x40a   :  { %v3118_v43 = vpop.permute.xlu0 %3117  ;;  %v8282_v38 = vsel %vm892_vm4, %v3213_v53, %v3120_v22  ;;  %v2708_v53 = vpack.c.bf16 %v2662_v52, %v2661_v15  ;;  %v2676_v15 = vld [vmem:[#allocation2 + $0x40f] sm:$0xff]  ;;  %v2673_v52 = vld [vmem:[#allocation2 + $0x3e7] sm:$0xff] }
 0x40b   :  { %v8285_v1 = vsel %vm892_vm4, %v3210_v23, %v3118_v43 }
 0x40c   :  { %5679 = vmatprep.mubr.msk.bf16.mxu1 %vm975_vm5, %v8285_v1 }
 0x40d   :  { %5680 = vmatmul.mubr.msk.bf16.gmra.mrb[32].mxu1 %vm975_vm5, %v8282_v38  ;;  %v3016_v4 = vpop.permute.xlu1 %3015 }
 0x40e   :  { %v3014_v21 = vpop.permute.xlu0 %3013  ;;  %v3219_v50 = vsel %vm27_vm0, %v2705_v42, %v3016_v4  ;;  %v2668_v4 = vld [vmem:[#allocation2 + $0x38f] sm:$0xff] }
 0x40f   :  { %v3216_v14 = vsel %vm27_vm0, %v2704_v28, %v3014_v21  ;;  %v2665_v21 = vld [vmem:[#allocation2 + $0x367] sm:$0xff]  ;;  %v2711_v42 = vpack.c.bf16 %v2668_v4, %v2667_v27 }
 0x410   :  { %v2710_v28 = vpack.c.bf16 %v2666_v32, %v2665_v21  ;;  %v2679_v32 = vld [vmem:[#allocation2 + $0x447] sm:$0xff] }
 0x411   :  { %v3124_v30 = vpop.permute.xlu1 %3123 }
 0x412   :  { %v3122_v62 = vpop.permute.xlu0 %3121  ;;  %v8295_v51 = vsel %vm892_vm4, %v3219_v50, %v3124_v30 }
 0x413   :  { %v8298_v55 = vsel %vm892_vm4, %v3216_v14, %v3122_v62  ;;  %v2671_v62 = vld [vmem:[#allocation2 + $0x3c7] sm:$0xff] }
 0x414   :  { %5683 = vmatprep.mubr.msk.bf16.mxu1 %vm975_vm5, %v8298_v55 }
 0x415   :  { %5684 = vmatmul.mubr.msk.bf16.gmra.mrb[36].mxu1 %vm975_vm5, %v8295_v51  ;;  %v3020_v39 = vpop.permute.xlu1 %3019 }
 0x416   :  { %v3018_v31 = vpop.permute.xlu0 %3017  ;;  %v3225_v2 = vsel %vm27_vm0, %v2707_v58, %v3020_v39  ;;  %v2712_v58 = vpack.c.bf16 %v2670_v13, %v2669_v0 }
 0x417   :  { %v3222_v26 = vsel %vm27_vm0, %v2706_v24, %v3018_v31  ;;  %v2713_v31 = vpack.c.bf16 %v2672_v6, %v2671_v62  ;;  %v2612_v62 = vld [vmem:[#allocation2 + $0xf] sm:$0xff] }
 0x419   :  { %v3128_v56 = vpop.permute.xlu1 %3127 }
 0x41a   :  { %v3126_v17 = vpop.permute.xlu0 %3125  ;;  %v8308_v49 = vsel %vm892_vm4, %v3225_v2, %v3128_v56 }
 0x41b   :  { %v8311_v3 = vsel %vm892_vm4, %v3222_v26, %v3126_v17 }
 0x41c   :  { %5687 = vmatprep.mubr.msk.bf16.mxu1 %vm975_vm5, %v8311_v3 }
 0x41d   :  { %5688 = vmatmul.mubr.msk.bf16.gmra.mrb[40].mxu1 %vm975_vm5, %v8308_v49  ;;  %v3024_v45 = vpop.permute.xlu1 %3023 }
 0x41e   :  { %v3022_v61 = vpop.permute.xlu0 %3021  ;;  %v3231_v23 = vsel %vm27_vm0, %v2709_v41, %v3024_v45  ;;  %v2674_v45 = vld [vmem:[#allocation2 + $0x3ef] sm:$0xff] }
 0x41f   :  { %v3228_v22 = vsel %vm27_vm0, %v2708_v53, %v3022_v61  ;;  %v2715_v53 = vpack.c.bf16 %v2676_v15, %v2675_v57  ;;  %v4011_v57 = vsel %vm1040_vm3, %v8183_v46, 0  ;;  %v2789_v15 = vld [vmem:[#allocation2 + $0x468] sm:$0xff] }
 0x420   :  { %v2648_v46 = vld [vmem:[#allocation2 + $0x24f] sm:$0xff] }
 0x421   :  { %v3132_v43 = vpop.permute.xlu1 %3131 }
 0x422   :  { %v3130_v16 = vpop.permute.xlu0 %3129  ;;  %v8320_v33 = vsel %vm892_vm4, %v3231_v23, %v3132_v43  ;;  %v2714_v23 = vpack.c.bf16 %v2674_v45, %v2673_v52  ;;  %v2790_v52 = vld [vmem:[#allocation2 + $0x470] sm:$0xff] }
 0x423   :  { %v8323_v11 = vsel %vm892_vm4, %v3228_v22, %v3130_v16  ;;  %v2897_v45 = vld [vmem:[#allocation2 + $0x469] sm:$0xff] }
 0x424   :  { %5691 = vmatprep.mubr.msk.bf16.mxu1 %vm975_vm5, %v8323_v11 }
 0x425   :  { %5692 = vmatmul.mubr.msk.bf16.gmra.mrb[44].mxu1 %vm975_vm5, %v8320_v33  ;;  %v3028_v37 = vpop.permute.xlu1 %3027 }
 0x426   :  { %v3026_v60 = vpop.permute.xlu0 %3025  ;;  %v3237_v36 = vsel %vm27_vm0, %v2711_v42, %v3028_v37  ;;  %v2680_v37 = vld [vmem:[#allocation2 + $0x44f] sm:$0xff] }
 0x427   :  { %v3234_v59 = vsel %vm27_vm0, %v2710_v28, %v3026_v60  ;;  %v2677_v60 = vld [vmem:[#allocation2 + $0x427] sm:$0xff]  ;;  %v2678_v42 = vld [vmem:[#allocation2 + $0x42f] sm:$0xff] }
 0x429   :  { %v3136_v54 = vpop.permute.xlu1 %3135 }
 0x42a   :  { %v3134_v50 = vpop.permute.xlu0 %3133  ;;  %v8332_v14 = vsel %vm892_vm4, %v3237_v36, %v3136_v54  ;;  %v2716_v54 = vpack.c.bf16 %v2678_v42, %v2677_v60 }
 0x42b   :  { %v8335_v30 = vsel %vm892_vm4, %v3234_v59, %v3134_v50  ;;  %v2717_v59 = vpack.c.bf16 %v2680_v37, %v2679_v32  ;;  %v2611_v50 = vld [vmem:[#allocation2 + $0x7] sm:$0xff] }
 0x42c   :  { %5695 = vmatprep.mubr.msk.bf16.mxu1 %vm975_vm5, %v8335_v30 }
 0x42d   :  { %5696 = vmatmul.mubr.msk.bf16.gmra.mrb[48].mxu1 %vm975_vm5, %v8332_v14  ;;  %v3032_v8 = vpop.permute.xlu1 %3031 }
 0x42e   :  { %v3030_v39 = vpop.permute.xlu0 %3029  ;;  %v3243_v24 = vsel %vm27_vm0, %v2713_v31, %v3032_v8 }
 0x42f   :  { %v3240_v2 = vsel %vm27_vm0, %v2712_v58, %v3030_v39  ;;  %v2683_v58 = vpack.c.bf16 %v2612_v62, %v2611_v50 }
 0x431   :  { %v3140_v26 = vpop.permute.xlu1 %3139 }
 0x432   :  { %v3138_v56 = vpop.permute.xlu0 %3137  ;;  %v8344_v17 = vsel %vm892_vm4, %v3243_v24, %v3140_v26 }
 0x433   :  { %v8347_v12 = vsel %vm892_vm4, %v3240_v2, %v3138_v56 }
 0x434   :  { %5699 = vmatprep.mubr.msk.bf16.mxu1 %vm975_vm5, %v8347_v12 }
 0x435   :  { %5700 = vmatmul.mubr.msk.bf16.gmra.mrb[52].mxu1 %vm975_vm5, %v8344_v17  ;;  %v3036_v61 = vpop.permute.xlu1 %3035 }
 0x436   :  { %v3034_v41 = vpop.permute.xlu0 %3033  ;;  %v3249_v22 = vsel %vm27_vm0, %v2715_v53, %v3036_v61  ;;  %v2826_v61 = vpack.c.bf16 %v2790_v52, %v2789_v15 }
 0x437   :  { %v3246_v43 = vsel %vm27_vm0, %v2714_v23, %v3034_v41  ;;  %v2898_v41 = vld [vmem:[#allocation2 + $0x471] sm:$0xff] }
 0x438   :  { %v2934_v53 = vpack.c.bf16 %v2898_v41, %v2897_v45  ;;  %3041 = vrot.lane.b32.xlu0 %v2826_v61, %s6120_s27 }
 0x439   :  { %v3144_v16 = vpop.permute.xlu1 %3143 }
 0x43a   :  { %v3142_v27 = vpop.permute.xlu0 %3141  ;;  %v8356_v4 = vsel %vm892_vm4, %v3249_v22, %v3144_v16  ;;  %3149 = vrot.lane.b32.xlu1 %v2934_v53, %s6119_s26 }
 0x43b   :  { %v8359_v21 = vsel %vm892_vm4, %v3246_v43, %v3142_v27 }
 0x43c   :  { %5703 = vmatprep.mubr.msk.bf16.mxu1 %vm975_vm5, %v8359_v21 }
 0x43d   :  { %5704 = vmatmul.mubr.msk.bf16.gmra.mrb[56].mxu1 %vm975_vm5, %v8356_v4  ;;  %v3040_v28 = vpop.permute.xlu1 %3039 }
 0x43e   :  { %v3038_v36 = vpop.permute.xlu0 %3037  ;;  %v3255_v6 = vsel %vm27_vm0, %v2717_v59, %v3040_v28 }
 0x43f   :  { %v3252_v0 = vsel %vm27_vm0, %v2716_v54, %v3038_v36 }
 0x441   :  { %v3148_v13 = vpop.permute.xlu1 %3147 }
 0x442   :  { %v3146_v8 = vpop.permute.xlu0 %3145  ;;  %v8368_v39 = vsel %vm892_vm4, %v3255_v6, %v3148_v13 }
 0x443   :  { %v8371_v31 = vsel %vm892_vm4, %v3252_v0, %v3146_v8 }
 0x444   :  { %5707 = vmatprep.mubr.msk.bf16.mxu1 %vm975_vm5, %v8371_v31 }
 0x445   :  { %5708 = vmatmul.mubr.msk.bf16.gmra.mrb[60].mxu1 %vm975_vm5, %v8368_v39  ;;  %v3080_v26 = vpop.permute.xlu1 %3079 }
 0x446   :  { %v2972_v24 = vpop.permute.xlu0 %2971 }
 0x447   :  { %v3153_v2 = vsel %vm27_vm0, %v2683_v58, %v2972_v24 }
 0x448   :  { %v3260_v56 = vsel %vm892_vm4, %v3153_v2, %v3080_v26 }
 0x449   :  { %5713 = vmatprep.mubr.msk.bf16.mxu1 %vm975_vm5, %v3260_v56  ;;  %v3116_v16 = vpop.permute.xlu1 %3115 }
 0x44a   :  { %v3008_v22 = vpop.permute.xlu0 %3007 }
 0x44d   :  { %5714 = vmatmul.mubr.msk.bf16.vlgmr.msra.gmra.mrb[0].mxu1 %vm975_vm5, %v8172_v63  ;;  %v2647_v63 = vld [vmem:[#allocation2 + $0x247] sm:$0xff] }
 0x44e   :  { %5778 = vmatpush3.bf16.msra.mxu1 %v4011_v57  ;;  %5717 = vmatprep.mubr.msk.bf16.mxu1 %vm975_vm5, %v8169_v48  ;;  %v2701_v23 = vpack.c.bf16 %v2648_v46, %v2647_v63 }
 0x450   :  { %v3207_v43 = vsel %vm27_vm0, %v2701_v23, %v3008_v22 }
 0x451   :  { %v3296_v27 = vsel %vm892_vm4, %v3207_v43, %v3116_v16 }
 0x455   :  { %5718 = vmatmul.mubr.msk.bf16.gmra.mrb[4].mxu1 %vm975_vm5, %v8197_v10 }
 0x456   :  { %5721 = vmatprep.mubr.msk.bf16.mxu1 %vm975_vm5, %v8194_v47 }
 0x45d   :  { %5722 = vmatmul.mubr.msk.bf16.gmra.mrb[8].mxu1 %vm975_vm5, %v8213_v29 }
 0x45e   :  { %5725 = vmatprep.mubr.msk.bf16.mxu1 %vm975_vm5, %v8210_v40 }
 0x465   :  { %5726 = vmatmul.mubr.msk.bf16.gmra.mrb[12].mxu1 %vm975_vm5, %v8225_v9 }
 0x466   :  { %5729 = vmatprep.mubr.msk.bf16.mxu1 %vm975_vm5, %v8222_v19 }
 0x46d   :  { %5730 = vmatmul.mubr.msk.bf16.gmra.mrb[16].mxu1 %vm975_vm5, %v8237_v35 }
 0x46e   :  { %5733 = vmatprep.mubr.msk.bf16.mxu1 %vm975_vm5, %v8234_v34 }
 0x475   :  { %5734 = vmatmul.mubr.msk.bf16.gmra.mrb[20].mxu1 %vm975_vm5, %v8249_v18 }
 0x476   :  { %5737 = vmatprep.mubr.msk.bf16.mxu1 %vm975_vm5, %v8246_v5 }
 0x47d   :  { %5738 = vmatmul.mubr.msk.bf16.gmra.mrb[24].mxu1 %vm975_vm5, %v8261_v20 }
 0x47e   :  { %5741 = vmatprep.mubr.msk.bf16.mxu1 %vm975_vm5, %v8258_v44 }
 0x485   :  { %5742 = vmatmul.mubr.msk.bf16.gmra.mrb[28].mxu1 %vm975_vm5, %v8273_v7 }
 0x486   :  { %5745 = vmatprep.mubr.msk.bf16.mxu1 %vm975_vm5, %v3296_v27 }
 0x48d   :  { %5746 = vmatmul.mubr.msk.bf16.gmra.mrb[32].mxu1 %vm975_vm5, %v8285_v1 }
 0x48e   :  { %5749 = vmatprep.mubr.msk.bf16.mxu1 %vm975_vm5, %v8282_v38 }
 0x495   :  { %5750 = vmatmul.mubr.msk.bf16.gmra.mrb[36].mxu1 %vm975_vm5, %v8298_v55 }
 0x496   :  { %5753 = vmatprep.mubr.msk.bf16.mxu1 %vm975_vm5, %v8295_v51 }
 0x49d   :  { %5754 = vmatmul.mubr.msk.bf16.gmra.mrb[40].mxu1 %vm975_vm5, %v8311_v3 }
 0x49e   :  { %5757 = vmatprep.mubr.msk.bf16.mxu1 %vm975_vm5, %v8308_v49 }
 0x4a5   :  { %5758 = vmatmul.mubr.msk.bf16.gmra.mrb[44].mxu1 %vm975_vm5, %v8323_v11 }
 0x4a6   :  { %5761 = vmatprep.mubr.msk.bf16.mxu1 %vm975_vm5, %v8320_v33 }
 0x4ad   :  { %5762 = vmatmul.mubr.msk.bf16.gmra.mrb[48].mxu1 %vm975_vm5, %v8335_v30 }
 0x4ae   :  { %5765 = vmatprep.mubr.msk.bf16.mxu1 %vm975_vm5, %v8332_v14 }
 0x4b5   :  { %5766 = vmatmul.mubr.msk.bf16.gmra.mrb[52].mxu1 %vm975_vm5, %v8347_v12 }
 0x4b6   :  { %5769 = vmatprep.mubr.msk.bf16.mxu1 %vm975_vm5, %v8344_v17 }
 0x4bd   :  { %5770 = vmatmul.mubr.msk.bf16.gmra.mrb[56].mxu1 %vm975_vm5, %v8359_v21 }
 0x4be   :  { %5773 = vmatprep.mubr.msk.bf16.mxu1 %vm975_vm5, %v8356_v4 }
 0x4c5   :  { %5774 = vmatmul.mubr.msk.bf16.gmra.mrb[60].mxu1 %vm975_vm5, %v8371_v31 }
 0x4c6   :  { %5779 = vmatprep.mubr.msk.bf16.mxu1 %vm975_vm5, %v8169_v48  ;;  %v2645_v48 = vld [vmem:[#allocation2 + $0x227] sm:$0xff] }
 0x4cd   :  { %5780 = vmatmul.mubr.msk.bf16.vlgmr.msra.gmra.mrb[0].mxu1 %vm975_vm5, %v8197_v10 }
 0x4ce   :  { %5783 = vmatprep.mubr.msk.bf16.mxu1 %vm975_vm5, %v8194_v47  ;;  %v2646_v47 = vld [vmem:[#allocation2 + $0x22f] sm:$0xff] }
 0x4cf   :  { %v2700_v10 = vpack.c.bf16 %v2646_v47, %v2645_v48 }
 0x4d5   :  { %5784 = vmatmul.mubr.msk.bf16.gmra.mrb[4].mxu1 %vm975_vm5, %v8213_v29 }
 0x4d6   :  { %5787 = vmatprep.mubr.msk.bf16.mxu1 %vm975_vm5, %v8210_v40  ;;  %v3006_v40 = vpop.permute.xlu0 %3005 }
 0x4d7   :  { %v3204_v29 = vsel %vm27_vm0, %v2700_v10, %v3006_v40 }
 0x4dd   :  { %5788 = vmatmul.mubr.msk.bf16.gmra.mrb[8].mxu1 %vm975_vm5, %v8225_v9 }
 0x4de   :  { %5791 = vmatprep.mubr.msk.bf16.mxu1 %vm975_vm5, %v8222_v19  ;;  %v3114_v19 = vpop.permute.xlu1 %3113 }
 0x4df   :  { %v3294_v9 = vsel %vm892_vm4, %v3204_v29, %v3114_v19 }
 0x4e5   :  { %5792 = vmatmul.mubr.msk.bf16.gmra.mrb[12].mxu1 %vm975_vm5, %v8237_v35  ;;  %v2682_v35 = vld [vmem:[#allocation2 + $0x46f] sm:$0xff] }
 0x4e6   :  { %5795 = vmatprep.mubr.msk.bf16.mxu1 %vm975_vm5, %v8234_v34  ;;  %v2681_v34 = vld [vmem:[#allocation2 + $0x467] sm:$0xff] }
 0x4ed   :  { %5796 = vmatmul.mubr.msk.bf16.gmra.mrb[16].mxu1 %vm975_vm5, %v8249_v18  ;;  %v3042_v18 = vpop.permute.xlu0 %3041 }
 0x4ee   :  { %5799 = vmatprep.mubr.msk.bf16.mxu1 %vm975_vm5, %v8246_v5  ;;  %v2718_v5 = vpack.c.bf16 %v2682_v35, %v2681_v34 }
 0x4f5   :  { %5800 = vmatmul.mubr.msk.bf16.gmra.mrb[20].mxu1 %vm975_vm5, %v8261_v20  ;;  %v3150_v20 = vpop.permute.xlu1 %3149 }
 0x4f6   :  { %5803 = vmatprep.mubr.msk.bf16.mxu1 %vm975_vm5, %v8258_v44  ;;  %v3258_v44 = vsel %vm27_vm0, %v2718_v5, %v3042_v18 }
 0x4fd   :  { %5804 = vmatmul.mubr.msk.bf16.gmra.mrb[24].mxu1 %vm975_vm5, %v8273_v7 }
 0x4fe   :  { %5807 = vmatprep.mubr.msk.bf16.mxu1 %vm975_vm5, %v8270_v25  ;;  %v3330_v25 = vsel %vm892_vm4, %v3258_v44, %v3150_v20 }
 0x505   :  { %5808 = vmatmul.mubr.msk.bf16.gmra.mrb[28].mxu1 %vm975_vm5, %v3294_v9 }
 0x506   :  { %5811 = vmatprep.mubr.msk.bf16.mxu1 %vm975_vm5, %v8282_v38 }
 0x50d   :  { %5812 = vmatmul.mubr.msk.bf16.gmra.mrb[32].mxu1 %vm975_vm5, %v8298_v55 }
 0x50e   :  { %5815 = vmatprep.mubr.msk.bf16.mxu1 %vm975_vm5, %v8295_v51 }
 0x515   :  { %5816 = vmatmul.mubr.msk.bf16.gmra.mrb[36].mxu1 %vm975_vm5, %v8311_v3 }
 0x516   :  { %5819 = vmatprep.mubr.msk.bf16.mxu1 %vm975_vm5, %v8308_v49 }
 0x51d   :  { %5820 = vmatmul.mubr.msk.bf16.gmra.mrb[40].mxu1 %vm975_vm5, %v8323_v11 }
 0x51e   :  { %5823 = vmatprep.mubr.msk.bf16.mxu1 %vm975_vm5, %v8320_v33 }
 0x525   :  { %5824 = vmatmul.mubr.msk.bf16.gmra.mrb[44].mxu1 %vm975_vm5, %v8335_v30 }
 0x526   :  { %5827 = vmatprep.mubr.msk.bf16.mxu1 %vm975_vm5, %v8332_v14 }
 0x52d   :  { %5828 = vmatmul.mubr.msk.bf16.gmra.mrb[48].mxu1 %vm975_vm5, %v8347_v12 }
 0x52e   :  { %5831 = vmatprep.mubr.msk.bf16.mxu1 %vm975_vm5, %v8344_v17 }
 0x535   :  { %5832 = vmatmul.mubr.msk.bf16.gmra.mrb[52].mxu1 %vm975_vm5, %v8359_v21 }
 0x536   :  { %5835 = vmatprep.mubr.msk.bf16.mxu1 %vm975_vm5, %v8356_v4 }
 0x53d   :  { %5836 = vmatmul.mubr.msk.bf16.gmra.mrb[56].mxu1 %vm975_vm5, %v8371_v31 }
 0x53e   :  { %5839 = vmatprep.mubr.msk.bf16.mxu1 %vm975_vm5, %v8368_v39 }
 0x545   :  { %5840 = vmatmul.mubr.msk.bf16.gmra.mrb[60].mxu1 %vm975_vm5, %v3330_v25 }
 0x5a0   :  { %v8513_v7 = vpop.f32.mrb[0].mxu1 }
 0x5a1   :  { %v8515_v38 = vpop.f32.mrb[1].mxu1  ;;  %v4501_v49 = vmul.f32 %v8513_v7, %v8513_v7  ;;  %v4369_v30 = vsel %vm27_vm0, %v8513_v7, 0.0 }
 0x5a2   :  { %v4499_v1 = vmul.f32 %v8515_v38, %v8515_v38  ;;  %v8519_v51 = vpop.f32.mrb[2].mxu1  ;;  %v4366_v3 = vsel %vm27_vm0, %v8515_v38, 0.0 }
 0x5a3   :  { %v8521_v55 = vpop.f32.mrb[3].mxu1  ;;  %v4502_v12 = vmul.f32 %v8519_v51, %v8519_v51  ;;  %v4566_v37 = vsel %vm27_vm0, %v4501_v49, 0.0  ;;  %v4371_v60 = vsel %vm27_vm0, %v8519_v51, 0.0 }
 0x5a4   :  { %v4367_v33 = vsel %vm27_vm0, %v8521_v55, 0.0  ;;  %v4500_v11 = vmul.f32 %v8521_v55, %v8521_v55  ;;  %v4563_v17 = vsel %vm27_vm0, %v4499_v1, 0.0 }
 0x5a5   :  { %v4368_v14 = vadd.f32 %v4367_v33, %v4366_v3  ;;  %v4568_v54 = vsel %vm27_vm0, %v4502_v12, 0.0 }
 0x5a6   :  { %v4564_v4 = vsel %vm27_vm0, %v4500_v11, 0.0 }
 0x5a7   :  { %v4370_v21 = vadd.f32 %v4369_v30, %v4368_v14  ;;  %v4565_v32 = vadd.f32 %v4564_v4, %v4563_v17 }
 0x5a8   :  { %v8540_v42 = vpop.f32.mrb[4].mxu1 }
 0x5a9   :  { %v4567_v28 = vadd.f32 %v4566_v37, %v4565_v32  ;;  %v8542_v36 = vpop.f32.mrb[5].mxu1  ;;  %v4372_v59 = vadd.f32 %v4371_v60, %v4370_v21  ;;  %v4505_v39 = vmul.f32 %v8540_v42, %v8540_v42  ;;  %v4377_v56 = vsel %vm27_vm0, %v8540_v42, 0.0 }
 0x5aa   :  { %v4373_v50 = vsel %vm27_vm0, %v8542_v36, 0.0  ;;  %v4503_v62 = vmul.f32 %v8542_v36, %v8542_v36  ;;  %v8549_v6 = vpop.f32.mrb[6].mxu1 }
 0x5ab   :  { %v4374_v0 = vadd.f32 %v4373_v50, %v4372_v59  ;;  %v4569_v13 = vadd.f32 %v4568_v54, %v4567_v28  ;;  %v8551_v8 = vpop.f32.mrb[7].mxu1  ;;  %v4506_v57 = vmul.f32 %v8549_v6, %v8549_v6  ;;  %v4574_v61 = vsel %vm27_vm0, %v4505_v39, 0.0 }
 0x5ac   :  { %v4570_v31 = vsel %vm27_vm0, %v4503_v62, 0.0  ;;  %v4375_v58 = vsel %vm27_vm0, %v8551_v8, 0.0  ;;  %v4504_v24 = vmul.f32 %v8551_v8, %v8551_v8  ;;  %v4379_v41 = vsel %vm27_vm0, %v8549_v6, 0.0 }
 0x5ad   :  { %v4571_v2 = vadd.f32 %v4570_v31, %v4569_v13  ;;  %v4376_v26 = vadd.f32 %v4375_v58, %v4374_v0  ;;  %v4576_v22 = vsel %vm27_vm0, %v4506_v57, 0.0 }
 0x5ae   :  { %v4572_v15 = vsel %vm27_vm0, %v4504_v24, 0.0 }
 0x5af   :  { %v4378_v52 = vadd.f32 %v4377_v56, %v4376_v26  ;;  %v4573_v45 = vadd.f32 %v4572_v15, %v4571_v2 }
 0x5b0   :  { %v8568_v53 = vpop.f32.mrb[8].mxu1 }
 0x5b1   :  { %v4575_v63 = vadd.f32 %v4574_v61, %v4573_v45  ;;  %v8570_v46 = vpop.f32.mrb[9].mxu1  ;;  %v4380_v23 = vadd.f32 %v4379_v41, %v4378_v52  ;;  %v4509_v40 = vmul.f32 %v8568_v53, %v8568_v53  ;;  %v4385_v5 = vsel %vm27_vm0, %v8568_v53, 0.0 }
 0x5b2   :  { %v4381_v43 = vsel %vm27_vm0, %v8570_v46, 0.0  ;;  %v4507_v16 = vmul.f32 %v8570_v46, %v8570_v46  ;;  %v8577_v27 = vpop.f32.mrb[10].mxu1 }
 0x5b3   :  { %v4382_v48 = vadd.f32 %v4381_v43, %v4380_v23  ;;  %v4577_v47 = vadd.f32 %v4576_v22, %v4575_v63  ;;  %v8579_v10 = vpop.f32.mrb[11].mxu1  ;;  %v4510_v18 = vmul.f32 %v8577_v27, %v8577_v27  ;;  %v4582_v1 = vsel %vm27_vm0, %v4509_v40, 0.0 }
 0x5b4   :  { %v4578_v29 = vsel %vm27_vm0, %v4507_v16, 0.0  ;;  %v4383_v19 = vsel %vm27_vm0, %v8579_v10, 0.0  ;;  %v4508_v9 = vmul.f32 %v8579_v10, %v8579_v10  ;;  %v4387_v49 = vsel %vm27_vm0, %v8577_v27, 0.0 }
 0x5b5   :  { %v4579_v34 = vadd.f32 %v4578_v29, %v4577_v47  ;;  %v4384_v35 = vadd.f32 %v4383_v19, %v4382_v48  ;;  %v4584_v30 = vsel %vm27_vm0, %v4510_v18, 0.0 }
 0x5b6   :  { %v4580_v44 = vsel %vm27_vm0, %v4508_v9, 0.0 }
 0x5b7   :  { %v4386_v20 = vadd.f32 %v4385_v5, %v4384_v35  ;;  %v4581_v25 = vadd.f32 %v4580_v44, %v4579_v34 }
 0x5b8   :  { %v8596_v3 = vpop.f32.mrb[12].mxu1 }
 0x5b9   :  { %v4583_v33 = vadd.f32 %v4582_v1, %v4581_v25  ;;  %v8598_v11 = vpop.f32.mrb[13].mxu1  ;;  %v4388_v14 = vadd.f32 %v4387_v49, %v4386_v20  ;;  %v4513_v60 = vmul.f32 %v8596_v3, %v8596_v3  ;;  %v4393_v0 = vsel %vm27_vm0, %v8596_v3, 0.0 }
 0x5ba   :  { %v4389_v17 = vsel %vm27_vm0, %v8598_v11, 0.0  ;;  %v4511_v12 = vmul.f32 %v8598_v11, %v8598_v11  ;;  %v8605_v4 = vpop.f32.mrb[14].mxu1 }
 0x5bb   :  { %v4390_v21 = vadd.f32 %v4389_v17, %v4388_v14  ;;  %v4585_v32 = vadd.f32 %v4584_v30, %v4583_v33  ;;  %v8607_v37 = vpop.f32.mrb[15].mxu1  ;;  %v4514_v13 = vmul.f32 %v8605_v4, %v8605_v4  ;;  %v4590_v24 = vsel %vm27_vm0, %v4513_v60, 0.0 }
 0x5bc   :  { %v4586_v28 = vsel %vm27_vm0, %v4511_v12, 0.0  ;;  %v4391_v59 = vsel %vm27_vm0, %v8607_v37, 0.0  ;;  %v4512_v54 = vmul.f32 %v8607_v37, %v8607_v37  ;;  %v4395_v2 = vsel %vm27_vm0, %v8605_v4, 0.0 }
 0x5bd   :  { %v4587_v50 = vadd.f32 %v4586_v28, %v4585_v32  ;;  %v4392_v62 = vadd.f32 %v4391_v59, %v4390_v21  ;;  %v4592_v52 = vsel %vm27_vm0, %v4514_v13, 0.0 }
 0x5be   :  { %v4588_v39 = vsel %vm27_vm0, %v4512_v54, 0.0 }
 0x5bf   :  { %v4394_v31 = vadd.f32 %v4393_v0, %v4392_v62  ;;  %v4589_v58 = vadd.f32 %v4588_v39, %v4587_v50 }
 0x5c0   :  { %v8624_v26 = vpop.f32.mrb[16].mxu1 }
 0x5c1   :  { %v4591_v56 = vadd.f32 %v4590_v24, %v4589_v58  ;;  %v8626_v57 = vpop.f32.mrb[17].mxu1  ;;  %v4396_v15 = vadd.f32 %v4395_v2, %v4394_v31  ;;  %v4517_v43 = vmul.f32 %v8624_v26, %v8624_v26  ;;  %v4401_v19 = vsel %vm27_vm0, %v8624_v26, 0.0 }
 0x5c2   :  { %v4397_v45 = vsel %vm27_vm0, %v8626_v57, 0.0  ;;  %v4515_v61 = vmul.f32 %v8626_v57, %v8626_v57  ;;  %v8633_v41 = vpop.f32.mrb[18].mxu1 }
 0x5c3   :  { %v4398_v63 = vadd.f32 %v4397_v45, %v4396_v15  ;;  %v4593_v23 = vadd.f32 %v4592_v52, %v4591_v56  ;;  %v8635_v22 = vpop.f32.mrb[19].mxu1  ;;  %v4518_v9 = vmul.f32 %v8633_v41, %v8633_v41  ;;  %v4598_v18 = vsel %vm27_vm0, %v4517_v43, 0.0 }
 0x5c4   :  { %v4594_v16 = vsel %vm27_vm0, %v4515_v61, 0.0  ;;  %v4399_v48 = vsel %vm27_vm0, %v8635_v22, 0.0  ;;  %v4516_v47 = vmul.f32 %v8635_v22, %v8635_v22  ;;  %v4403_v44 = vsel %vm27_vm0, %v8633_v41, 0.0 }
 0x5c5   :  { %v4595_v40 = vadd.f32 %v4594_v16, %v4593_v23  ;;  %v4400_v29 = vadd.f32 %v4399_v48, %v4398_v63  ;;  %v4600_v33 = vsel %vm27_vm0, %v4518_v9, 0.0 }
 0x5c6   :  { %v4596_v34 = vsel %vm27_vm0, %v4516_v47, 0.0 }
 0x5c7   :  { %v4402_v35 = vadd.f32 %v4401_v19, %v4400_v29  ;;  %v4597_v5 = vadd.f32 %v4596_v34, %v4595_v40 }
 0x5c8   :  { %v8652_v20 = vpop.f32.mrb[20].mxu1 }
 0x5c9   :  { %v4599_v25 = vadd.f32 %v4598_v18, %v4597_v5  ;;  %v8654_v1 = vpop.f32.mrb[21].mxu1  ;;  %v4404_v49 = vadd.f32 %v4403_v44, %v4402_v35  ;;  %v4521_v60 = vmul.f32 %v8652_v20, %v8652_v20  ;;  %v4409_v0 = vsel %vm27_vm0, %v8652_v20, 0.0 }
 0x5ca   :  { %v4405_v14 = vsel %vm27_vm0, %v8654_v1, 0.0  ;;  %v4519_v30 = vmul.f32 %v8654_v1, %v8654_v1  ;;  %v8661_v17 = vpop.f32.mrb[22].mxu1 }
 0x5cb   :  { %v4406_v12 = vadd.f32 %v4405_v14, %v4404_v49  ;;  %v4601_v21 = vadd.f32 %v4600_v33, %v4599_v25  ;;  %v8663_v32 = vpop.f32.mrb[23].mxu1  ;;  %v4522_v13 = vmul.f32 %v8661_v17, %v8661_v17  ;;  %v4606_v24 = vsel %vm27_vm0, %v4521_v60, 0.0 }
 0x5cc   :  { %v4602_v28 = vsel %vm27_vm0, %v4519_v30, 0.0  ;;  %v4407_v59 = vsel %vm27_vm0, %v8663_v32, 0.0  ;;  %v4520_v54 = vmul.f32 %v8663_v32, %v8663_v32  ;;  %v4411_v2 = vsel %vm27_vm0, %v8661_v17, 0.0 }
 0x5cd   :  { %v4603_v50 = vadd.f32 %v4602_v28, %v4601_v21  ;;  %v4408_v62 = vadd.f32 %v4407_v59, %v4406_v12  ;;  %v4608_v61 = vsel %vm27_vm0, %v4522_v13, 0.0 }
 0x5ce   :  { %v4604_v39 = vsel %vm27_vm0, %v4520_v54, 0.0 }
 0x5cf   :  { %v4410_v31 = vadd.f32 %v4409_v0, %v4408_v62  ;;  %v4605_v58 = vadd.f32 %v4604_v39, %v4603_v50 }
 0x5d0   :  { %v8680_v56 = vpop.f32.mrb[24].mxu1 }
 0x5d1   :  { %v4607_v15 = vadd.f32 %v4606_v24, %v4605_v58  ;;  %v8682_v52 = vpop.f32.mrb[25].mxu1  ;;  %v4412_v45 = vadd.f32 %v4411_v2, %v4410_v31  ;;  %v4525_v40 = vmul.f32 %v8680_v56, %v8680_v56  ;;  %v4417_v5 = vsel %vm27_vm0, %v8680_v56, 0.0 }
 0x5d2   :  { %v4413_v63 = vsel %vm27_vm0, %v8682_v52, 0.0  ;;  %v4523_v23 = vmul.f32 %v8682_v52, %v8682_v52  ;;  %v8689_v43 = vpop.f32.mrb[26].mxu1 }
 0x5d3   :  { %v4414_v16 = vadd.f32 %v4413_v63, %v4412_v45  ;;  %v4609_v48 = vadd.f32 %v4608_v61, %v4607_v15  ;;  %v8691_v47 = vpop.f32.mrb[27].mxu1  ;;  %v4526_v18 = vmul.f32 %v8689_v43, %v8689_v43  ;;  %v4614_v33 = vsel %vm27_vm0, %v4525_v40, 0.0 }
 0x5d4   :  { %v4610_v29 = vsel %vm27_vm0, %v4523_v23, 0.0  ;;  %v4415_v19 = vsel %vm27_vm0, %v8691_v47, 0.0  ;;  %v4524_v9 = vmul.f32 %v8691_v47, %v8691_v47  ;;  %v4419_v14 = vsel %vm27_vm0, %v8689_v43, 0.0 }
 0x5d5   :  { %v4611_v34 = vadd.f32 %v4610_v29, %v4609_v48  ;;  %v4416_v35 = vadd.f32 %v4415_v19, %v4414_v16  ;;  %v4616_v28 = vsel %vm27_vm0, %v4526_v18, 0.0 }
 0x5d6   :  { %v4612_v44 = vsel %vm27_vm0, %v4524_v9, 0.0 }
 0x5d7   :  { %v4418_v25 = vadd.f32 %v4417_v5, %v4416_v35  ;;  %v4613_v49 = vadd.f32 %v4612_v44, %v4611_v34 }
 0x5d8   :  { %v8708_v30 = vpop.f32.mrb[28].mxu1 }
 0x5d9   :  { %v4615_v12 = vadd.f32 %v4614_v33, %v4613_v49  ;;  %v8710_v21 = vpop.f32.mrb[29].mxu1  ;;  %v4420_v60 = vadd.f32 %v4419_v14, %v4418_v25  ;;  %v4529_v39 = vmul.f32 %v8708_v30, %v8708_v30  ;;  %v4425_v45 = vsel %vm27_vm0, %v8708_v30, 0.0 }
 0x5da   :  { %v4421_v59 = vsel %vm27_vm0, %v8710_v21, 0.0  ;;  %v4527_v54 = vmul.f32 %v8710_v21, %v8710_v21  ;;  %v8717_v50 = vpop.f32.mrb[30].mxu1 }
 0x5db   :  { %v4422_v62 = vadd.f32 %v4421_v59, %v4420_v60  ;;  %v4617_v0 = vadd.f32 %v4616_v28, %v4615_v12  ;;  %v8719_v13 = vpop.f32.mrb[31].mxu1  ;;  %v4530_v61 = vmul.f32 %v8717_v50, %v8717_v50  ;;  %v4622_v48 = vsel %vm27_vm0, %v4529_v39, 0.0 }
 0x5dc   :  { %v4618_v31 = vsel %vm27_vm0, %v4527_v54, 0.0  ;;  %v4423_v58 = vsel %vm27_vm0, %v8719_v13, 0.0  ;;  %v4528_v24 = vmul.f32 %v8719_v13, %v8719_v13  ;;  %v4427_v40 = vsel %vm27_vm0, %v8717_v50, 0.0 }
 0x5dd   :  { %v4619_v2 = vadd.f32 %v4618_v31, %v4617_v0  ;;  %v4424_v15 = vadd.f32 %v4423_v58, %v4422_v62  ;;  %v4624_v35 = vsel %vm27_vm0, %v4530_v61, 0.0 }
 0x5de   :  { %v4620_v63 = vsel %vm27_vm0, %v4528_v24, 0.0 }
 0x5df   :  { %v4426_v23 = vadd.f32 %v4425_v45, %v4424_v15  ;;  %v4621_v16 = vadd.f32 %v4620_v63, %v4619_v2 }
 0x5e0   :  { %v8736_v29 = vpop.f32.mrb[32].mxu1 }
 0x5e1   :  { %v4623_v19 = vadd.f32 %v4622_v48, %v4621_v16  ;;  %v8738_v9 = vpop.f32.mrb[33].mxu1  ;;  %v4428_v34 = vadd.f32 %v4427_v40, %v4426_v23  ;;  %v4533_v14 = vmul.f32 %v8736_v29, %v8736_v29  ;;  %v4433_v62 = vsel %vm27_vm0, %v8736_v29, 0.0 }
 0x5e2   :  { %v4429_v5 = vsel %vm27_vm0, %v8738_v9, 0.0  ;;  %v4531_v18 = vmul.f32 %v8738_v9, %v8738_v9  ;;  %v8745_v44 = vpop.f32.mrb[34].mxu1 }
 0x5e3   :  { %v4430_v25 = vadd.f32 %v4429_v5, %v4428_v34  ;;  %v4625_v49 = vadd.f32 %v4624_v35, %v4623_v19  ;;  %v8747_v33 = vpop.f32.mrb[35].mxu1  ;;  %v4534_v0 = vmul.f32 %v8745_v44, %v8745_v44  ;;  %v4630_v24 = vsel %vm27_vm0, %v4533_v14, 0.0 }
 0x5e4   :  { %v4626_v12 = vsel %vm27_vm0, %v4531_v18, 0.0  ;;  %v4431_v60 = vsel %vm27_vm0, %v8747_v33, 0.0  ;;  %v4532_v28 = vmul.f32 %v8747_v33, %v8747_v33  ;;  %v4435_v2 = vsel %vm27_vm0, %v8745_v44, 0.0 }
 0x5e5   :  { %v4627_v59 = vadd.f32 %v4626_v12, %v4625_v49  ;;  %v4432_v54 = vadd.f32 %v4431_v60, %v4430_v25  ;;  %v4632_v23 = vsel %vm27_vm0, %v4534_v0, 0.0 }
 0x5e6   :  { %v4628_v39 = vsel %vm27_vm0, %v4532_v28, 0.0 }
 0x5e7   :  { %v4434_v31 = vadd.f32 %v4433_v62, %v4432_v54  ;;  %v4629_v58 = vadd.f32 %v4628_v39, %v4627_v59 }
 0x5e8   :  { %v8764_v15 = vpop.f32.mrb[36].mxu1 }
 0x5e9   :  { %v4631_v45 = vadd.f32 %v4630_v24, %v4629_v58  ;;  %v8766_v61 = vpop.f32.mrb[37].mxu1  ;;  %v4436_v63 = vadd.f32 %v4435_v2, %v4434_v31  ;;  %v4537_v5 = vmul.f32 %v8764_v15, %v8764_v15  ;;  %v4441_v60 = vsel %vm27_vm0, %v8764_v15, 0.0 }
 0x5ea   :  { %v4437_v16 = vsel %vm27_vm0, %v8766_v61, 0.0  ;;  %v4535_v48 = vmul.f32 %v8766_v61, %v8766_v61  ;;  %v8773_v40 = vpop.f32.mrb[38].mxu1 }
 0x5eb   :  { %v4438_v19 = vadd.f32 %v4437_v16, %v4436_v63  ;;  %v4633_v34 = vadd.f32 %v4632_v23, %v4631_v45  ;;  %v8775_v35 = vpop.f32.mrb[39].mxu1  ;;  %v4538_v28 = vmul.f32 %v8773_v40, %v8773_v40  ;;  %v4638_v0 = vsel %vm27_vm0, %v4537_v5, 0.0 }
 0x5ec   :  { %v4634_v18 = vsel %vm27_vm0, %v4535_v48, 0.0  ;;  %v4439_v25 = vsel %vm27_vm0, %v8775_v35, 0.0  ;;  %v4536_v49 = vmul.f32 %v8775_v35, %v8775_v35  ;;  %v4443_v39 = vsel %vm27_vm0, %v8773_v40, 0.0 }
 0x5ed   :  { %v4635_v14 = vadd.f32 %v4634_v18, %v4633_v34  ;;  %v4440_v12 = vadd.f32 %v4439_v25, %v4438_v19  ;;  %v4640_v45 = vsel %vm27_vm0, %v4538_v28, 0.0 }
 0x5ee   :  { %v4636_v59 = vsel %vm27_vm0, %v4536_v49, 0.0 }
 0x5ef   :  { %v4442_v54 = vadd.f32 %v4441_v60, %v4440_v12  ;;  %v4637_v62 = vadd.f32 %v4636_v59, %v4635_v14 }
 0x5f0   :  { %v8792_v31 = vpop.f32.mrb[40].mxu1 }
 0x5f1   :  { %10139 = vst [vmem:[#allocation17_spill] sm:$0xff] %v8792_v31  ;;  %v4639_v58 = vadd.f32 %v4638_v0, %v4637_v62  ;;  %v8794_v24 = vpop.f32.mrb[41].mxu1  ;;  %v4444_v2 = vadd.f32 %v4443_v39, %v4442_v54  ;;  %v4541_v5 = vmul.f32 %v8792_v31, %v8792_v31  ;;  %v4449_v60 = vsel %vm27_vm0, %v8792_v31, 0.0 }
 0x5f2   :  { %10140 = vst [vmem:[#allocation19_spill] sm:$0xff] %v8794_v24  ;;  %v4445_v63 = vsel %vm27_vm0, %v8794_v24, 0.0  ;;  %v4539_v23 = vmul.f32 %v8794_v24, %v8794_v24  ;;  %v8801_v16 = vpop.f32.mrb[42].mxu1 }
 0x5f3   :  { %10141 = vst [vmem:[#allocation16_spill] sm:$0xff] %v8801_v16  ;;  %v4446_v48 = vadd.f32 %v4445_v63, %v4444_v2  ;;  %v4641_v19 = vadd.f32 %v4640_v45, %v4639_v58  ;;  %v8803_v34 = vpop.f32.mrb[43].mxu1  ;;  %v4542_v28 = vmul.f32 %v8801_v16, %v8801_v16  ;;  %v4646_v0 = vsel %vm27_vm0, %v4541_v5, 0.0 }
 0x5f4   :  { %10142 = vst [vmem:[#allocation18_spill] sm:$0xff] %v8803_v34  ;;  %v4642_v18 = vsel %vm27_vm0, %v4539_v23, 0.0  ;;  %v4447_v25 = vsel %vm27_vm0, %v8803_v34, 0.0  ;;  %v4540_v49 = vmul.f32 %v8803_v34, %v8803_v34  ;;  %v4451_v39 = vsel %vm27_vm0, %v8801_v16, 0.0 }
 0x5f5   :  { %v4643_v14 = vadd.f32 %v4642_v18, %v4641_v19  ;;  %v4448_v12 = vadd.f32 %v4447_v25, %v4446_v48  ;;  %v4648_v23 = vsel %vm27_vm0, %v4542_v28, 0.0 }
 0x5f6   :  { %v4644_v59 = vsel %vm27_vm0, %v4540_v49, 0.0 }
 0x5f7   :  { %v4450_v54 = vadd.f32 %v4449_v60, %v4448_v12  ;;  %v4645_v62 = vadd.f32 %v4644_v59, %v4643_v14 }
 0x5f8   :  { %v8820_v58 = vpop.f32.mrb[44].mxu1 }
 0x5f9   :  { %10143 = vst [vmem:[#allocation21_spill] sm:$0xff] %v8820_v58  ;;  %v4647_v2 = vadd.f32 %v4646_v0, %v4645_v62  ;;  %v8822_v45 = vpop.f32.mrb[45].mxu1  ;;  %v4452_v63 = vadd.f32 %v4451_v39, %v4450_v54  ;;  %v4545_v14 = vmul.f32 %v8820_v58, %v8820_v58  ;;  %v4457_v62 = vsel %vm27_vm0, %v8820_v58, 0.0 }
 0x5fa   :  { %10144 = vst [vmem:[#allocation23_spill] sm:$0xff] %v8822_v45  ;;  %v4453_v48 = vsel %vm27_vm0, %v8822_v45, 0.0  ;;  %v4543_v19 = vmul.f32 %v8822_v45, %v8822_v45  ;;  %v8829_v18 = vpop.f32.mrb[46].mxu1 }
 0x5fb   :  { %10145 = vst [vmem:[#allocation20_spill] sm:$0xff] %v8829_v18  ;;  %v4454_v5 = vadd.f32 %v4453_v48, %v4452_v63  ;;  %v4649_v25 = vadd.f32 %v4648_v23, %v4647_v2  ;;  %v8831_v49 = vpop.f32.mrb[47].mxu1  ;;  %v4546_v0 = vmul.f32 %v8829_v18, %v8829_v18  ;;  %v4654_v23 = vsel %vm27_vm0, %v4545_v14, 0.0 }
 0x5fc   :  { %10146 = vst [vmem:[#allocation22_spill] sm:$0xff] %v8831_v49  ;;  %v4650_v12 = vsel %vm27_vm0, %v4543_v19, 0.0  ;;  %v4455_v60 = vsel %vm27_vm0, %v8831_v49, 0.0  ;;  %v4544_v28 = vmul.f32 %v8831_v49, %v8831_v49  ;;  %v4459_v48 = vsel %vm27_vm0, %v8829_v18, 0.0 }
 0x5fd   :  { %v4651_v59 = vadd.f32 %v4650_v12, %v4649_v25  ;;  %v4456_v54 = vadd.f32 %v4455_v60, %v4454_v5  ;;  %v4656_v12 = vsel %vm27_vm0, %v4546_v0, 0.0 }
 0x5fe   :  { %v4652_v39 = vsel %vm27_vm0, %v4544_v28, 0.0 }
 0x5ff   :  { %v4458_v2 = vadd.f32 %v4457_v62, %v4456_v54  ;;  %v4653_v63 = vadd.f32 %v4652_v39, %v4651_v59 }
 0x600   :  { %v8848_v19 = vpop.f32.mrb[48].mxu1 }
 0x601   :  { %10147 = vst [vmem:[#allocation25_spill] sm:$0xff] %v8848_v19  ;;  %v4655_v49 = vadd.f32 %v4654_v23, %v4653_v63  ;;  %v8850_v25 = vpop.f32.mrb[49].mxu1  ;;  %v4460_v5 = vadd.f32 %v4459_v48, %v4458_v2  ;;  %v4549_v39 = vmul.f32 %v8848_v19, %v8848_v19 }
 0x602   :  { %10148 = vst [vmem:[#allocation24_spill] sm:$0xff] %v8850_v25  ;;  %v4461_v60 = vsel %vm27_vm0, %v8850_v25, 0.0  ;;  %v4547_v28 = vmul.f32 %v8850_v25, %v8850_v25  ;;  %v8857_v59 = vpop.f32.mrb[50].mxu1  ;;  %v4465_v25 = vsel %vm27_vm0, %v8848_v19, 0.0 }
 0x603   :  { %10149 = vst [vmem:[#allocation26_spill] sm:$0xff] %v8857_v59  ;;  %v4462_v14 = vadd.f32 %v4461_v60, %v4460_v5  ;;  %v4657_v54 = vadd.f32 %v4656_v12, %v4655_v49  ;;  %v8859_v62 = vpop.f32.mrb[51].mxu1  ;;  %v4550_v49 = vmul.f32 %v8857_v59, %v8857_v59  ;;  %v4467_v18 = vsel %vm27_vm0, %v8857_v59, 0.0 }
 0x604   :  { %10150 = vst [vmem:[#allocation3_spill] sm:$0xff] %v8859_v62  ;;  %v4658_v63 = vsel %vm27_vm0, %v4547_v28, 0.0  ;;  %v4463_v0 = vsel %vm27_vm0, %v8859_v62, 0.0  ;;  %v4548_v2 = vmul.f32 %v8859_v62, %v8859_v62  ;;  %v4662_v28 = vsel %vm27_vm0, %v4549_v39, 0.0 }
 0x605   :  { %v4659_v23 = vadd.f32 %v4658_v63, %v4657_v54  ;;  %v4464_v48 = vadd.f32 %v4463_v0, %v4462_v14  ;;  %v4664_v63 = vsel %vm27_vm0, %v4550_v49, 0.0 }
 0x606   :  { %v4660_v5 = vsel %vm27_vm0, %v4548_v2, 0.0 }
 0x607   :  { %v4466_v12 = vadd.f32 %v4465_v25, %v4464_v48  ;;  %v4661_v60 = vadd.f32 %v4660_v5, %v4659_v23 }
 0x608   :  { %v8876_v58 = vpop.f32.mrb[52].mxu1 }
 0x609   :  { %10151 = vst [vmem:[#allocation5_spill] sm:$0xff] %v8876_v58  ;;  %v4663_v62 = vadd.f32 %v4662_v28, %v4661_v60  ;;  %v8878_v54 = vpop.f32.mrb[53].mxu1  ;;  %v4468_v14 = vadd.f32 %v4467_v18, %v4466_v12  ;;  %v4553_v5 = vmul.f32 %v8876_v58, %v8876_v58 }
 0x60a   :  { %10152 = vst [vmem:[#allocation7_spill] sm:$0xff] %v8878_v54  ;;  %v4469_v0 = vsel %vm27_vm0, %v8878_v54, 0.0  ;;  %v4551_v25 = vmul.f32 %v8878_v54, %v8878_v54  ;;  %v8885_v2 = vpop.f32.mrb[54].mxu1  ;;  %v4473_v54 = vsel %vm27_vm0, %v8876_v58, 0.0 }
 0x60b   :  { %10153 = vst [vmem:[#allocation4_spill] sm:$0xff] %v8885_v2  ;;  %v4470_v39 = vadd.f32 %v4469_v0, %v4468_v14  ;;  %v4665_v23 = vadd.f32 %v4664_v63, %v4663_v62  ;;  %v8887_v48 = vpop.f32.mrb[55].mxu1  ;;  %v4554_v62 = vmul.f32 %v8885_v2, %v8885_v2  ;;  %v4475_v59 = vsel %vm27_vm0, %v8885_v2, 0.0 }
 0x60c   :  { %10154 = vst [vmem:[#allocation6_spill] sm:$0xff] %v8887_v48  ;;  %v4666_v60 = vsel %vm27_vm0, %v4551_v25, 0.0  ;;  %v4471_v18 = vsel %vm27_vm0, %v8887_v48, 0.0  ;;  %v4552_v49 = vmul.f32 %v8887_v48, %v8887_v48  ;;  %v4670_v25 = vsel %vm27_vm0, %v4553_v5, 0.0 }
 0x60d   :  { %v4667_v12 = vadd.f32 %v4666_v60, %v4665_v23  ;;  %v4472_v28 = vadd.f32 %v4471_v18, %v4470_v39  ;;  %v4672_v60 = vsel %vm27_vm0, %v4554_v62, 0.0 }
 0x60e   :  { %v4668_v14 = vsel %vm27_vm0, %v4552_v49, 0.0 }
 0x60f   :  { %v4474_v63 = vadd.f32 %v4473_v54, %v4472_v28  ;;  %v4669_v0 = vadd.f32 %v4668_v14, %v4667_v12 }
 0x610   :  { %v8904_v19 = vpop.f32.mrb[56].mxu1 }
 0x611   :  { %10155 = vst [vmem:[#allocation9_spill] sm:$0xff] %v8904_v19  ;;  %v4671_v48 = vadd.f32 %v4670_v25, %v4669_v0  ;;  %v8906_v23 = vpop.f32.mrb[57].mxu1  ;;  %v4476_v39 = vadd.f32 %v4475_v59, %v4474_v63  ;;  %v4557_v14 = vmul.f32 %v8904_v19, %v8904_v19 }
 0x612   :  { %10156 = vst [vmem:[#allocation11_spill] sm:$0xff] %v8906_v23  ;;  %v4477_v18 = vsel %vm27_vm0, %v8906_v23, 0.0  ;;  %v4555_v54 = vmul.f32 %v8906_v23, %v8906_v23  ;;  %v8913_v49 = vpop.f32.mrb[58].mxu1  ;;  %v4481_v23 = vsel %vm27_vm0, %v8904_v19, 0.0 }
 0x613   :  { %10157 = vst [vmem:[#allocation8_spill] sm:$0xff] %v8913_v49  ;;  %v4478_v5 = vadd.f32 %v4477_v18, %v4476_v39  ;;  %v4673_v12 = vadd.f32 %v4672_v60, %v4671_v48  ;;  %v8915_v28 = vpop.f32.mrb[59].mxu1  ;;  %v4558_v48 = vmul.f32 %v8913_v49, %v8913_v49  ;;  %v4483_v2 = vsel %vm27_vm0, %v8913_v49, 0.0 }
 0x614   :  { %10158 = vst [vmem:[#allocation10_spill] sm:$0xff] %v8915_v28  ;;  %v4674_v0 = vsel %vm27_vm0, %v4555_v54, 0.0  ;;  %v4479_v59 = vsel %vm27_vm0, %v8915_v28, 0.0  ;;  %v4556_v62 = vmul.f32 %v8915_v28, %v8915_v28  ;;  %v4678_v54 = vsel %vm27_vm0, %v4557_v14, 0.0 }
 0x615   :  { %v4675_v63 = vadd.f32 %v4674_v0, %v4673_v12  ;;  %v4480_v25 = vadd.f32 %v4479_v59, %v4478_v5  ;;  %v4680_v0 = vsel %vm27_vm0, %v4558_v48, 0.0 }
 0x616   :  { %v4676_v39 = vsel %vm27_vm0, %v4556_v62, 0.0 }
 0x617   :  { %v4482_v60 = vadd.f32 %v4481_v23, %v4480_v25  ;;  %v4677_v18 = vadd.f32 %v4676_v39, %v4675_v63 }
 0x618   :  { %v8932_v58 = vpop.f32.mrb[60].mxu1 }
 0x619   :  { %10159 = vst [vmem:[#allocation13_spill] sm:$0xff] %v8932_v58  ;;  %v4679_v28 = vadd.f32 %v4678_v54, %v4677_v18  ;;  %v8934_v12 = vpop.f32.mrb[61].mxu1  ;;  %v4484_v5 = vadd.f32 %v4483_v2, %v4482_v60  ;;  %v4561_v39 = vmul.f32 %v8932_v58, %v8932_v58 }
 0x61a   :  { %10160 = vst [vmem:[#allocation15_spill] sm:$0xff] %v8934_v12  ;;  %v4485_v59 = vsel %vm27_vm0, %v8934_v12, 0.0  ;;  %v4559_v23 = vmul.f32 %v8934_v12, %v8934_v12  ;;  %v8941_v62 = vpop.f32.mrb[62].mxu1  ;;  %v4489_v12 = vsel %vm27_vm0, %v8932_v58, 0.0 }
 0x61b   :  { %10161 = vst [vmem:[#allocation12_spill] sm:$0xff] %v8941_v62  ;;  %v4486_v14 = vadd.f32 %v4485_v59, %v4484_v5  ;;  %v4681_v63 = vadd.f32 %v4680_v0, %v4679_v28  ;;  %v8943_v25 = vpop.f32.mrb[63].mxu1  ;;  %v4562_v28 = vmul.f32 %v8941_v62, %v8941_v62  ;;  %v4491_v49 = vsel %vm27_vm0, %v8941_v62, 0.0 }
 0x61c   :  { %10162 = vst [vmem:[#allocation14_spill] sm:$0xff] %v8943_v25  ;;  %v4682_v18 = vsel %vm27_vm0, %v4559_v23, 0.0  ;;  %v4487_v2 = vsel %vm27_vm0, %v8943_v25, 0.0  ;;  %v4560_v48 = vmul.f32 %v8943_v25, %v8943_v25  ;;  %v4686_v23 = vsel %vm27_vm0, %v4561_v39, 0.0 }
 0x61d   :  { %v4683_v60 = vadd.f32 %v4682_v18, %v4681_v63  ;;  %v4488_v54 = vadd.f32 %v4487_v2, %v4486_v14  ;;  %v4688_v63 = vsel %vm27_vm0, %v4562_v28, 0.0 }
 0x61e   :  { %v4684_v5 = vsel %vm27_vm0, %v4560_v48, 0.0 }
 0x61f   :  { %v4490_v0 = vadd.f32 %v4489_v12, %v4488_v54  ;;  %v4685_v59 = vadd.f32 %v4684_v5, %v4683_v60 }
 0x621   :  { %v4492_v19 = vadd.f32 %v4491_v49, %v4490_v0  ;;  %v4687_v45 = vadd.f32 %v4686_v23, %v4685_v59 }
 0x623   :  { %v4493_v14 = vrot.slane %v4492_v19, 4  ;;  %v4689_v18 = vadd.f32 %v4688_v63, %v4687_v45  ;;  %v4700_v45 = vld [vmem:[%s10011_s5] sm:$0x1] }
 0x625   :  { %v4494_v2 = vadd.f32 %v4493_v14, %v4492_v19  ;;  %v4690_v58 = vrot.slane %v4689_v18, 4  ;;  %v10164_v14 = vld [vmem:[#allocation19_spill] sm:$0xff] }
 0x627   :  { %v4495_v25 = vrot.slane %v4494_v2, 2  ;;  %v4691_v16 = vadd.f32 %v4690_v58, %v4689_v18  ;;  %v8967_v58 = vld [vmem:[%s10012_s6] sm:$0x1]  ;;  %v10165_v18 = vld [vmem:[#allocation18_spill] sm:$0xff] }
 0x629   :  { %v4496_v31 = vadd.f32 %v4495_v25, %v4494_v2  ;;  %v4692_v34 = vrot.slane %v4691_v16, 2  ;;  %v10166_v2 = vld [vmem:[#allocation17_spill] sm:$0xff] }
 0x62b   :  { %v4497_v48 = vrot.slane %v4496_v31, 1  ;;  %v4693_v12 = vadd.f32 %v4692_v34, %v4691_v16  ;;  %v10163_v16 = vld [vmem:[#allocation27_spill] sm:$0xff] }
 0x62d   :  { %v4498_v60 = vadd.f32 %v4497_v48, %v4496_v31  ;;  %v4694_v54 = vrot.slane %v4693_v12, 1  ;;  %v10167_v48 = vld [vmem:[#allocation16_spill] sm:$0xff] }
 0x62f   :  { %v4695_v39 = vadd.f32 %v4694_v54, %v4693_v12  ;;  %v4696_v5 = vmul.f32 0.001953125, %v4498_v60  ;;  %v10168_v12 = vld [vmem:[#allocation23_spill] sm:$0xff]  ;;  %v10169_v60 = vld [vmem:[#allocation22_spill] sm:$0xff] }
 0x631   :  { %v4697_v24 = vmul.f32 0.001953125, %v4695_v39  ;;  %v4698_v62 = vmul.f32 %v4696_v5, %v4696_v5  ;;  %v10170_v39 = vld [vmem:[#allocation21_spill] sm:$0xff] }
 0x633   :  { %v4699_v49 = vsub.f32 %v4697_v24, %v4698_v62  ;;  %v10183_v24 = vld [vmem:[#allocation5_spill] sm:$0xff] }
 0x635   :  { %v4701_v0 = vadd.f32 1e-05, %v4699_v49  ;;  %v10171_v49 = vld [vmem:[#allocation20_spill] sm:$0xff] }
 0x637   :  { %6116 = vrsqrt.f32 %v4701_v0 }
 0x641   :  { %v6117_v19 = vpop.eup %6116 }
 0x642   :  { %v4703_v28 = vmul.f32 %v6117_v19, %v4700_v45  ;;  %v10172_v45 = vld [vmem:[#allocation24_spill] sm:$0xff] }
 0x644   :  { %v8969_v31 = vmul.f32 %v4703_v28, %v4696_v5  ;;  %v8972_v34 = vrot.slane %v4703_v28, %v10163_v16  ;;  %v10173_v28 = vld [vmem:[#allocation3_spill] sm:$0xff] }
 0x646   :  { %v8978_v62 = vmul.f32 %v8972_v34, %v8515_v38  ;;  %v8982_v25 = vmul.f32 %v8972_v34, %v8521_v55  ;;  %v8986_v59 = vmul.f32 %v8513_v7, %v8972_v34  ;;  %v8990_v23 = vmul.f32 %v8519_v51, %v8972_v34 }
 0x647   :  { %v8994_v63 = vmul.f32 %v8972_v34, %v8542_v36  ;;  %v8998_v38 = vmul.f32 %v8972_v34, %v8551_v8  ;;  %v9002_v55 = vmul.f32 %v8540_v42, %v8972_v34  ;;  %v9006_v7 = vmul.f32 %v8549_v6, %v8972_v34 }
 0x648   :  { %v9010_v51 = vmul.f32 %v8972_v34, %v8570_v46  ;;  %v9014_v36 = vmul.f32 %v8972_v34, %v8579_v10  ;;  %v9018_v8 = vmul.f32 %v8568_v53, %v8972_v34  ;;  %v9022_v42 = vmul.f32 %v8577_v27, %v8972_v34 }
 0x649   :  { %v9026_v6 = vmul.f32 %v8972_v34, %v8598_v11  ;;  %v9030_v46 = vmul.f32 %v8972_v34, %v8607_v37  ;;  %v9034_v10 = vmul.f32 %v8596_v3, %v8972_v34  ;;  %v9038_v53 = vmul.f32 %v8605_v4, %v8972_v34 }
 0x64a   :  { %v9042_v27 = vmul.f32 %v8972_v34, %v8626_v57  ;;  %v9046_v11 = vmul.f32 %v8972_v34, %v8635_v22  ;;  %v9050_v37 = vmul.f32 %v8624_v26, %v8972_v34  ;;  %v9054_v3 = vmul.f32 %v8633_v41, %v8972_v34 }
 0x64b   :  { %v9058_v4 = vmul.f32 %v8972_v34, %v8654_v1  ;;  %v9062_v57 = vmul.f32 %v8972_v34, %v8663_v32  ;;  %v9066_v22 = vmul.f32 %v8652_v20, %v8972_v34  ;;  %v9070_v26 = vmul.f32 %v8661_v17, %v8972_v34 }
 0x64c   :  { %v9074_v41 = vmul.f32 %v8972_v34, %v8682_v52  ;;  %v9078_v1 = vmul.f32 %v8972_v34, %v8691_v47  ;;  %v9082_v32 = vmul.f32 %v8680_v56, %v8972_v34  ;;  %v9086_v20 = vmul.f32 %v8689_v43, %v8972_v34 }
 0x64d   :  { %v9090_v17 = vmul.f32 %v8972_v34, %v8710_v21  ;;  %v9094_v52 = vmul.f32 %v8972_v34, %v8719_v13  ;;  %v9098_v47 = vmul.f32 %v8708_v30, %v8972_v34  ;;  %v9102_v56 = vmul.f32 %v8717_v50, %v8972_v34 }
 0x64e   :  { %v9106_v43 = vmul.f32 %v8972_v34, %v8738_v9  ;;  %v9110_v21 = vmul.f32 %v8972_v34, %v8747_v33  ;;  %v9114_v13 = vmul.f32 %v8736_v29, %v8972_v34  ;;  %v9118_v30 = vmul.f32 %v8745_v44, %v8972_v34 }
 0x64f   :  { %v9122_v50 = vmul.f32 %v8972_v34, %v8766_v61  ;;  %v9126_v9 = vmul.f32 %v8972_v34, %v8775_v35  ;;  %v9130_v33 = vmul.f32 %v8764_v15, %v8972_v34  ;;  %v9134_v29 = vmul.f32 %v8773_v40, %v8972_v34 }
 0x650   :  { %v9138_v44 = vmul.f32 %v8972_v34, %v10164_v14  ;;  %v9142_v61 = vmul.f32 %v8972_v34, %v10165_v18  ;;  %v9146_v35 = vmul.f32 %v10166_v2, %v8972_v34  ;;  %v9150_v15 = vmul.f32 %v10167_v48, %v8972_v34  ;;  %v10175_v18 = vld [vmem:[#allocation25_spill] sm:$0xff]  ;;  %v10177_v48 = vld [vmem:[#allocation26_spill] sm:$0xff] }
 0x651   :  { %v9154_v40 = vmul.f32 %v8972_v34, %v10168_v12  ;;  %v9158_v54 = vmul.f32 %v8972_v34, %v10169_v60  ;;  %v9162_v5 = vmul.f32 %v10170_v39, %v8972_v34  ;;  %v9166_v0 = vmul.f32 %v10171_v49, %v8972_v34  ;;  %v10179_v60 = vld [vmem:[#allocation7_spill] sm:$0xff]  ;;  %v10181_v49 = vld [vmem:[#allocation6_spill] sm:$0xff] }
 0x652   :  { %v9170_v19 = vmul.f32 %v8972_v34, %v10172_v45  ;;  %v9174_v14 = vmul.f32 %v8972_v34, %v10173_v28  ;;  %v9178_v2 = vmul.f32 %v10175_v18, %v8972_v34  ;;  %v9182_v12 = vmul.f32 %v10177_v48, %v8972_v34 }
 0x653   :  { %v9186_v39 = vmul.f32 %v8972_v34, %v10179_v60  ;;  %v9190_v45 = vmul.f32 %v8972_v34, %v10181_v49  ;;  %v9194_v28 = vmul.f32 %v10183_v24, %v8972_v34 }
 0x654   :  { %10174 = vst [vmem:[#allocation27_spill] sm:$0xff] %v9174_v14  ;;  %10176 = vst [vmem:[#allocation19_spill] sm:$0xff] %v9178_v2  ;;  %v10185_v14 = vld [vmem:[#allocation4_spill] sm:$0xff]  ;;  %v10187_v2 = vld [vmem:[#allocation11_spill] sm:$0xff] }
 0x655   :  { %10178 = vst [vmem:[#allocation18_spill] sm:$0xff] %v9182_v12  ;;  %10180 = vst [vmem:[#allocation17_spill] sm:$0xff] %v9186_v39  ;;  %v9198_v18 = vmul.f32 %v10185_v14, %v8972_v34  ;;  %v9202_v48 = vmul.f32 %v8972_v34, %v10187_v2  ;;  %v10189_v12 = vld [vmem:[#allocation10_spill] sm:$0xff]  ;;  %v10191_v39 = vld [vmem:[#allocation9_spill] sm:$0xff] }
 0x656   :  { %10182 = vst [vmem:[#allocation16_spill] sm:$0xff] %v9190_v45  ;;  %10184 = vst [vmem:[#allocation23_spill] sm:$0xff] %v9194_v28  ;;  %v9206_v60 = vmul.f32 %v8972_v34, %v10189_v12  ;;  %v9210_v49 = vmul.f32 %v10191_v39, %v8972_v34  ;;  %v10192_v45 = vld [vmem:[#allocation8_spill] sm:$0xff]  ;;  %v10194_v28 = vld [vmem:[#allocation15_spill] sm:$0xff] }
 0x657   :  { %10186 = vst [vmem:[#allocation22_spill] sm:$0xff] %v9198_v18  ;;  %10188 = vst [vmem:[#allocation21_spill] sm:$0xff] %v9202_v48  ;;  %v9214_v24 = vmul.f32 %v10192_v45, %v8972_v34  ;;  %v9218_v14 = vmul.f32 %v8972_v34, %v10194_v28  ;;  %v10195_v18 = vld [vmem:[#allocation14_spill] sm:$0xff]  ;;  %v10196_v48 = vld [vmem:[#allocation13_spill] sm:$0xff]  ;;  %v10198_v45 = vsub.f32 %v8967_v58, %v8969_v31 }
 0x658   :  { %10190 = vst [vmem:[#allocation20_spill] sm:$0xff] %v9206_v60  ;;  %v9222_v2 = vmul.f32 %v8972_v34, %v10195_v18  ;;  %v9226_v12 = vmul.f32 %v10196_v48, %v8972_v34  ;;  %v10197_v60 = vld [vmem:[#allocation12_spill] sm:$0xff] }
 0x659   :  { %10193 = vst [vmem:[#allocation24_spill] sm:$0xff] %v9214_v24  ;;  %v9230_v39 = vmul.f32 %v10197_v60, %v8972_v34  ;;  %v9236_v24 = vrot.slane %v10198_v45, %v10163_v16 }
 0x65b   :  { %v9240_v28 = vadd.f32 %v9236_v24, %v8978_v62  ;;  %v9244_v18 = vadd.f32 %v9236_v24, %v8982_v25  ;;  %v9248_v48 = vadd.f32 %v9236_v24, %v8986_v59  ;;  %v9252_v34 = vadd.f32 %v9236_v24, %v8990_v23  ;;  %v10217_v60 = vld [vmem:[#allocation19_spill] sm:$0xff] }
 0x65c   :  { %v9256_v58 = vadd.f32 %v9236_v24, %v8994_v63  ;;  %v9260_v31 = vadd.f32 %v9236_v24, %v8998_v38  ;;  %v9264_v16 = vadd.f32 %v9236_v24, %v9002_v55  ;;  %v9268_v62 = vadd.f32 %v9236_v24, %v9006_v7 }
 0x65d   :  { %v9272_v25 = vadd.f32 %v9236_v24, %v9010_v51  ;;  %v9276_v59 = vadd.f32 %v9236_v24, %v9014_v36  ;;  %v9280_v23 = vadd.f32 %v9236_v24, %v9018_v8  ;;  %v9284_v63 = vadd.f32 %v9236_v24, %v9022_v42 }
 0x65e   :  { %v9288_v38 = vadd.f32 %v9236_v24, %v9026_v6  ;;  %v9292_v55 = vadd.f32 %v9236_v24, %v9030_v46  ;;  %v9296_v7 = vadd.f32 %v9236_v24, %v9034_v10  ;;  %v9300_v51 = vadd.f32 %v9236_v24, %v9038_v53 }
 0x65f   :  { %v9304_v36 = vadd.f32 %v9236_v24, %v9042_v27  ;;  %v9308_v8 = vadd.f32 %v9236_v24, %v9046_v11  ;;  %v9312_v42 = vadd.f32 %v9236_v24, %v9050_v37  ;;  %v9316_v6 = vadd.f32 %v9236_v24, %v9054_v3 }
 0x660   :  { %v9320_v46 = vadd.f32 %v9236_v24, %v9058_v4  ;;  %v9324_v10 = vadd.f32 %v9236_v24, %v9062_v57  ;;  %v9328_v53 = vadd.f32 %v9236_v24, %v9066_v22  ;;  %v9332_v27 = vadd.f32 %v9236_v24, %v9070_v26 }
 0x661   :  { %v9336_v11 = vadd.f32 %v9236_v24, %v9074_v41  ;;  %v9340_v37 = vadd.f32 %v9236_v24, %v9078_v1  ;;  %v9344_v3 = vadd.f32 %v9236_v24, %v9082_v32  ;;  %v9348_v4 = vadd.f32 %v9236_v24, %v9086_v20 }
 0x662   :  { %v9352_v57 = vadd.f32 %v9236_v24, %v9090_v17  ;;  %v9356_v22 = vadd.f32 %v9236_v24, %v9094_v52  ;;  %v9360_v26 = vadd.f32 %v9236_v24, %v9098_v47  ;;  %v9364_v41 = vadd.f32 %v9236_v24, %v9102_v56 }
 0x663   :  { %v9368_v1 = vadd.f32 %v9236_v24, %v9106_v43  ;;  %v9372_v32 = vadd.f32 %v9236_v24, %v9110_v21  ;;  %v9376_v20 = vadd.f32 %v9236_v24, %v9114_v13  ;;  %v9380_v17 = vadd.f32 %v9236_v24, %v9118_v30 }
 0x664   :  { %v9384_v52 = vadd.f32 %v9236_v24, %v9122_v50  ;;  %v9388_v47 = vadd.f32 %v9236_v24, %v9126_v9  ;;  %v9392_v56 = vadd.f32 %v9236_v24, %v9130_v33  ;;  %v9396_v43 = vadd.f32 %v9236_v24, %v9134_v29 }
 0x665   :  { %10199 = vst [vmem:[#allocation3_spill] sm:$0xff] %v9372_v32  ;;  %10200 = vst [vmem:[#allocation25_spill] sm:$0xff] %v9376_v20  ;;  %v9400_v21 = vadd.f32 %v9236_v24, %v9138_v44  ;;  %v9404_v13 = vadd.f32 %v9236_v24, %v9142_v61  ;;  %v9408_v30 = vadd.f32 %v9236_v24, %v9146_v35  ;;  %v4847_v61 = vld [vmem:[%s10006_s0] sm:$0xff]  ;;  %v4848_v35 = vld [vmem:[%s10006_s0 + $0x8] sm:$0xff] }
 0x666   :  { %10201 = vst [vmem:[#allocation26_spill] sm:$0xff] %v9380_v17  ;;  %10202 = vst [vmem:[#allocation7_spill] sm:$0xff] %v9384_v52  ;;  %v9412_v50 = vadd.f32 %v9236_v24, %v9150_v15  ;;  %v9416_v9 = vadd.f32 %v9236_v24, %v9154_v40  ;;  %v9420_v33 = vadd.f32 %v9236_v24, %v9158_v54  ;;  %v4849_v15 = vld [vmem:[%s10006_s0 + $0x10] sm:$0xff]  ;;  %v4850_v40 = vld [vmem:[%s10006_s0 + $0x18] sm:$0xff] }
 0x667   :  { %10203 = vst [vmem:[#allocation6_spill] sm:$0xff] %v9388_v47  ;;  %10204 = vst [vmem:[#allocation5_spill] sm:$0xff] %v9392_v56  ;;  %v9424_v29 = vadd.f32 %v9236_v24, %v9162_v5  ;;  %v9428_v44 = vadd.f32 %v9236_v24, %v9166_v0  ;;  %v9444_v54 = vadd.f32 %v9236_v24, %v9170_v19  ;;  %v10215_v5 = vld [vmem:[#allocation27_spill] sm:$0xff]  ;;  %v4852_v19 = vld [vmem:[%s10006_s0 + $0x28] sm:$0xff] }
 0x668   :  { %10205 = vst [vmem:[#allocation4_spill] sm:$0xff] %v9396_v43  ;;  %10206 = vst [vmem:[#allocation11_spill] sm:$0xff] %v9400_v21  ;;  %v9448_v0 = vadd.f32 %v9236_v24, %v10215_v5  ;;  %v9452_v45 = vadd.f32 %v9236_v24, %v10217_v60  ;;  %v4853_v5 = vld [vmem:[%s10006_s0 + $0x30] sm:$0xff]  ;;  %v4854_v60 = vld [vmem:[%s10006_s0 + $0x38] sm:$0xff]  ;;  %v4913_v47 = vadd.f32 %v4849_v15, %v9248_v48 }
 0x669   :  { %10207 = vst [vmem:[#allocation10_spill] sm:$0xff] %v9404_v13  ;;  %10208 = vst [vmem:[#allocation9_spill] sm:$0xff] %v9408_v30  ;;  %v4855_v13 = vld [vmem:[%s10006_s0 + $0x40] sm:$0xff]  ;;  %v10234_v21 = vld [vmem:[#allocation24_spill] sm:$0xff]  ;;  %v4914_v52 = vadd.f32 %v4850_v40, %v9252_v34  ;;  %v4916_v48 = vadd.f32 %v4852_v19, %v9260_v31  ;;  %v4917_v34 = vadd.f32 %v4853_v5, %v9264_v16 }
 0x66a   :  { %10209 = vst [vmem:[#allocation8_spill] sm:$0xff] %v9412_v50  ;;  %10210 = vst [vmem:[#allocation15_spill] sm:$0xff] %v9416_v9  ;;  %v10227_v50 = vld [vmem:[#allocation22_spill] sm:$0xff]  ;;  %v9512_v43 = vadd.f32 %v9236_v24, %v10234_v21  ;;  %v4859_v56 = vld [vmem:[%s10006_s0 + $0x60] sm:$0xff]  ;;  %v9528_v21 = vadd.f32 %v9236_v24, %v9218_v14  ;;  %v4919_v31 = vadd.f32 %v4855_v13, %v9272_v25 }
 0x66b   :  { %10211 = vst [vmem:[#allocation14_spill] sm:$0xff] %v9420_v33  ;;  %10212 = vst [vmem:[#allocation13_spill] sm:$0xff] %v9424_v29  ;;  %v4851_v33 = vld [vmem:[%s10006_s0 + $0x20] sm:$0xff]  ;;  %v9484_v30 = vadd.f32 %v9236_v24, %v10227_v50  ;;  %v4864_v14 = vld [vmem:[%s10006_s0 + $0x88] sm:$0xff] }
 0x66c   :  { %10213 = vst [vmem:[#allocation12_spill] sm:$0xff] %v9428_v44  ;;  %10214 = vst [vmem:[#allocation28_spill] sm:$0xff] %v9444_v54  ;;  %v10219_v44 = vld [vmem:[#allocation18_spill] sm:$0xff]  ;;  %v10225_v54 = vld [vmem:[#allocation23_spill] sm:$0xff]  ;;  %v4928_v19 = vadd.f32 %v4864_v14, %v9308_v8 }
 0x66d   :  { %10216 = vst [vmem:[#allocation27_spill] sm:$0xff] %v9448_v0  ;;  %10218 = vst [vmem:[#allocation19_spill] sm:$0xff] %v9452_v45  ;;  %v9456_v29 = vadd.f32 %v9236_v24, %v10219_v44  ;;  %v10221_v45 = vld [vmem:[#allocation17_spill] sm:$0xff]  ;;  %v9480_v9 = vadd.f32 %v9236_v24, %v10225_v54  ;;  %v4858_v54 = vld [vmem:[%s10006_s0 + $0x58] sm:$0xff] }
 0x66e   :  { %v9472_v44 = vadd.f32 %v9236_v24, %v10221_v45  ;;  %10228 = vst [vmem:[#allocation22_spill] sm:$0xff] %v9484_v30  ;;  %v4856_v45 = vld [vmem:[%s10006_s0 + $0x48] sm:$0xff]  ;;  %10235 = vst [vmem:[#allocation24_spill] sm:$0xff] %v9512_v43  ;;  %v9532_v43 = vadd.f32 %v9236_v24, %v9222_v2  ;;  %v4865_v2 = vld [vmem:[%s10006_s0 + $0x90] sm:$0xff] }
 0x66f   :  { %10220 = vst [vmem:[#allocation18_spill] sm:$0xff] %v9456_v29  ;;  %v10223_v29 = vld [vmem:[#allocation16_spill] sm:$0xff]  ;;  %10226 = vst [vmem:[#allocation23_spill] sm:$0xff] %v9480_v9  ;;  %v10229_v9 = vld [vmem:[#allocation21_spill] sm:$0xff]  ;;  %v4920_v16 = vadd.f32 %v4856_v45, %v9276_v59  ;;  %v4929_v5 = vadd.f32 %v4865_v2, %v9312_v42 }
 0x670   :  { %10222 = vst [vmem:[#allocation17_spill] sm:$0xff] %v9472_v44  ;;  %v9476_v0 = vadd.f32 %v9236_v24, %v10223_v29  ;;  %v4857_v29 = vld [vmem:[%s10006_s0 + $0x50] sm:$0xff]  ;;  %v9500_v50 = vadd.f32 %v9236_v24, %v10229_v9  ;;  %v10231_v30 = vld [vmem:[#allocation20_spill] sm:$0xff]  ;;  %v9508_v44 = vadd.f32 %v9236_v24, %v9210_v49  ;;  %v4862_v49 = vld [vmem:[%s10006_s0 + $0x78] sm:$0xff] }
 0x671   :  { %v4860_v9 = vld [vmem:[%s10006_s0 + $0x68] sm:$0xff]  ;;  %10236 = vst [vmem:[#allocation30_spill] sm:$0xff] %v9528_v21  ;;  %10237 = vst [vmem:[#allocation31_spill] sm:$0xff] %v9532_v43  ;;  %v4911_v43 = vadd.f32 %v4847_v61, %v9240_v28  ;;  %v4912_v21 = vadd.f32 %v4848_v35, %v9244_v18  ;;  %v4871_v17 = vld [vmem:[%s10006_s0 + $0xc0] sm:$0xff]  ;;  %v4915_v18 = vadd.f32 %v4851_v33, %v9256_v58 }
 0x672   :  { %10224 = vst [vmem:[#allocation16_spill] sm:$0xff] %v9476_v0  ;;  %10230 = vst [vmem:[#allocation21_spill] sm:$0xff] %v9500_v50  ;;  %v9504_v0 = vadd.f32 %v9236_v24, %v10231_v30  ;;  %v4861_v30 = vld [vmem:[%s10006_s0 + $0x70] sm:$0xff]  ;;  %v4863_v50 = vld [vmem:[%s10006_s0 + $0x80] sm:$0xff]  ;;  %v4918_v61 = vadd.f32 %v4854_v60, %v9268_v62  ;;  %v4921_v62 = vadd.f32 %v4857_v29, %v9280_v23 }
 0x673   :  { %10233 = vst [vmem:[#allocation29_spill] sm:$0xff] %v9508_v44  ;;  %v9536_v44 = vadd.f32 %v9236_v24, %v9226_v12  ;;  %v4866_v12 = vld [vmem:[%s10006_s0 + $0x98] sm:$0xff]  ;;  %v4872_v20 = vld [vmem:[%s10006_s0 + $0xc8] sm:$0xff]  ;;  %v4873_v32 = vld [vmem:[%s10006_s0 + $0xd0] sm:$0xff]  ;;  %v4922_v33 = vadd.f32 %v4858_v54, %v9284_v63  ;;  %v4926_v13 = vadd.f32 %v4862_v49, %v9300_v51 }
 0x674   :  { %10232 = vst [vmem:[#allocation20_spill] sm:$0xff] %v9504_v0  ;;  %v9540_v0 = vadd.f32 %v9236_v24, %v9230_v39  ;;  %v4867_v24 = vld [vmem:[%s10006_s0 + $0xa0] sm:$0xff]  ;;  %v4868_v39 = vld [vmem:[%s10006_s0 + $0xa8] sm:$0xff]  ;;  %v4874_v28 = vld [vmem:[%s10006_s0 + $0xd8] sm:$0xff]  ;;  %v4930_v60 = vadd.f32 %v4866_v12, %v9316_v6 }
 0x675   :  { %10238 = vst [vmem:[#allocation32_spill] sm:$0xff] %v9536_v44  ;;  %v4870_v44 = vld [vmem:[%s10006_s0 + $0xb8] sm:$0xff]  ;;  %v4875_v35 = vld [vmem:[%s10006_s0 + $0xe0] sm:$0xff]  ;;  %v4876_v15 = vld [vmem:[%s10006_s0 + $0xe8] sm:$0xff]  ;;  %v4931_v6 = vadd.f32 %v4867_v24, %v9320_v46  ;;  %v4932_v45 = vadd.f32 %v4868_v39, %v9324_v10 }
 0x676   :  { %10239 = vst [vmem:[#allocation33_spill] sm:$0xff] %v9540_v0  ;;  %v4869_v0 = vld [vmem:[%s10006_s0 + $0xb0] sm:$0xff]  ;;  %v4878_v58 = vld [vmem:[%s10006_s0 + $0xf8] sm:$0xff]  ;;  %4975 = vst.msk [vmem:[%s10013_s7] sm:$0xff] %vm27_vm0, %v4911_v43  ;;  %v4925_v43 = vadd.f32 %v4861_v30, %v9296_v7  ;;  %v4934_v54 = vadd.f32 %v4870_v44, %v9332_v27  ;;  %v4935_v27 = vadd.f32 %v4871_v17, %v9336_v11 }
 0x677   :  { %v4877_v40 = vld [vmem:[%s10006_s0 + $0xf0] sm:$0xff]  ;;  %4976 = vst.msk [vmem:[%s10013_s7 + $0x8] sm:$0xff] %vm27_vm0, %v4912_v21  ;;  %4977 = vst.msk [vmem:[%s10013_s7 + $0x10] sm:$0xff] %vm27_vm0, %v4913_v47  ;;  %v4879_v25 = vld [vmem:[%s10006_s0 + $0x100] sm:$0xff]  ;;  %v4923_v47 = vadd.f32 %v4859_v56, %v9288_v38  ;;  %v4927_v56 = vadd.f32 %v4863_v50, %v9304_v36  ;;  %v4933_v29 = vadd.f32 %v4869_v0, %v9328_v53 }
 0x678   :  { %4978 = vst.msk [vmem:[%s10013_s7 + $0x18] sm:$0xff] %vm27_vm0, %v4914_v52  ;;  %v4880_v59 = vld [vmem:[%s10006_s0 + $0x108] sm:$0xff]  ;;  %v4881_v23 = vld [vmem:[%s10006_s0 + $0x110] sm:$0xff]  ;;  %v4882_v63 = vld [vmem:[%s10006_s0 + $0x118] sm:$0xff]  ;;  %v4924_v52 = vadd.f32 %v4860_v9, %v9292_v55  ;;  %v4936_v0 = vadd.f32 %v4872_v20, %v9340_v37  ;;  %v4937_v44 = vadd.f32 %v4873_v32, %v9344_v3  ;;  %v4938_v50 = vadd.f32 %v4874_v28, %v9348_v4 }
 0x679   :  { %4979 = vst.msk [vmem:[%s10013_s7 + $0x20] sm:$0xff] %vm27_vm0, %v4915_v18  ;;  %4980 = vst.msk [vmem:[%s10013_s7 + $0x28] sm:$0xff] %vm27_vm0, %v4916_v48  ;;  %v4883_v38 = vld [vmem:[%s10006_s0 + $0x120] sm:$0xff]  ;;  %v4884_v55 = vld [vmem:[%s10006_s0 + $0x128] sm:$0xff]  ;;  %v4939_v4 = vadd.f32 %v4875_v35, %v9352_v57  ;;  %v4940_v32 = vadd.f32 %v4876_v15, %v9356_v22  ;;  %v4941_v20 = vadd.f32 %v4877_v40, %v9360_v26 }
 0x67a   :  { %4981 = vst.msk [vmem:[%s10013_s7 + $0x30] sm:$0xff] %vm27_vm0, %v4917_v34  ;;  %4982 = vst.msk [vmem:[%s10013_s7 + $0x38] sm:$0xff] %vm27_vm0, %v4918_v61  ;;  %v4885_v7 = vld [vmem:[%s10006_s0 + $0x130] sm:$0xff]  ;;  %v4886_v51 = vld [vmem:[%s10006_s0 + $0x138] sm:$0xff]  ;;  %v4942_v17 = vadd.f32 %v4878_v58, %v9364_v41  ;;  %v4943_v41 = vadd.f32 %v4879_v25, %v9368_v1 }
 0x67b   :  { %4983 = vst.msk [vmem:[%s10013_s7 + $0x40] sm:$0xff] %vm27_vm0, %v4919_v31  ;;  %4984 = vst.msk [vmem:[%s10013_s7 + $0x48] sm:$0xff] %vm27_vm0, %v4920_v16  ;;  %v4887_v36 = vld [vmem:[%s10006_s0 + $0x140] sm:$0xff]  ;;  %v4888_v8 = vld [vmem:[%s10006_s0 + $0x148] sm:$0xff] }
 0x67c   :  { %4985 = vst.msk [vmem:[%s10013_s7 + $0x50] sm:$0xff] %vm27_vm0, %v4921_v62  ;;  %4986 = vst.msk [vmem:[%s10013_s7 + $0x58] sm:$0xff] %vm27_vm0, %v4922_v33  ;;  %v4889_v42 = vld [vmem:[%s10006_s0 + $0x150] sm:$0xff]  ;;  %v4890_v46 = vld [vmem:[%s10006_s0 + $0x158] sm:$0xff] }
 0x67d   :  { %4987 = vst.msk [vmem:[%s10013_s7 + $0x60] sm:$0xff] %vm27_vm0, %v4923_v47  ;;  %4988 = vst.msk [vmem:[%s10013_s7 + $0x68] sm:$0xff] %vm27_vm0, %v4924_v52  ;;  %v4891_v10 = vld [vmem:[%s10006_s0 + $0x160] sm:$0xff]  ;;  %v4892_v53 = vld [vmem:[%s10006_s0 + $0x168] sm:$0xff] }
 0x67e   :  { %4989 = vst.msk [vmem:[%s10013_s7 + $0x70] sm:$0xff] %vm27_vm0, %v4925_v43  ;;  %4990 = vst.msk [vmem:[%s10013_s7 + $0x78] sm:$0xff] %vm27_vm0, %v4926_v13  ;;  %v4893_v11 = vld [vmem:[%s10006_s0 + $0x170] sm:$0xff]  ;;  %v4894_v37 = vld [vmem:[%s10006_s0 + $0x178] sm:$0xff] }
 0x67f   :  { %4991 = vst.msk [vmem:[%s10013_s7 + $0x80] sm:$0xff] %vm27_vm0, %v4927_v56  ;;  %4992 = vst.msk [vmem:[%s10013_s7 + $0x88] sm:$0xff] %vm27_vm0, %v4928_v19  ;;  %v4895_v3 = vld [vmem:[%s10006_s0 + $0x180] sm:$0xff]  ;;  %v4896_v57 = vld [vmem:[%s10006_s0 + $0x188] sm:$0xff] }
 0x680   :  { %4993 = vst.msk [vmem:[%s10013_s7 + $0x90] sm:$0xff] %vm27_vm0, %v4929_v5  ;;  %4994 = vst.msk [vmem:[%s10013_s7 + $0x98] sm:$0xff] %vm27_vm0, %v4930_v60  ;;  %v4897_v22 = vld [vmem:[%s10006_s0 + $0x190] sm:$0xff]  ;;  %v4898_v26 = vld [vmem:[%s10006_s0 + $0x198] sm:$0xff] }
 0x681   :  { %4995 = vst.msk [vmem:[%s10013_s7 + $0xa0] sm:$0xff] %vm27_vm0, %v4931_v6  ;;  %4996 = vst.msk [vmem:[%s10013_s7 + $0xa8] sm:$0xff] %vm27_vm0, %v4932_v45  ;;  %v10240_v9 = vld [vmem:[#allocation3_spill] sm:$0xff]  ;;  %v10241_v49 = vld [vmem:[#allocation25_spill] sm:$0xff] }
 0x682   :  { %4997 = vst.msk [vmem:[%s10013_s7 + $0xb0] sm:$0xff] %vm27_vm0, %v4933_v29  ;;  %4998 = vst.msk [vmem:[%s10013_s7 + $0xb8] sm:$0xff] %vm27_vm0, %v4934_v54  ;;  %v4944_v30 = vadd.f32 %v4880_v59, %v10240_v9  ;;  %v4945_v21 = vadd.f32 %v4881_v23, %v10241_v49  ;;  %v10242_v14 = vld [vmem:[#allocation26_spill] sm:$0xff]  ;;  %v4899_v1 = vld [vmem:[%s10006_s0 + $0x1a0] sm:$0xff] }
 0x683   :  { %v4946_v2 = vadd.f32 %v4882_v63, %v10242_v14  ;;  %4999 = vst.msk [vmem:[%s10013_s7 + $0xc0] sm:$0xff] %vm27_vm0, %v4935_v27  ;;  %5000 = vst.msk [vmem:[%s10013_s7 + $0xc8] sm:$0xff] %vm27_vm0, %v4936_v0  ;;  %v4900_v12 = vld [vmem:[%s10006_s0 + $0x1a8] sm:$0xff]  ;;  %v4901_v24 = vld [vmem:[%s10006_s0 + $0x1b0] sm:$0xff] }
 0x684   :  { %5001 = vst.msk [vmem:[%s10013_s7 + $0xd0] sm:$0xff] %vm27_vm0, %v4937_v44  ;;  %5002 = vst.msk [vmem:[%s10013_s7 + $0xd8] sm:$0xff] %vm27_vm0, %v4938_v50  ;;  %v10243_v39 = vld [vmem:[#allocation7_spill] sm:$0xff]  ;;  %v10244_v18 = vld [vmem:[#allocation6_spill] sm:$0xff] }
 0x685   :  { %v4947_v28 = vadd.f32 %v4883_v38, %v10243_v39  ;;  %v4948_v48 = vadd.f32 %v4884_v55, %v10244_v18  ;;  %v10245_v34 = vld [vmem:[#allocation5_spill] sm:$0xff]  ;;  %v10246_v35 = vld [vmem:[#allocation4_spill] sm:$0xff]  ;;  %5003 = vst.msk [vmem:[%s10013_s7 + $0xe0] sm:$0xff] %vm27_vm0, %v4939_v4  ;;  %5004 = vst.msk [vmem:[%s10013_s7 + $0xe8] sm:$0xff] %vm27_vm0, %v4940_v32 }
 0x686   :  { %v4949_v61 = vadd.f32 %v4885_v7, %v10245_v34  ;;  %v4950_v15 = vadd.f32 %v4886_v51, %v10246_v35  ;;  %5005 = vst.msk [vmem:[%s10013_s7 + $0xf0] sm:$0xff] %vm27_vm0, %v4941_v20  ;;  %5006 = vst.msk [vmem:[%s10013_s7 + $0xf8] sm:$0xff] %vm27_vm0, %v4942_v17  ;;  %v4902_v40 = vld [vmem:[%s10006_s0 + $0x1b8] sm:$0xff]  ;;  %v4903_v58 = vld [vmem:[%s10006_s0 + $0x1c0] sm:$0xff] }
 0x687   :  { %v4904_v31 = vld [vmem:[%s10006_s0 + $0x1c8] sm:$0xff]  ;;  %v10247_v16 = vld [vmem:[#allocation11_spill] sm:$0xff]  ;;  %v10248_v33 = vld [vmem:[#allocation10_spill] sm:$0xff]  ;;  %5007 = vst.msk [vmem:[%s10013_s7 + $0x100] sm:$0xff] %vm27_vm0, %v4943_v41 }
 0x688   :  { %v4951_v62 = vadd.f32 %v4887_v36, %v10247_v16  ;;  %v4952_v25 = vadd.f32 %v4888_v8, %v10248_v33  ;;  %v10249_v59 = vld [vmem:[#allocation9_spill] sm:$0xff]  ;;  %v10250_v63 = vld [vmem:[#allocation8_spill] sm:$0xff]  ;;  %5008 = vst.msk [vmem:[%s10013_s7 + $0x108] sm:$0xff] %vm27_vm0, %v4944_v30  ;;  %5009 = vst.msk [vmem:[%s10013_s7 + $0x110] sm:$0xff] %vm27_vm0, %v4945_v21 }
 0x689   :  { %v4953_v23 = vadd.f32 %v4889_v42, %v10249_v59  ;;  %v4954_v47 = vadd.f32 %v4890_v46, %v10250_v63  ;;  %5010 = vst.msk [vmem:[%s10013_s7 + $0x118] sm:$0xff] %vm27_vm0, %v4946_v2  ;;  %v4905_v52 = vld [vmem:[%s10006_s0 + $0x1d0] sm:$0xff]  ;;  %v4906_v43 = vld [vmem:[%s10006_s0 + $0x1d8] sm:$0xff]  ;;  %v4907_v13 = vld [vmem:[%s10006_s0 + $0x1e0] sm:$0xff] }
 0x68a   :  { %v10251_v38 = vld [vmem:[#allocation15_spill] sm:$0xff]  ;;  %v10252_v7 = vld [vmem:[#allocation14_spill] sm:$0xff]  ;;  %v10253_v56 = vld [vmem:[#allocation13_spill] sm:$0xff]  ;;  %5011 = vst.msk [vmem:[%s10013_s7 + $0x120] sm:$0xff] %vm27_vm0, %v4947_v28 }
 0x68b   :  { %v4955_v55 = vadd.f32 %v4891_v10, %v10251_v38  ;;  %v4956_v51 = vadd.f32 %v4892_v53, %v10252_v7  ;;  %v4957_v19 = vadd.f32 %v4893_v11, %v10253_v56  ;;  %v10254_v5 = vld [vmem:[#allocation12_spill] sm:$0xff]  ;;  %5012 = vst.msk [vmem:[%s10013_s7 + $0x128] sm:$0xff] %vm27_vm0, %v4948_v48  ;;  %5013 = vst.msk [vmem:[%s10013_s7 + $0x130] sm:$0xff] %vm27_vm0, %v4949_v61  ;;  %v4909_v8 = vld [vmem:[%s10006_s0 + $0x1f0] sm:$0xff] }
 0x68c   :  { %v4958_v60 = vadd.f32 %v4894_v37, %v10254_v5  ;;  %5014 = vst.msk [vmem:[%s10013_s7 + $0x138] sm:$0xff] %vm27_vm0, %v4950_v15  ;;  %v4908_v36 = vld [vmem:[%s10006_s0 + $0x1e8] sm:$0xff]  ;;  %v4910_v42 = vld [vmem:[%s10006_s0 + $0x1f8] sm:$0xff]  ;;  %v10256_v29 = vld [vmem:[#allocation27_spill] sm:$0xff] }
 0x68d   :  { %v10255_v6 = vld [vmem:[#allocation28_spill] sm:$0xff]  ;;  %v4960_v54 = vadd.f32 %v4896_v57, %v10256_v29  ;;  %v10257_v46 = vld [vmem:[#allocation19_spill] sm:$0xff]  ;;  %v10258_v53 = vld [vmem:[#allocation18_spill] sm:$0xff]  ;;  %5015 = vst.msk [vmem:[%s10013_s7 + $0x140] sm:$0xff] %vm27_vm0, %v4951_v62 }
 0x68e   :  { %v4959_v45 = vadd.f32 %v4895_v3, %v10255_v6  ;;  %v4961_v10 = vadd.f32 %v4897_v22, %v10257_v46  ;;  %v4962_v27 = vadd.f32 %v4898_v26, %v10258_v53  ;;  %5016 = vst.msk [vmem:[%s10013_s7 + $0x148] sm:$0xff] %vm27_vm0, %v4952_v25  ;;  %5017 = vst.msk [vmem:[%s10013_s7 + $0x150] sm:$0xff] %vm27_vm0, %v4953_v23  ;;  %v10259_v0 = vld [vmem:[#allocation17_spill] sm:$0xff]  ;;  %v10260_v50 = vld [vmem:[#allocation16_spill] sm:$0xff] }
 0x68f   :  { %5018 = vst.msk [vmem:[%s10013_s7 + $0x158] sm:$0xff] %vm27_vm0, %v4954_v47  ;;  %v4963_v44 = vadd.f32 %v4899_v1, %v10259_v0  ;;  %v4964_v11 = vadd.f32 %v4900_v12, %v10260_v50  ;;  %v10261_v37 = vld [vmem:[#allocation23_spill] sm:$0xff]  ;;  %v10262_v4 = vld [vmem:[#allocation22_spill] sm:$0xff]  ;;  %5019 = vst.msk [vmem:[%s10013_s7 + $0x160] sm:$0xff] %vm27_vm0, %v4955_v55 }
 0x690   :  { %v4965_v3 = vadd.f32 %v4901_v24, %v10261_v37  ;;  %v4966_v32 = vadd.f32 %v4902_v40, %v10262_v4  ;;  %5020 = vst.msk [vmem:[%s10013_s7 + $0x168] sm:$0xff] %vm27_vm0, %v4956_v51  ;;  %5021 = vst.msk [vmem:[%s10013_s7 + $0x170] sm:$0xff] %vm27_vm0, %v4957_v19  ;;  %v10263_v20 = vld [vmem:[#allocation21_spill] sm:$0xff]  ;;  %v10264_v57 = vld [vmem:[#allocation20_spill] sm:$0xff] }
 0x691   :  { %5022 = vst.msk [vmem:[%s10013_s7 + $0x178] sm:$0xff] %vm27_vm0, %v4958_v60  ;;  %v4967_v17 = vadd.f32 %v4903_v58, %v10263_v20  ;;  %v4968_v22 = vadd.f32 %v4904_v31, %v10264_v57  ;;  %v10265_v26 = vld [vmem:[#allocation29_spill] sm:$0xff]  ;;  %v10266_v9 = vld [vmem:[#allocation24_spill] sm:$0xff]  ;;  %5023 = vst.msk [vmem:[%s10013_s7 + $0x180] sm:$0xff] %vm27_vm0, %v4959_v45 }
 0x692   :  { %v4969_v41 = vadd.f32 %v4905_v52, %v10265_v26  ;;  %v4970_v30 = vadd.f32 %v4906_v43, %v10266_v9  ;;  %5024 = vst.msk [vmem:[%s10013_s7 + $0x188] sm:$0xff] %vm27_vm0, %v4960_v54  ;;  %5025 = vst.msk [vmem:[%s10013_s7 + $0x190] sm:$0xff] %vm27_vm0, %v4961_v10  ;;  %v10267_v49 = vld [vmem:[#allocation30_spill] sm:$0xff]  ;;  %v10268_v14 = vld [vmem:[#allocation31_spill] sm:$0xff] }
 0x693   :  { %5026 = vst.msk [vmem:[%s10013_s7 + $0x198] sm:$0xff] %vm27_vm0, %v4962_v27  ;;  %v4971_v21 = vadd.f32 %v4907_v13, %v10267_v49  ;;  %v4972_v2 = vadd.f32 %v4908_v36, %v10268_v14  ;;  %v10269_v1 = vld [vmem:[#allocation32_spill] sm:$0xff]  ;;  %v10270_v24 = vld [vmem:[#allocation33_spill] sm:$0xff]  ;;  %5027 = vst.msk [vmem:[%s10013_s7 + $0x1a0] sm:$0xff] %vm27_vm0, %v4963_v44 }
 0x694   :  { %v4973_v12 = vadd.f32 %v4909_v8, %v10269_v1  ;;  %v4974_v39 = vadd.f32 %v4910_v42, %v10270_v24  ;;  %5028 = vst.msk [vmem:[%s10013_s7 + $0x1a8] sm:$0xff] %vm27_vm0, %v4964_v11  ;;  %5029 = vst.msk [vmem:[%s10013_s7 + $0x1b0] sm:$0xff] %vm27_vm0, %v4965_v3 }
 0x695   :  { %5030 = vst.msk [vmem:[%s10013_s7 + $0x1b8] sm:$0xff] %vm27_vm0, %v4966_v32  ;;  %5031 = vst.msk [vmem:[%s10013_s7 + $0x1c0] sm:$0xff] %vm27_vm0, %v4967_v17 }
 0x696   :  { %5032 = vst.msk [vmem:[%s10013_s7 + $0x1c8] sm:$0xff] %vm27_vm0, %v4968_v22  ;;  %5033 = vst.msk [vmem:[%s10013_s7 + $0x1d0] sm:$0xff] %vm27_vm0, %v4969_v41 }
 0x697   :  { %5034 = vst.msk [vmem:[%s10013_s7 + $0x1d8] sm:$0xff] %vm27_vm0, %v4970_v30  ;;  %5035 = vst.msk [vmem:[%s10013_s7 + $0x1e0] sm:$0xff] %vm27_vm0, %v4971_v21 }
 0x698   :  { %5036 = vst.msk [vmem:[%s10013_s7 + $0x1e8] sm:$0xff] %vm27_vm0, %v4972_v2  ;;  %5037 = vst.msk [vmem:[%s10013_s7 + $0x1f0] sm:$0xff] %vm27_vm0, %v4973_v12 }
 0x699   :  { %5038 = vst.msk [vmem:[%s10013_s7 + $0x1f8] sm:$0xff] %vm27_vm0, %v4974_v39 }

</bundles_post_ra>
